<compile_context>
chip_gen: v5e
topology: v5e:2x2
jax: 0.10.0
libtpu: 0.0.40
codegen_flags: <defaults>
</compile_context>

<pallas_src>
import jax
import jax.numpy as jnp
from jax.experimental import pallas as pl
from jax.experimental.pallas import tpu as pltpu


def _conv3x3_relu_kernel(x_ref, w_ref, b_ref, o_ref, xpad_ref, col_ref):
    """3x3 conv (padding=1) + bias + ReLU for one batch element.

    x_ref:    (1, Cin, H, W)     NCHW input tile (VMEM)
    w_ref:    (Cout, 9*Cin)      weight, k = (dy*3+dx)*Cin + c
    b_ref:    (Cout, 1)          bias (broadcast along lanes)
    o_ref:    (1, Cout, H*W)     lane-dense output tile
    xpad_ref: (Cin, H+2, W+2)    VMEM scratch: zero-padded input
    col_ref:  (9*Cin, H*W)       VMEM scratch: im2col matrix
    """
    Cin, Hp, Wp = xpad_ref.shape
    H, W = Hp - 2, Wp - 2
    HW = H * W

    # In-kernel zero padding (padding=1): no wrapper-side jnp.pad HBM round trip.
    xpad_ref[...] = jnp.zeros_like(xpad_ref)
    xpad_ref[:, 1:H + 1, 1:W + 1] = x_ref[0]

    # im2col with static slices; row index (dy*3+dx)*Cin + c matches w_ref layout.
    for dy in range(3):
        for dx in range(3):
            tap = dy * 3 + dx
            col_ref[tap * Cin:(tap + 1) * Cin, :] = (
                xpad_ref[:, dy:dy + H, dx:dx + W].reshape(Cin, HW))

    # Single fused MXU matmul: (Cout, 9*Cin) @ (9*Cin, H*W) -> (Cout, H*W).
    acc = jnp.dot(w_ref[...], col_ref[...], preferred_element_type=jnp.float32)
    acc = acc + b_ref[...]           # (Cout, 1) broadcast along the lane axis
    acc = jnp.maximum(acc, 0.0)      # ACT_RELU
    o_ref[0] = acc.astype(o_ref.dtype)


def conv_act_relu(x_nchw, weight_oihw, bias):
    """ConvAct(in_, out, activation=ACT_RELU) forward.

    x_nchw:      (N, Cin, H, W)
    weight_oihw: (Cout, Cin, 3, 3)  (PyTorch Conv2d layout)
    bias:        (Cout,)
    returns:     (N, Cout, H, W)
    """
    N, Cin, H, W = x_nchw.shape
    Cout = weight_oihw.shape[0]
    HW = H * W

    # Only tiny parameter reshapes happen outside the kernel.
    w2d = jnp.transpose(weight_oihw, (0, 2, 3, 1)).reshape(Cout, 9 * Cin)
    b2d = bias.reshape(Cout, 1)

    out = pl.pallas_call(
        _conv3x3_relu_kernel,
        out_shape=jax.ShapeDtypeStruct((N, Cout, HW), x_nchw.dtype),
        grid_spec=pltpu.PrefetchScalarGridSpec(
            num_scalar_prefetch=0,
            grid=(N,),
            in_specs=[
                pl.BlockSpec((1, Cin, H, W), lambda n: (n, 0, 0, 0)),
                pl.BlockSpec((Cout, 9 * Cin), lambda n: (0, 0)),
                pl.BlockSpec((Cout, 1), lambda n: (0, 0)),
            ],
            out_specs=pl.BlockSpec((1, Cout, HW), lambda n: (n, 0, 0)),
            scratch_shapes=[
                pltpu.VMEM((Cin, H + 2, W + 2), jnp.float32),
                pltpu.VMEM((9 * Cin, HW), jnp.float32),
            ],
        ),
        compiler_params=pltpu.CompilerParams(
            dimension_semantics=("parallel",),
        ),
    )(x_nchw, w2d, b2d)

    # Contiguous reshape only (no transpose) back to NCHW.
    return out.reshape(N, Cout, H, W)


def _bilinear_upsample_x2_align_corners(x):
    """F.upsample(scale_factor=2, mode='bilinear', align_corners=True) on NCHW."""
    N, C, H, W = x.shape
    Ho, Wo = 2 * H, 2 * W

    def coords(out_size, in_size):
        c = jnp.arange(out_size, dtype=jnp.float32) * (in_size - 1) / (out_size - 1)
        lo = jnp.floor(c).astype(jnp.int32)
        hi = jnp.minimum(lo + 1, in_size - 1)
        return c - lo.astype(jnp.float32), lo, hi

    fy, y0, y1 = coords(Ho, H)
    fx, x0, x1 = coords(Wo, W)
    rows = (x[:, :, y0, :] * (1.0 - fy)[None, None, :, None]
            + x[:, :, y1, :] * fy[None, None, :, None])
    out = (rows[:, :, :, x0] * (1.0 - fx)[None, None, None, :]
           + rows[:, :, :, x1] * fx[None, None, None, :])
    return out


def decoder_block_v3_forward(x, params, e=None):
    """DecoderBlockV3SE forward (batch_norm=False -> ConvAct path).

    upsample(x2, bilinear, align_corners=True) -> optional concat(e) ->
    ConvAct(in->mid) -> ConvAct(mid->out).
    """
    x = _bilinear_upsample_x2_align_corners(x)
    if e is not None:
        x = jnp.concatenate([x, e], axis=1)
    x = conv_act_relu(x, params["w1"], params["b1"])
    x = conv_act_relu(x, params["w2"], params["b2"])
    # TODO(synk): CABN/ABN (batch_norm=True path) and ChannelSpatialGate2d (SCSE)
    # are not defined in the provided spec, so they are not implemented here.
    return x


if __name__ == "__main__":
    # DecoderBlockV3SE(in_channels=8, middle_channels=16, out_channels=8,
    # batch_norm=False): x=(2,4,8,8) upsampled to (2,4,16,16), concat with skip
    # e=(2,4,16,16) -> (2,8,16,16), then conv 8->16 and conv 16->8.
    N, C_low, Hs, Ws = 2, 4, 8, 8
    C_skip = 4
    in_ch, mid_ch, out_ch = C_low + C_skip, 16, 8

    key = jax.random.PRNGKey(0)
    kx, ke, k1, k2 = jax.random.split(key, 4)

    x = jax.random.normal(kx, (N, C_low, Hs, Ws), dtype=jnp.float32)
    e = jax.random.normal(ke, (N, C_skip, 2 * Hs, 2 * Ws), dtype=jnp.float32)

    def conv_init(k, cin, cout):
        kw, kb = jax.random.split(k)
        bound = 1.0 / jnp.sqrt(cin * 9.0)
        w = jax.random.uniform(kw, (cout, cin, 3, 3), jnp.float32, -bound, bound)
        b = jax.random.uniform(kb, (cout,), jnp.float32, -bound, bound)
        return w, b

    w1, b1 = conv_init(k1, in_ch, mid_ch)
    w2, b2 = conv_init(k2, mid_ch, out_ch)
    params = {"w1": w1, "b1": b1, "w2": w2, "b2": b2}

    out = decoder_block_v3_forward(x, params, e=e)
    out = jax.block_until_ready(out)

    # Reference: same upsample/concat glue, XLA conv + ReLU for both ConvActs.
    def ref_conv(h, w, b):
        y = jax.lax.conv_general_dilated(
            h, w, window_strides=(1, 1), padding=((1, 1), (1, 1)),
            dimension_numbers=("NCHW", "OIHW", "NCHW"),
        ) + b.reshape(1, -1, 1, 1)
        return jnp.maximum(y, 0.0)

    href = _bilinear_upsample_x2_align_corners(x)
    href = jnp.concatenate([href, e], axis=1)
    ref = ref_conv(ref_conv(href, w1, b1), w2, b2)

    assert out.shape == (N, out_ch, 2 * Hs, 2 * Ws)
    assert jnp.allclose(out, ref, atol=1e-3, rtol=1e-3), float(
        jnp.max(jnp.abs(out - ref)))

    print("KERNEL_OK")
</pallas_src>

<mosaic_0001>
module attributes {stable_mosaic.version = 11 : i64} {
  func.func @_conv3x3_relu_kernel(%arg0: i32, %arg1: memref<1x8x16x16xf32, #tpu.memory_space<vmem>>, %arg2: memref<16x72xf32, #tpu.memory_space<vmem>>, %arg3: memref<16x1xf32, #tpu.memory_space<vmem>>, %arg4: memref<1x16x256xf32, #tpu.memory_space<vmem>>, %arg5: memref<8x18x18xf32, #tpu.memory_space<vmem>>, %arg6: memref<72x256xf32, #tpu.memory_space<vmem>>) attributes {dimension_semantics = [#tpu.dimension_semantics<parallel>], iteration_bounds = array<i64: 2>, scalar_prefetch = 0 : i64, scratch_operands = 2 : i64, tpu.core_type = #tpu.core_type<tc>, window_params = [{transform_indices = @transform_0, window_bounds = array<i64: 1, 8, 16, 16>}, {pipeline_mode = #tpu.pipeline_mode<synchronous>, transform_indices = @transform_1, window_bounds = array<i64: 16, 72>}, {pipeline_mode = #tpu.pipeline_mode<synchronous>, transform_indices = @transform_2, window_bounds = array<i64: 16, 1>}, {transform_indices = @transform_3, window_bounds = array<i64: 1, 16, 256>}]} {
    %cst = arith.constant 0.000000e+00 : f32
    %0 = vector.broadcast %cst : f32 to vector<8x18x18xf32>
    %c0 = arith.constant 0 : index
    %c0_0 = arith.constant 0 : index
    %c0_1 = arith.constant 0 : index
    %1 = vector.load %arg5[%c0, %c0_0, %c0_1] : memref<8x18x18xf32, #tpu.memory_space<vmem>>, vector<8x18x18xf32>
    tpu.vector_store %arg5[%c0, %c0_0, %c0_1], %0 {strides = array<i32>} : memref<8x18x18xf32, #tpu.memory_space<vmem>>, vector<8x18x18xf32>,
    %c0_2 = arith.constant 0 : index
    %c0_3 = arith.constant 0 : index
    %c0_4 = arith.constant 0 : index
    %c0_5 = arith.constant 0 : index
    %2 = vector.load %arg1[%c0_2, %c0_3, %c0_4, %c0_5] : memref<1x8x16x16xf32, #tpu.memory_space<vmem>>, vector<1x8x16x16xf32>
    %3 = vector.shape_cast %2 : vector<1x8x16x16xf32> to vector<8x16x16xf32>
    %c0_6 = arith.constant 0 : index
    %c1 = arith.constant 1 : index
    %c1_7 = arith.constant 1 : index
    %4 = vector.load %arg5[%c0_6, %c1, %c1_7] : memref<8x18x18xf32, #tpu.memory_space<vmem>>, vector<8x16x16xf32>
    tpu.vector_store %arg5[%c0_6, %c1, %c1_7], %3 {strides = array<i32>} : memref<8x18x18xf32, #tpu.memory_space<vmem>>, vector<8x16x16xf32>,
    %c0_8 = arith.constant 0 : index
    %c0_9 = arith.constant 0 : index
    %c0_10 = arith.constant 0 : index
    %5 = vector.load %arg5[%c0_8, %c0_9, %c0_10] : memref<8x18x18xf32, #tpu.memory_space<vmem>>, vector<8x16x16xf32>
    %6 = vector.shape_cast %5 : vector<8x16x16xf32> to vector<8x256xf32>
    %c0_11 = arith.constant 0 : index
    %c0_12 = arith.constant 0 : index
    %7 = vector.load %arg6[%c0_11, %c0_12] : memref<72x256xf32, #tpu.memory_space<vmem>>, vector<8x256xf32>
    tpu.vector_store %arg6[%c0_11, %c0_12], %6 {strides = array<i32>} : memref<72x256xf32, #tpu.memory_space<vmem>>, vector<8x256xf32>,
    %c0_13 = arith.constant 0 : index
    %c0_14 = arith.constant 0 : index
    %c1_15 = arith.constant 1 : index
    %8 = vector.load %arg5[%c0_13, %c0_14, %c1_15] : memref<8x18x18xf32, #tpu.memory_space<vmem>>, vector<8x16x16xf32>
    %9 = vector.shape_cast %8 : vector<8x16x16xf32> to vector<8x256xf32>
    %c8 = arith.constant 8 : index
    %c0_16 = arith.constant 0 : index
    %10 = vector.load %arg6[%c8, %c0_16] : memref<72x256xf32, #tpu.memory_space<vmem>>, vector<8x256xf32>
    tpu.vector_store %arg6[%c8, %c0_16], %9 {strides = array<i32>} : memref<72x256xf32, #tpu.memory_space<vmem>>, vector<8x256xf32>,
    %c0_17 = arith.constant 0 : index
    %c0_18 = arith.constant 0 : index
    %c2 = arith.constant 2 : index
    %11 = vector.load %arg5[%c0_17, %c0_18, %c2] : memref<8x18x18xf32, #tpu.memory_space<vmem>>, vector<8x16x16xf32>
    %12 = vector.shape_cast %11 : vector<8x16x16xf32> to vector<8x256xf32>
    %c16 = arith.constant 16 : index
    %c0_19 = arith.constant 0 : index
    %13 = vector.load %arg6[%c16, %c0_19] : memref<72x256xf32, #tpu.memory_space<vmem>>, vector<8x256xf32>
    tpu.vector_store %arg6[%c16, %c0_19], %12 {strides = array<i32>} : memref<72x256xf32, #tpu.memory_space<vmem>>, vector<8x256xf32>,
    %c0_20 = arith.constant 0 : index
    %c1_21 = arith.constant 1 : index
    %c0_22 = arith.constant 0 : index
    %14 = vector.load %arg5[%c0_20, %c1_21, %c0_22] : memref<8x18x18xf32, #tpu.memory_space<vmem>>, vector<8x16x16xf32>
    %15 = vector.shape_cast %14 : vector<8x16x16xf32> to vector<8x256xf32>
    %c24 = arith.constant 24 : index
    %c0_23 = arith.constant 0 : index
    %16 = vector.load %arg6[%c24, %c0_23] : memref<72x256xf32, #tpu.memory_space<vmem>>, vector<8x256xf32>
    tpu.vector_store %arg6[%c24, %c0_23], %15 {strides = array<i32>} : memref<72x256xf32, #tpu.memory_space<vmem>>, vector<8x256xf32>,
    %c0_24 = arith.constant 0 : index
    %c1_25 = arith.constant 1 : index
    %c1_26 = arith.constant 1 : index
    %17 = vector.load %arg5[%c0_24, %c1_25, %c1_26] : memref<8x18x18xf32, #tpu.memory_space<vmem>>, vector<8x16x16xf32>
    %18 = vector.shape_cast %17 : vector<8x16x16xf32> to vector<8x256xf32>
    %c32 = arith.constant 32 : index
    %c0_27 = arith.constant 0 : index
    %19 = vector.load %arg6[%c32, %c0_27] : memref<72x256xf32, #tpu.memory_space<vmem>>, vector<8x256xf32>
    tpu.vector_store %arg6[%c32, %c0_27], %18 {strides = array<i32>} : memref<72x256xf32, #tpu.memory_space<vmem>>, vector<8x256xf32>,
    %c0_28 = arith.constant 0 : index
    %c1_29 = arith.constant 1 : index
    %c2_30 = arith.constant 2 : index
    %20 = vector.load %arg5[%c0_28, %c1_29, %c2_30] : memref<8x18x18xf32, #tpu.memory_space<vmem>>, vector<8x16x16xf32>
    %21 = vector.shape_cast %20 : vector<8x16x16xf32> to vector<8x256xf32>
    %c40 = arith.constant 40 : index
    %c0_31 = arith.constant 0 : index
    %22 = vector.load %arg6[%c40, %c0_31] : memref<72x256xf32, #tpu.memory_space<vmem>>, vector<8x256xf32>
    tpu.vector_store %arg6[%c40, %c0_31], %21 {strides = array<i32>} : memref<72x256xf32, #tpu.memory_space<vmem>>, vector<8x256xf32>,
    %c0_32 = arith.constant 0 : index
    %c2_33 = arith.constant 2 : index
    %c0_34 = arith.constant 0 : index
    %23 = vector.load %arg5[%c0_32, %c2_33, %c0_34] : memref<8x18x18xf32, #tpu.memory_space<vmem>>, vector<8x16x16xf32>
    %24 = vector.shape_cast %23 : vector<8x16x16xf32> to vector<8x256xf32>
    %c48 = arith.constant 48 : index
    %c0_35 = arith.constant 0 : index
    %25 = vector.load %arg6[%c48, %c0_35] : memref<72x256xf32, #tpu.memory_space<vmem>>, vector<8x256xf32>
    tpu.vector_store %arg6[%c48, %c0_35], %24 {strides = array<i32>} : memref<72x256xf32, #tpu.memory_space<vmem>>, vector<8x256xf32>,
    %c0_36 = arith.constant 0 : index
    %c2_37 = arith.constant 2 : index
    %c1_38 = arith.constant 1 : index
    %26 = vector.load %arg5[%c0_36, %c2_37, %c1_38] : memref<8x18x18xf32, #tpu.memory_space<vmem>>, vector<8x16x16xf32>
    %27 = vector.shape_cast %26 : vector<8x16x16xf32> to vector<8x256xf32>
    %c56 = arith.constant 56 : index
    %c0_39 = arith.constant 0 : index
    %28 = vector.load %arg6[%c56, %c0_39] : memref<72x256xf32, #tpu.memory_space<vmem>>, vector<8x256xf32>
    tpu.vector_store %arg6[%c56, %c0_39], %27 {strides = array<i32>} : memref<72x256xf32, #tpu.memory_space<vmem>>, vector<8x256xf32>,
    %c0_40 = arith.constant 0 : index
    %c2_41 = arith.constant 2 : index
    %c2_42 = arith.constant 2 : index
    %29 = vector.load %arg5[%c0_40, %c2_41, %c2_42] : memref<8x18x18xf32, #tpu.memory_space<vmem>>, vector<8x16x16xf32>
    %30 = vector.shape_cast %29 : vector<8x16x16xf32> to vector<8x256xf32>
    %c64 = arith.constant 64 : index
    %c0_43 = arith.constant 0 : index
    %31 = vector.load %arg6[%c64, %c0_43] : memref<72x256xf32, #tpu.memory_space<vmem>>, vector<8x256xf32>
    tpu.vector_store %arg6[%c64, %c0_43], %30 {strides = array<i32>} : memref<72x256xf32, #tpu.memory_space<vmem>>, vector<8x256xf32>,
    %c0_44 = arith.constant 0 : index
    %c0_45 = arith.constant 0 : index
    %32 = vector.load %arg2[%c0_44, %c0_45] : memref<16x72xf32, #tpu.memory_space<vmem>>, vector<16x72xf32>
    %c0_46 = arith.constant 0 : index
    %c0_47 = arith.constant 0 : index
    %33 = vector.load %arg6[%c0_46, %c0_47] : memref<72x256xf32, #tpu.memory_space<vmem>>, vector<72x256xf32>
    %cst_48 = arith.constant dense<0.000000e+00> : vector<16x256xf32>
    %34 = tpu.matmul %32, %33, %cst_48 {dimension_numbers = #tpu.dot_dimension_numbers<[1], [0], [0], [1], [0, 0, 1, 1], [], []>} : vector<16x72xf32>, vector<72x256xf32>, vector<16x256xf32> -> vector<16x256xf32>
    %c0_49 = arith.constant 0 : index
    %c0_50 = arith.constant 0 : index
    %35 = vector.load %arg3[%c0_49, %c0_50] : memref<16x1xf32, #tpu.memory_space<vmem>>, vector<16x1xf32>
    %36 = vector.broadcast %35 : vector<16x1xf32> to vector<16x256xf32>
    %37 = arith.addf %34, %36 : vector<16x256xf32>
    %cst_51 = arith.constant 0.000000e+00 : f32
    %38 = vector.broadcast %cst_51 : f32 to vector<16x256xf32>
    %39 = arith.maximumf %37, %38 : vector<16x256xf32>
    %c0_52 = arith.constant 0 : index
    %c0_53 = arith.constant 0 : index
    %c0_54 = arith.constant 0 : index
    %40 = vector.load %arg4[%c0_52, %c0_53, %c0_54] : memref<1x16x256xf32, #tpu.memory_space<vmem>>, vector<1x16x256xf32>
    %41 = vector.shape_cast %40 : vector<1x16x256xf32> to vector<16x256xf32>
    %42 = vector.shape_cast %39 : vector<16x256xf32> to vector<1x16x256xf32>
    tpu.vector_store %arg4[%c0_52, %c0_53, %c0_54], %42 {strides = array<i32>} : memref<1x16x256xf32, #tpu.memory_space<vmem>>, vector<1x16x256xf32>,
    return
  }
  func.func @transform_0(%arg0: i32) -> (i32, i32, i32, i32) {
    %c0_i32 = arith.constant 0 : i32
    %c0_i32_0 = arith.constant 0 : i32
    %c0_i32_1 = arith.constant 0 : i32
    %c0_i32_2 = arith.constant 0 : i32
    return %arg0, %c0_i32, %c0_i32_0, %c0_i32_1 : i32, i32, i32, i32
  }
  func.func @transform_1(%arg0: i32) -> (i32, i32) {
    %c0_i32 = arith.constant 0 : i32
    %c0_i32_0 = arith.constant 0 : i32
    %c0_i32_1 = arith.constant 0 : i32
    return %c0_i32, %c0_i32_0 : i32, i32
  }
  func.func @transform_2(%arg0: i32) -> (i32, i32) {
    %c0_i32 = arith.constant 0 : i32
    %c0_i32_0 = arith.constant 0 : i32
    %c0_i32_1 = arith.constant 0 : i32
    return %c0_i32, %c0_i32_0 : i32, i32
  }
  func.func @transform_3(%arg0: i32) -> (i32, i32, i32) {
    %c0_i32 = arith.constant 0 : i32
    %c0_i32_0 = arith.constant 0 : i32
    %c0_i32_1 = arith.constant 0 : i32
    return %arg0, %c0_i32, %c0_i32_0 : i32, i32, i32
  }
}

</mosaic_0001>

<bundles_post_ra>
// kernel: tpu_custom_call.1
= control target key start
LH: loop header
LB: loop body
LE: loop exit
PB: predicated region body
PF: predicated region fallthrough
CT: control target
= control target key end

     0   :  { %8 = vsyncpa [#allocation5], 0  ;;  %s7317_s0 = inlined_call_operand.hbm [shape: f32[2,8,16,16], index: 0, kind: input, shape index: {}]   ;;  %s7318_s1 = inlined_call_operand.vmem [shape: f32[16,72], index: 1, kind: input, shape index: {}]   ;;  %s7319_s2 = inlined_call_operand.vmem [shape: f32[16,1], index: 2, kind: input, shape index: {}]   ;;  %s7320_s3 = inlined_call_operand.hbm [shape: f32[2,16,256], index: 3, kind: output, shape index: {}]  }
   0x1   :  { %10 = vsyncpa [#allocation5 + $0x1], 0 }
   0x2   :  { %11 = vsyncpa [#allocation6], 0 }
   0x3   :  { %13 = vsyncpa [#allocation6 + $0x1], 0  ;;  %s4468_s12 = smov 0   ;;  %s4470_s13 = smov 0  }
   0x4   :  { %s4472_s14 = smov 0   ;;  %s4474_s15 = smov 0  }
   0x5 LB: > { %s4489_s16 = sadd.s32 4294967295, %s4429_s15   ;;  %s3696_s17 = sadd.s32 4294967294, %s4429_s15   ;;  %s4429_s15 = sphi %s4474_s15, %s7629_s15   ;;  %s4425_s14 = sphi %s4472_s14, %s7628_s14   ;;  %s4421_s13 = sphi %s4470_s13, %s7627_s13   ;;  %s4417_s12 = sphi %s4468_s12, %s7626_s12  }
   0x6   : > { %s4493_s18 = sadd.s32 1, %s4429_s15   ;;  %s26_s19 = sadd.s32 1, %s4425_s14 }
   0x7   : > { %s23_s20 = ssub.s32 %s4429_s15, %s4493_s18  ;;  %p33_p0 = scmp.ne.s32.totalorder %s4425_s14, %s4421_s13 }
   0x8   : > { %p24_p1 = scmp.eq.s32.totalorder %s23_s20, 0  ;;  %p34_p2 = scmp.eq.s32.totalorder %s4429_s15, 0 }
   0x9   : > { %p39_p3 = scmp.ne.s32.totalorder %s4421_s13, %s4417_s12  ;;  %p40_p4 = scmp.eq.s32.totalorder %s4489_s16, 0 }
   0xa   : > { %s4505_s21 = scalar_select %p24_p1, %s4425_s14, %s26_s19  }
   0xb   : > { %p4507_p5 = por %p34_p2, %p33_p0  ;;  %p4511_p6 = por %p40_p4, %p39_p3 }
   0xc   : > { %p105_p7 = scmp.eq.s32.totalorder %s4489_s16, 1  ;;  %p111_p8 = scmp.eq.s32.totalorder %s3696_s17, 1 }
   0xd   : > { %p3746_p10 = scmp.lt.s32.totalorder %s4429_s15, 2  ;;  %s137_s26 = sand.u32 1, %s4425_s14  }
   0xe   : > { %p4518_p11 = por %p105_p7, %p33_p0  ;;  %p4522_p12 = por %p111_p8, %p39_p3 }
   0xf   : > { %s3714_s27 = sshll.u32 %s4429_s15, 7  ;;  %s3699_s28 = sshll.u32 %s137_s26, 7 }
  0x10   : > { %s146_s4 = scalar_lea.hbm %s7317_s0, %s3714_s27  ;;  %s141_s6 = scalar_lea.vmem [#allocation4], %s3699_s28 }
  0x11   : > { %s147_s5 = sshll.u32 %s146_s4, 4  ;;  %s149_s7 = sshll.u32 %s141_s6, 4  ;;  %s148_s5 = int_to_ptr.hbm [resolvable:$true] %s147_s5  ;;  %s150_s7 = int_to_ptr.vmem [resolvable:$true] %s149_s7 }
  0x12   : > { %p4533_p13 = pnand %p3746_p10, %p4507_p5  ;;  %p3702_p0 = scmp.ge.s32.totalorder %s4429_s15, 1 }
  0x13   : > { %p157_p1 = scmp.lt.s32.totalorder %s4429_s15, 3  ;;  %s138_s9 = scalar_lea.sflag [#allocation5], %s137_s26 }
  0x14   : > { %s4333_s10 = sshra.s32 %s148_s5, 4  ;;  %p4337_p3 = pneg %p4533_p13  ;;  %s4334_s10 = int_to_ptr.hbm [resolvable:$true] %s4333_s10 }
  0x15   : > { %s4335_s11 = scalar_lea.hbm %s4334_s10, 128  ;;  %s4340_s20 = scalar_lea.hbm %s7317_s0, 256 }
  0x16   : > { %p4336_p2 = scmp.ne.s32.totalorder %s4334_s10, %s4335_s11  ;;  %p4341_p5 = scmp.lt.s32.totalorder %s4334_s10, %s7317_s0 }
  0x17   : > { %p4342_p8 = scmp.lt.s32.totalorder %s4340_s20, %s4335_s11 }
  0x18   : > { %p4338_p4 = pnand %p4337_p3, %p4336_p2 }
  0x19   : > { %p4343_p10 = por %p4342_p8, %p4341_p5 }
  0x1a   : > { %p4339_p7 = pneg %p4338_p4 }
  0x1c   : > { %p4344_p9 = pnand %p4343_p10, %p4339_p7 }
  0x1e   : > { %4347 = shalt.err (!%p4344_p9)
}
  0x1f   : > { %s4431_s26 = smov 128   ;;  %s4432_s28 = smov 8  }
  0x20   : > { %3741 = dma.hbm_to_vmem [thread:$0]  (!%p4533_p13), %s148_s5, 2048, %s150_s7, %s138_s9, %s4431_s26, %s4431_s26, %s4432_s28  }
  0x21   : > { %p158_p2 = pnand %p3702_p0, %p157_p1 }
  0x23   : > { %161 = sbr.rel (%p158_p2) target bundleno = 962 (0x3c2), region = 32 }
  0x28   : > { %s4554_s29 = sand.u32 1, %s4421_s13  }
  0x29   : > { %s3703_s30 = sshll.u32 %s4554_s29, 7  ;;  %s164_s4 = scalar_lea.sflag [#allocation5], %s4554_s29 }
  0x2a   : > { %s4558_s6 = scalar_lea.vmem [#allocation4], %s3703_s30 }
  0x2b   : > { %4408 = dma.done.wait (%p4511_p6), %s164_s4, 2048  }
  0x2c   : > { %4410 = vsyncadd (%p4511_p6), %s164_s4, 4294965248  ;;  %v221_v0 = vld [vmem:[%s4558_s6 + $0x20] sm:$0xff]  ;;  %v219_v1 = vld [vmem:[%s4558_s6 + $0x10] sm:$0xff]  ;;  %s4433_s5 = smov 1   ;;  %vm191_vm0 = vcmask 146432   ;;  %v4434_v6 = vmov 0.0  }
  0x2d   : > { %v217_v2 = vld [vmem:[%s4558_s6] sm:$0xff]  ;;  %257 = vrot.lane.b32.xlu2 %v221_v0, %s4433_s5  ;;  %253 = vrot.lane.b32.xlu1 %v219_v1, %s4433_s5  ;;  %v222_v3 = vld [vmem:[%s4558_s6 + $0x28] sm:$0xff]  ;;  %199 = vst.msk [vmem:[#allocation2 + $0x30] sm:$0xff] %vm191_vm0, %v4434_v6  ;;  %vm194_vm1 = vcmask 140288   ;;  %vm297_vm2 = vcmask 138248   ;;  %s4435_s23 = smov 127  }
  0x2e   : > { %249 = vrot.lane.b32.xlu0 %v217_v2, %s4433_s5  ;;  %v220_v4 = vld [vmem:[%s4558_s6 + $0x18] sm:$0xff]  ;;  %v218_v5 = vld [vmem:[%s4558_s6 + $0x8] sm:$0xff]  ;;  %200 = vst.msk [vmem:[#allocation2 + $0x38] sm:$0xff] %vm191_vm0, %v4434_v6  ;;  %v225_v8 = vld [vmem:[%s4558_s6 + $0x40] sm:$0xff]  ;;  %v4436_v38 = vmov 1983009808  }
  0x2f   : > { %192 = vst.msk [vmem:[#allocation2] sm:$0xff] %vm191_vm0, %v4434_v6  ;;  %v224_v7 = vld [vmem:[%s4558_s6 + $0x38] sm:$0xff]  ;;  %v223_v9 = vld [vmem:[%s4558_s6 + $0x30] sm:$0xff]  ;;  %v226_v12 = vld [vmem:[%s4558_s6 + $0x48] sm:$0xff]  ;;  %v336_v39 = vunpack.c.l.s4 %v4436_v38  ;;  %vm331_vm3 = vcmask 1047556   ;;  %s4438_s7 = smov 126  }
  0x30   : > { %193 = vst.msk [vmem:[#allocation2 + $0x8] sm:$0xff] %vm191_vm0, %v4434_v6  ;;  %v227_v10 = vld [vmem:[%s4558_s6 + $0x50] sm:$0xff]  ;;  %v228_v11 = vld [vmem:[%s4558_s6 + $0x58] sm:$0xff]  ;;  %v230_v13 = vld [vmem:[%s4558_s6 + $0x68] sm:$0xff]  ;;  %v4437_v59 = vmov 1934713408  }
  0x31   : > { %196 = vst.msk [vmem:[#allocation2 + $0x18] sm:$0xff] %vm191_vm0, %v4434_v6  ;;  %v231_v14 = vld [vmem:[%s4558_s6 + $0x70] sm:$0xff]  ;;  %v229_v15 = vld [vmem:[%s4558_s6 + $0x60] sm:$0xff]  ;;  %v232_v16 = vld [vmem:[%s4558_s6 + $0x78] sm:$0xff]  ;;  %v4644_v50 = vunpack.c.0.s8 %v336_v39  ;;  %v384_v60 = vunpack.c.l.s4 %v4437_v59  ;;  %s4439_s8 = smov 16   ;;  %s4440_s9 = smov 64  }
  0x32   : > { %197 = vst.msk [vmem:[#allocation2 + $0x20] sm:$0xff] %vm191_vm0, %v4434_v6  ;;  %s4441_s10 = smov 32   ;;  %s4442_s11 = smov 112   ;;  %vm611_vm4 = vcmask 130048   ;;  %vm613_vm5 = vcmask 261120   ;;  %vm615_vm6 = vcmask 392192  }
  0x33   : > { %202 = vst.msk [vmem:[#allocation2 + $0x48] sm:$0xff] %vm191_vm0, %v4434_v6  ;;  %s4443_s17 = smov 80   ;;  %s4444_s19 = smov 48   ;;  %vm617_vm7 = vcmask 523264   ;;  %vm619_vm8 = vcmask 654336   ;;  %vm621_vm9 = vcmask 785408  }
  0x34   : > { %203 = vst.msk [vmem:[#allocation2 + $0x50] sm:$0xff] %vm191_vm0, %v4434_v6  ;;  %s4445_s20 = smov 96   ;;  %vm623_vm10 = vcmask 916480   ;;  %vm3546_vm11 = vcmask 588800   ;;  %s4383_s30 = scalar_lea.hbm %s7320_s3, 64 }
  0x35   : > { %259 = vrot.lane.b32.xlu2 %v222_v3, %s4433_s5  ;;  %255 = vrot.lane.b32.xlu1 %v220_v4, %s4433_s5  ;;  %205 = vst.msk [vmem:[#allocation2 + $0x60] sm:$0xff] %vm191_vm0, %v4434_v6 }
  0x36   : > { %251 = vrot.lane.b32.xlu0 %v218_v5, %s4433_s5  ;;  %206 = vst.msk [vmem:[#allocation2 + $0x68] sm:$0xff] %vm191_vm0, %v4434_v6 }
  0x37   : > { %208 = vst.msk [vmem:[#allocation2 + $0x78] sm:$0xff] %vm191_vm0, %v4434_v6 }
  0x38   : > { %209 = vst.msk [vmem:[#allocation2 + $0x80] sm:$0xff] %vm191_vm0, %v4434_v6 }
  0x39   : > { %211 = vst.msk [vmem:[#allocation2 + $0x90] sm:$0xff] %vm191_vm0, %v4434_v6 }
  0x3a   : > { %212 = vst.msk [vmem:[#allocation2 + $0x98] sm:$0xff] %vm191_vm0, %v4434_v6 }
  0x3b   : > { %214 = vst.msk [vmem:[#allocation2 + $0xa8] sm:$0xff] %vm191_vm0, %v4434_v6 }
  0x3c   : > { %215 = vst.msk [vmem:[#allocation2 + $0xb0] sm:$0xff] %vm191_vm0, %v4434_v6 }
  0x3d   : > { %263 = vrot.lane.b32.xlu1 %v224_v7, %s4433_s5  ;;  %265 = vrot.lane.b32.xlu2 %v225_v8, %s4433_s5  ;;  %201 = vst.msk [vmem:[#allocation2 + $0x40] sm:$0x3] %vm194_vm1, %v4434_v6 }
  0x3e   : > { %261 = vrot.lane.b32.xlu0 %v223_v9, %s4433_s5  ;;  %195 = vst.msk [vmem:[#allocation2 + $0x10] sm:$0x3] %vm194_vm1, %v4434_v6 }
  0x3f   : > { %198 = vst.msk [vmem:[#allocation2 + $0x28] sm:$0x3] %vm194_vm1, %v4434_v6 }
  0x40   : > { %204 = vst.msk [vmem:[#allocation2 + $0x58] sm:$0x3] %vm194_vm1, %v4434_v6 }
  0x41   : > { %207 = vst.msk [vmem:[#allocation2 + $0x70] sm:$0x3] %vm194_vm1, %v4434_v6 }
  0x42   : > { %210 = vst.msk [vmem:[#allocation2 + $0x88] sm:$0x3] %vm194_vm1, %v4434_v6 }
  0x43   : > { %213 = vst.msk [vmem:[#allocation2 + $0xa0] sm:$0x3] %vm194_vm1, %v4434_v6 }
  0x44   : > { %216 = vst.msk [vmem:[#allocation2 + $0xb8] sm:$0x3] %vm194_vm1, %v4434_v6 }
  0x45   : > { %269 = vrot.lane.b32.xlu1 %v227_v10, %s4433_s5  ;;  %271 = vrot.lane.b32.xlu2 %v228_v11, %s4433_s5 }
  0x46   : > { %267 = vrot.lane.b32.xlu0 %v226_v12, %s4433_s5 }
  0x4d   : > { %275 = vrot.lane.b32.xlu1 %v230_v13, %s4433_s5  ;;  %277 = vrot.lane.b32.xlu2 %v231_v14, %s4433_s5 }
  0x4e   : > { %273 = vrot.lane.b32.xlu0 %v229_v15, %s4433_s5 }
  0x56   : > { %279 = vrot.lane.b32.xlu0 %v232_v16, %s4433_s5 }
  0x87   : > { %v258_v17 = vpop.permute.xlu2 %257 }
  0x88   : > { %302 = vst.msk [vmem:[#allocation2 + $0x31] sm:$0xff] %vm297_vm2, %v258_v17 }
  0x8f   : > { %v260_v18 = vpop.permute.xlu2 %259  ;;  %v638_v19 = vld [vmem:[#allocation2 + $0x30] sm:$0xff] }
  0x90   : > { %303 = vst.msk [vmem:[#allocation2 + $0x39] sm:$0xff] %vm297_vm2, %v260_v18  ;;  %v330_v43 = vrot.slane %v638_v19, 4 }
  0x97   : > { %v4614_v20 = vld [vmem:[#allocation2 + $0x38] sm:$0xff]  ;;  %v266_v21 = vpop.permute.xlu2 %265 }
  0x98   : > { %v4617_v22 = vpack.i.bf16 %v4614_v20, %v638_v19  ;;  %306 = vst.msk [vmem:[#allocation2 + $0x61] sm:$0xff] %vm297_vm2, %v266_v21  ;;  %v443_v51 = vrot.slane %v4614_v20, 4 }
  0x9a   : > { %3808 = vrot.lane.b32.xlu1 %v4617_v22, %s4435_s23 }
  0x9f   : > { %v254_v23 = vpop.permute.xlu1 %253  ;;  %v272_v24 = vpop.permute.xlu2 %271  ;;  %v4651_v57 = vld [vmem:[#allocation2 + $0x60] sm:$0xff] }
  0xa0   : > { %300 = vst.msk [vmem:[#allocation2 + $0x19] sm:$0xff] %vm297_vm2, %v254_v23  ;;  %v250_v25 = vpop.permute.xlu0 %249 }
  0xa1   : > { %298 = vst.msk [vmem:[#allocation2 + $0x1] sm:$0xff] %vm297_vm2, %v250_v25 }
  0xa2   : > { %309 = vst.msk [vmem:[#allocation2 + $0x81] sm:$0xff] %vm297_vm2, %v272_v24 }
  0xa7   : > { %v256_v26 = vpop.permute.xlu1 %255  ;;  %v278_v27 = vpop.permute.xlu2 %277  ;;  %v636_v29 = vld [vmem:[#allocation2 + $0x18] sm:$0xff] }
  0xa8   : > { %301 = vst.msk [vmem:[#allocation2 + $0x21] sm:$0xff] %vm297_vm2, %v256_v26  ;;  %v252_v28 = vpop.permute.xlu0 %251  ;;  %v634_v34 = vld [vmem:[#allocation2] sm:$0xff]  ;;  %v345_v44 = vrot.slane %v636_v29, 4 }
  0xa9   : > { %299 = vst.msk [vmem:[#allocation2 + $0x9] sm:$0xff] %vm297_vm2, %v252_v28  ;;  %v333_v48 = vrot.slane %v634_v34, 4  ;;  %v332_v53 = vsel %vm331_vm3, %v330_v43, %v634_v34  ;;  %v4687_v24 = vld [vmem:[#allocation2 + $0x19] sm:$0xff] }
  0xaa   : > { %312 = vst.msk [vmem:[#allocation2 + $0xa9] sm:$0xff] %vm297_vm2, %v278_v27  ;;  %v338_v2 = vperm.slane %v332_v53, %v4644_v50 }
  0xab   : > { %v334_v61 = vsel %vm331_vm3, %v638_v19, %v333_v48 }
  0xac   : > { %v342_v14 = vperm.slane %v334_v61, %v4644_v50  ;;  %v381_v27 = vrot.slane %v338_v2, 4 }
  0xae   : > { %v393_v28 = vrot.slane %v342_v14, 4 }
  0xaf   : > { %v264_v30 = vpop.permute.xlu1 %263  ;;  %v637_v31 = vld [vmem:[#allocation2 + $0x20] sm:$0xff] }
  0xb0   : > { %305 = vst.msk [vmem:[#allocation2 + $0x51] sm:$0xff] %vm297_vm2, %v264_v30  ;;  %v262_v32 = vpop.permute.xlu0 %261  ;;  %v4629_v33 = vpack.i.bf16 %v637_v31, %v636_v29  ;;  %v635_v35 = vld [vmem:[#allocation2 + $0x8] sm:$0xff]  ;;  %v457_v52 = vrot.slane %v637_v31, 4 }
  0xb1   : > { %304 = vst.msk [vmem:[#allocation2 + $0x49] sm:$0xff] %vm297_vm2, %v262_v32  ;;  %v4632_v36 = vpack.i.bf16 %v635_v35, %v634_v34  ;;  %v445_v49 = vrot.slane %v635_v35, 4  ;;  %v4653_v58 = vld [vmem:[#allocation2 + $0xa8] sm:$0xff]  ;;  %v444_v3 = vsel %vm331_vm3, %v443_v51, %v635_v35 }
  0xb2   : > { %3803 = vrot.lane.b32.xlu0 %v4629_v33, %s4435_s23  ;;  %v367_v13 = vrot.slane %v4653_v58, 4  ;;  %v450_v16 = vperm.slane %v444_v3, %v4644_v50  ;;  %v4689_v25 = vld [vmem:[#allocation2 + $0x21] sm:$0xff] }
  0xb3   : > { %3798 = vrot.lane.b32.xlu2 %v4632_v36, %s4435_s23  ;;  %v446_v62 = vsel %vm331_vm3, %v4614_v20, %v445_v49  ;;  %v4685_v20 = vunpack.c.0.s8 %v384_v60  ;;  %v4694_v30 = vpack.i.bf16 %v4689_v25, %v4687_v24 }
  0xb4   : > { %v454_v15 = vperm.slane %v446_v62, %v4644_v50  ;;  %v493_v32 = vrot.slane %v450_v16, 4 }
  0xb7   : > { %v270_v37 = vpop.permute.xlu1 %269 }
  0xb8   : > { %308 = vst.msk [vmem:[#allocation2 + $0x79] sm:$0xff] %vm297_vm2, %v270_v37  ;;  %v268_v40 = vpop.permute.xlu0 %267  ;;  %v640_v41 = vld [vmem:[#allocation2 + $0x48] sm:$0xff]  ;;  %v641_v42 = vld [vmem:[#allocation2 + $0x50] sm:$0xff] }
  0xb9   : > { %307 = vst.msk [vmem:[#allocation2 + $0x69] sm:$0xff] %vm297_vm2, %v268_v40  ;;  %v4640_v45 = vpack.i.bf16 %v641_v42, %v640_v41  ;;  %v343_v46 = vrot.slane %v640_v41, 4  ;;  %v455_v47 = vrot.slane %v641_v42, 4  ;;  %v346_v54 = vsel %vm331_vm3, %v640_v41, %v345_v44 }
  0xba   : > { %v354_v4 = vperm.slane %v346_v54, %v4644_v50  ;;  %v458_v5 = vsel %vm331_vm3, %v641_v42, %v457_v52 }
  0xbb   : > { %3813 = vrot.lane.b32.xlu2 %v4640_v45, %s4435_s23  ;;  %v344_v55 = vsel %vm331_vm3, %v343_v46, %v636_v29  ;;  %v456_v56 = vsel %vm331_vm3, %v455_v47, %v637_v31  ;;  %v466_v18 = vperm.slane %v458_v5, %v4644_v50  ;;  %v505_v29 = vrot.slane %v454_v15, 4 }
  0xbc   : > { %v350_v9 = vperm.slane %v344_v55, %v4644_v50  ;;  %v462_v11 = vperm.slane %v456_v56, %v4644_v50  ;;  %v391_v23 = vrot.slane %v354_v4, 4  ;;  %v357_v31 = vrot.slane %v4651_v57, 4 }
  0xbd   : > { %v503_v37 = vrot.slane %v466_v18, 4  ;;  %v394_v38 = vsel %vm331_vm3, %v354_v4, %v393_v28  ;;  %v506_v39 = vsel %vm331_vm3, %v466_v18, %v505_v29 }
  0xbe   : > { %v379_v19 = vrot.slane %v350_v9, 4  ;;  %v491_v21 = vrot.slane %v462_v11, 4  ;;  %v382_v35 = vsel %vm331_vm3, %v350_v9, %v381_v27  ;;  %v392_v47 = vsel %vm331_vm3, %v391_v23, %v342_v14 }
  0xbf   : > { %v276_v63 = vpop.permute.xlu1 %275  ;;  %v644_v0 = vld [vmem:[#allocation2 + $0x78] sm:$0xff]  ;;  %v4658_v1 = vld [vmem:[#allocation2 + $0x80] sm:$0xff]  ;;  %v494_v54 = vsel %vm331_vm3, %v462_v11, %v493_v32 }
  0xc0   : > { %311 = vst.msk [vmem:[#allocation2 + $0x99] sm:$0xff] %vm297_vm2, %v276_v63  ;;  %v274_v6 = vpop.permute.xlu0 %273  ;;  %v4666_v7 = vpack.i.bf16 %v4658_v1, %v644_v0  ;;  %v643_v8 = vld [vmem:[#allocation2 + $0x68] sm:$0xff]  ;;  %v369_v10 = vrot.slane %v644_v0, 4  ;;  %v368_v26 = vsel %vm331_vm3, %v367_v13, %v644_v0  ;;  %v380_v44 = vsel %vm331_vm3, %v379_v19, %v338_v2 }
  0xc1   : > { %310 = vst.msk [vmem:[#allocation2 + $0x91] sm:$0xff] %vm297_vm2, %v274_v6  ;;  %v4672_v12 = vpack.i.bf16 %v643_v8, %v4651_v57  ;;  %v374_v43 = vperm.slane %v368_v26, %v4644_v50  ;;  %v492_v46 = vsel %vm331_vm3, %v491_v21, %v450_v16  ;;  %v469_v53 = vrot.slane %v643_v8, 4 }
  0xc2   : > { %3823 = vrot.lane.b32.xlu1 %v4666_v7, %s4435_s23  ;;  %v370_v17 = vsel %vm331_vm3, %v4653_v58, %v369_v10  ;;  %v4718_v60 = vperm.slane %v380_v44, %v4685_v20  ;;  %v4721_v61 = vperm.slane %v492_v46, %v4685_v20  ;;  %v398_v63 = vperm.slane %v392_v47, %v4685_v20 }
  0xc3   : > { %3818 = vrot.lane.b32.xlu0 %v4672_v12, %s4435_s23  ;;  %v378_v34 = vperm.slane %v370_v17, %v4644_v50  ;;  %v403_v3 = vrot.slane %v374_v43, 4  ;;  %v4732_v5 = vperm.slane %v494_v54, %v4685_v20  ;;  %v481_v6 = vrot.slane %v4658_v1, 4 }
  0xc4   : > { %v429_v13 = vrot.slane %v4718_v60, 4  ;;  %v541_v14 = vrot.slane %v4721_v61, 4  ;;  %v437_v18 = vrot.slane %v398_v63, 4  ;;  %v4748_v21 = vperm.slane %v506_v39, %v4685_v20 }
  0xc5   : > { %v415_v56 = vrot.slane %v378_v34, 4 }
  0xc8   : > { %v280_v40 = vpop.permute.xlu0 %279  ;;  %v646_v41 = vld [vmem:[#allocation2 + $0x90] sm:$0xff]  ;;  %v647_v42 = vld [vmem:[#allocation2 + $0x98] sm:$0xff] }
  0xc9   : > { %313 = vst.msk [vmem:[#allocation2 + $0xb1] sm:$0xff] %vm297_vm2, %v280_v40  ;;  %v4706_v48 = vpack.i.bf16 %v647_v42, %v646_v41  ;;  %v355_v49 = vrot.slane %v646_v41, 4  ;;  %v467_v51 = vrot.slane %v647_v42, 4  ;;  %v358_v52 = vsel %vm331_vm3, %v646_v41, %v357_v31 }
  0xca   : > { %3848 = vrot.lane.b32.xlu1 %v4617_v22, %s4438_s7  ;;  %v366_v55 = vperm.slane %v358_v52, %v4644_v50  ;;  %v504_v22 = vsel %vm331_vm3, %v503_v37, %v454_v15  ;;  %v470_v0 = vsel %vm331_vm3, %v647_v42, %v469_v53  ;;  %v4743_v15 = vperm.slane %v394_v38, %v4685_v20 }
  0xcb   : > { %3828 = vrot.lane.b32.xlu2 %v4706_v48, %s4435_s23  ;;  %v356_v59 = vsel %vm331_vm3, %v355_v49, %v4651_v57  ;;  %v468_v4 = vsel %vm331_vm3, %v467_v51, %v643_v8  ;;  %v4729_v57 = vperm.slane %v382_v35, %v4685_v20  ;;  %v4737_v11 = vperm.slane %v504_v22, %v4685_v20 }
  0xcc   : > { %v362_v62 = vperm.slane %v356_v59, %v4644_v50  ;;  %v417_v2 = vrot.slane %v366_v55, 4  ;;  %v416_v10 = vsel %vm331_vm3, %v415_v56, %v366_v55  ;;  %v478_v8 = vperm.slane %v470_v0, %v4644_v50  ;;  %v4790_v55 = vld [vmem:[#allocation2 + $0xa9] sm:$0xff] }
  0xcd   : > { %v474_v17 = vperm.slane %v468_v4, %v4644_v50  ;;  %v422_v28 = vperm.slane %v416_v10, %v4685_v20  ;;  %v549_v32 = vrot.slane %v4737_v11, 4  ;;  %v553_v49 = vrot.slane %v4748_v21, 4 }
  0xce   : > { %v405_v9 = vrot.slane %v362_v62, 4  ;;  %v418_v19 = vsel %vm331_vm3, %v378_v34, %v417_v2  ;;  %v404_v26 = vsel %vm331_vm3, %v403_v3, %v362_v62  ;;  %v433_v34 = vrot.slane %v4729_v57, 4 }
  0xcf   : > { %v4767_v35 = vperm.slane %v418_v19, %v4685_v20  ;;  %v529_v37 = vrot.slane %v478_v8, 4  ;;  %v4771_v38 = vperm.slane %v404_v26, %v4685_v20  ;;  %v517_v41 = vrot.slane %v474_v17, 4  ;;  %v4842_v26 = vld [vmem:[#allocation2 + $0x61] sm:$0xff] }
  0xd0   : > { %v649_v16 = vld [vmem:[#allocation2 + $0xb0] sm:$0xff]  ;;  %v406_v27 = vsel %vm331_vm3, %v374_v43, %v405_v9  ;;  %v4779_v46 = vsel %vm331_vm3, %v422_v28, %v437_v18  ;;  %v545_v51 = vrot.slane %v4732_v5, 4 }
  0xd1   : > { %v4751_v23 = vpack.i.bf16 %v649_v16, %v4653_v58  ;;  %v479_v29 = vrot.slane %v649_v16, 4  ;;  %v482_v31 = vsel %vm331_vm3, %v649_v16, %v481_v6  ;;  %v414_v40 = vperm.slane %v406_v27, %v4685_v20  ;;  %v4844_v27 = vld [vmem:[#allocation2 + $0x69] sm:$0xff] }
  0xd2   : > { %3863 = vrot.lane.b32.xlu1 %v4666_v7, %s4438_s7  ;;  %v490_v58 = vperm.slane %v482_v31, %v4644_v50  ;;  %v441_v7 = vrot.slane %v4743_v15, 4  ;;  %v4799_v0 = vsel %vm331_vm3, %v4771_v38, %v429_v13  ;;  %v4859_v31 = vld [vmem:[#allocation2 + $0x79] sm:$0xff] }
  0xd3   : > { %3833 = vrot.lane.b32.xlu0 %v4751_v23, %s4435_s23  ;;  %3838 = vrot.lane.b32.xlu2 %v4632_v36, %s4438_s7  ;;  %v480_v39 = vsel %vm331_vm3, %v479_v29, %v4658_v1  ;;  %v435_v36 = vrot.slane %v422_v28, 4  ;;  %v431_v56 = vrot.slane %v414_v40, 4  ;;  %v4822_v13 = vsel %vm331_vm3, %v414_v40, %v433_v34  ;;  %v4853_v29 = vld [vmem:[#allocation2 + $0x91] sm:$0xff] }
  0xd4   : > { %v486_v42 = vperm.slane %v480_v39, %v4644_v50  ;;  %v527_v43 = vrot.slane %v490_v58, 4  ;;  %v530_v44 = vsel %vm331_vm3, %v490_v58, %v529_v37  ;;  %v4788_v54 = vsel %vm331_vm3, %v4767_v35, %v441_v7 }
  0xd5   : > { %v538_v47 = vperm.slane %v530_v44, %v4685_v20  ;;  %v4803_v3 = vsel %vm331_vm3, %v435_v36, %v398_v63  ;;  %v439_v34 = vrot.slane %v4767_v35, 4  ;;  %v1426_v58 = vrot.slane %v4853_v29, 4  ;;  %v4889_v36 = vld [vmem:[#allocation2 + $0x31] sm:$0xff] }
  0xd6   : > { %v515_v52 = vrot.slane %v486_v42, 4  ;;  %v518_v1 = vsel %vm331_vm3, %v486_v42, %v517_v41  ;;  %v528_v53 = vsel %vm331_vm3, %v527_v43, %v478_v8  ;;  %v1713_v41 = vld [vmem:[#allocation2 + $0xb1] sm:$0xff] }
  0xd7   : > { %v526_v59 = vperm.slane %v518_v1, %v4685_v20  ;;  %v534_v22 = vperm.slane %v528_v53, %v4685_v20  ;;  %v4795_v62 = vsel %vm331_vm3, %v538_v47, %v553_v49  ;;  %v551_v37 = vrot.slane %v538_v47, 4  ;;  %v1709_v53 = vld [vmem:[#allocation2 + $0x81] sm:$0xff] }
  0xd8   : > { %v516_v2 = vsel %vm331_vm3, %v515_v52, %v474_v17  ;;  %v3947_v4 = vpack.i.bf16 %v4795_v62, %v4788_v54  ;;  %v1438_v17 = vrot.slane %v4790_v55, 4  ;;  %v4876_v35 = vsel %vm331_vm3, %v439_v34, %v4743_v15  ;;  %v4906_v52 = vld [vmem:[#allocation2 + $0x1] sm:$0xff] }
  0xd9   : > { %v4810_v6 = vperm.slane %v516_v2, %v4685_v20  ;;  %v543_v9 = vrot.slane %v526_v59, 4  ;;  %v547_v10 = vrot.slane %v534_v22, 4  ;;  %v4813_v8 = vsel %vm331_vm3, %v534_v22, %v549_v32  ;;  %v4861_v32 = vld [vmem:[#allocation2 + $0x49] sm:$0xff] }
  0xda   : > { %3883 = vrot.lane.b32.xlu1 %v4694_v30, %s4435_s23  ;;  %v4825_v16 = vsel %vm331_vm3, %v526_v59, %v545_v51  ;;  %v1439_v7 = vsel %vm331_vm3, %v1438_v17, %v4859_v31  ;;  %v1414_v39 = vrot.slane %v4861_v32, 4  ;;  %v4880_v40 = vsel %vm331_vm3, %v551_v37, %v4748_v21  ;;  %v4896_v21 = vld [vmem:[#allocation2 + $0x39] sm:$0xff] }
  0xdb   : > { %3843 = vrot.lane.b32.xlu0 %v4629_v33, %s4438_s7  ;;  %3853 = vrot.lane.b32.xlu2 %v4640_v45, %s4438_s7  ;;  %v542_v18 = vsel %vm331_vm3, %v4810_v6, %v541_v14  ;;  %v4832_v33 = vsel %vm331_vm3, %v431_v56, %v4729_v57  ;;  %v4836_v45 = vsel %vm331_vm3, %v543_v9, %v4732_v5  ;;  %v1550_v43 = vrot.slane %v1713_v41, 4  ;;  %v4911_v56 = vld [vmem:[#allocation2 + $0x51] sm:$0xff]  ;;  %v4913_v59 = vld [vmem:[#allocation2 + $0x99] sm:$0xff] }
  0xdc   : > { %v4840_v19 = vsel %vm331_vm3, %v547_v10, %v4737_v11  ;;  %v3917_v28 = vpack.i.bf16 %v542_v18, %v4799_v0  ;;  %v3922_v14 = vpack.i.bf16 %v4836_v45, %v4832_v33  ;;  %v4857_v11 = vpack.i.bf16 %v4844_v27, %v4842_v26  ;;  %v4927_v18 = vld [vmem:[#allocation2 + $0x9] sm:$0xff] }
  0xdd   : > { %v3932_v57 = vpack.i.bf16 %v4840_v19, %v4803_v3  ;;  %v4883_v42 = vperm.slane %v1439_v7, %v4644_v50  ;;  %v1415_v15 = vsel %vm331_vm3, %v1414_v39, %v4687_v24  ;;  %v4894_v44 = vpack.i.bf16 %v1713_v41, %v4790_v55 }
  0xde   : > { %v4904_v51 = vpack.i.bf16 %v4896_v21, %v4889_v36  ;;  %v1402_v1 = vrot.slane %v4889_v36, 4  ;;  %v1421_v22 = vperm.slane %v1415_v15, %v4644_v50  ;;  %v1551_v0 = vsel %vm331_vm3, %v1550_v43, %v1709_v53 }
  0xdf   : > { %v1474_v49 = vrot.slane %v4883_v42, 4  ;;  %v1526_v10 = vrot.slane %v4911_v56, 4  ;;  %v1538_v17 = vrot.slane %v4913_v59, 4  ;;  %v4937_v39 = vpack.i.bf16 %v4927_v18, %v4906_v52 }
  0xe0   : > { %v1403_v9 = vsel %vm331_vm3, %v1402_v1, %v4906_v52  ;;  %v1450_v34 = vrot.slane %v1421_v22, 4  ;;  %v1540_v3 = vrot.slane %v4844_v27, 4 }
  0xe1   : > { %v1409_v37 = vperm.slane %v1403_v9, %v4644_v50  ;;  %v1527_v15 = vsel %vm331_vm3, %v1526_v10, %v4689_v25  ;;  %v1539_v43 = vsel %vm331_vm3, %v1538_v17, %v4844_v27  ;;  %v5012_v27 = vpack.i.bf16 %v4913_v59, %v4853_v29 }
  0xe2   : > { %3898 = vrot.lane.b32.xlu1 %v4857_v11, %s4435_s23  ;;  %v1533_v10 = vperm.slane %v1527_v15, %v4644_v50  ;;  %v1428_v15 = vrot.slane %v4842_v26, 4 }
  0xe3   : > { %3858 = vrot.lane.b32.xlu0 %v4672_v12, %s4438_s7  ;;  %3868 = vrot.lane.b32.xlu2 %v4706_v48, %s4438_s7  ;;  %v1427_v48 = vsel %vm331_vm3, %v1426_v58, %v4842_v26  ;;  %v1557_v58 = vperm.slane %v1551_v0, %v4644_v50  ;;  %v1552_v12 = vrot.slane %v1709_v53, 4 }
  0xe4   : > { %v4899_v47 = vperm.slane %v1427_v48, %v4644_v50  ;;  %v4940_v48 = vpack.i.bf16 %v1709_v53, %v4859_v31  ;;  %v1452_v53 = vrot.slane %v1409_v37, 4  ;;  %v1429_v33 = vsel %vm331_vm3, %v4853_v29, %v1428_v15 }
  0xe5   : > { %v1586_v0 = vrot.slane %v1557_v58, 4 }
  0xe6   : > { %v1475_v2 = vsel %vm331_vm3, %v1474_v49, %v4899_v47  ;;  %v1451_v49 = vsel %vm331_vm3, %v1450_v34, %v1409_v37  ;;  %v1453_v19 = vsel %vm331_vm3, %v1421_v22, %v1452_v53 }
  0xe7   : > { %v4932_v7 = vperm.slane %v1475_v2, %v4685_v20  ;;  %v427_v2 = vrot.slane %v4771_v38, 4  ;;  %v4959_v17 = vperm.slane %v1451_v49, %v4685_v20  ;;  %v1553_v49 = vsel %vm331_vm3, %v1713_v41, %v1552_v12 }
  0xe8   : > { %v1528_v12 = vrot.slane %v4689_v25, 4  ;;  %v539_v25 = vrot.slane %v4810_v6, 4  ;;  %v5015_v6 = vperm.slane %v1453_v19, %v4685_v20 }
  0xe9   : > { %v1498_v9 = vrot.slane %v4932_v7, 4  ;;  %v4970_v38 = vsel %vm331_vm3, %v427_v2, %v4718_v60  ;;  %v1476_v60 = vrot.slane %v4899_v47, 4 }
  0xea   : > { %3913 = vrot.lane.b32.xlu1 %v4894_v44, %s4435_s23  ;;  %v1529_v22 = vsel %vm331_vm3, %v4911_v56, %v1528_v12 }
  0xeb   : > { %3873 = vrot.lane.b32.xlu0 %v4751_v23, %s4438_s7  ;;  %3888 = vrot.lane.b32.xlu2 %v4904_v51, %s4435_s23  ;;  %v1514_v23 = vrot.slane %v4896_v21, 4  ;;  %v4966_v63 = vsel %vm331_vm3, %v1498_v9, %v4959_v17 }
  0xed   : > { %v1515_v1 = vsel %vm331_vm3, %v1514_v23, %v4927_v18  ;;  %v1440_v23 = vrot.slane %v4859_v31, 4 }
  0xee   : > { %v1521_v34 = vperm.slane %v1515_v1, %v4644_v50  ;;  %v4976_v1 = vpack.i.bf16 %v4911_v56, %v4861_v32 }
  0xef   : > { %v1441_v41 = vsel %vm331_vm3, %v4790_v55, %v1440_v23  ;;  %v1537_v23 = vperm.slane %v1529_v22, %v4644_v50 }
  0xf0   : > { %v5006_v45 = vperm.slane %v1441_v41, %v4644_v50 }
  0xf2   : > { %3918 = vrot.lane.b32.xlu1 %v3917_v28, %s4439_s8  ;;  %v1545_v28 = vperm.slane %v1539_v43, %v4644_v50  ;;  %v1562_v43 = vrot.slane %v1533_v10, 4  ;;  %v1486_v56 = vrot.slane %v5006_v45, 4 }
  0xf3   : > { %3878 = vrot.lane.b32.xlu0 %v4937_v39, %s4435_s23  ;;  %3903 = vrot.lane.b32.xlu2 %v4940_v48, %s4435_s23 }
  0xf4   : > { %v1587_v5 = vsel %vm331_vm3, %v1586_v0, %v1545_v28  ;;  %v1564_v0 = vrot.slane %v1521_v34, 4  ;;  %v1588_v26 = vrot.slane %v1545_v28, 4  ;;  %v1563_v55 = vsel %vm331_vm3, %v1562_v43, %v1521_v34 }
  0xf5   : > { %v1593_v31 = vperm.slane %v1587_v5, %v4685_v20  ;;  %v4997_v5 = vperm.slane %v1553_v49, %v4644_v50  ;;  %v1437_v28 = vperm.slane %v1429_v33, %v4644_v50  ;;  %v7394_v43 = vpack.i.bf16 %v4813_v8, %v4779_v46 }
  0xf6   : > { %v1565_v47 = vsel %vm331_vm3, %v1533_v10, %v1564_v0  ;;  %v1589_v37 = vsel %vm331_vm3, %v1557_v58, %v1588_v26  ;;  %v1569_v58 = vperm.slane %v1563_v55, %v4685_v20  ;;  %v1574_v8 = vrot.slane %v1537_v23, 4 }
  0xf7   : > { %v1610_v2 = vrot.slane %v1593_v31, 4  ;;  %v5023_v9 = vperm.slane %v1565_v47, %v4685_v20  ;;  %v1598_v29 = vrot.slane %v4997_v5, 4  ;;  %v1487_v46 = vsel %vm331_vm3, %v1486_v56, %v1437_v28 }
  0xf8   : > { %v1612_v62 = vrot.slane %v1569_v58, 4  ;;  %v1493_v55 = vperm.slane %v1487_v46, %v4685_v20  ;;  %v7396_v56 = vpack.i.bf16 %v4880_v40, %v4876_v35 }
  0xf9   : > { %v5037_v15 = vsel %vm331_vm3, %v1610_v2, %v1569_v58  ;;  %v1616_v49 = vrot.slane %v5023_v9, 4  ;;  %v1488_v58 = vrot.slane %v1437_v28, 4 }
  0xfa   : > { %3933 = vrot.lane.b32.xlu1 %v3932_v57, %s4440_s9  ;;  %v1416_v57 = vrot.slane %v4687_v24, 4  ;;  %v1541_v24 = vsel %vm331_vm3, %v4913_v59, %v1540_v3  ;;  %v5029_v59 = vperm.slane %v1589_v37, %v4685_v20  ;;  %v1613_v26 = vsel %vm331_vm3, %v1593_v31, %v1612_v62 }
  0xfb   : > { %3893 = vrot.lane.b32.xlu0 %v4976_v1, %s4435_s23  ;;  %3923 = vrot.lane.b32.xlu2 %v3922_v14, %s4441_s10  ;;  %v1477_v14 = vsel %vm331_vm3, %v4883_v42, %v1476_v60  ;;  %v1516_v42 = vrot.slane %v4927_v18, 4  ;;  %v1549_v34 = vperm.slane %v1541_v24, %v4644_v50  ;;  %v1404_v18 = vrot.slane %v4906_v52, 4 }
  0xfc   : > { %v1417_v10 = vsel %vm331_vm3, %v4861_v32, %v1416_v57  ;;  %v5041_v32 = vsel %vm331_vm3, %v539_v25, %v4721_v61  ;;  %v1485_v61 = vperm.slane %v1477_v14, %v4685_v20  ;;  %v1504_v52 = vrot.slane %v5015_v6, 4 }
  0xfd   : > { %v1425_v53 = vperm.slane %v1417_v10, %v4644_v50  ;;  %v1599_v54 = vsel %vm331_vm3, %v1598_v29, %v1549_v34  ;;  %v1617_v0 = vsel %vm331_vm3, %v5029_v59, %v1616_v49  ;;  %v1500_v60 = vrot.slane %v4959_v17, 4 }
  0xfe   : > { %v1405_v41 = vsel %vm331_vm3, %v4889_v36, %v1404_v18  ;;  %v1605_v12 = vperm.slane %v1599_v54, %v4685_v20  ;;  %v1505_v3 = vsel %vm331_vm3, %v1485_v61, %v1504_v52  ;;  %v7395_v37 = vpack.i.bf16 %v4825_v16, %v4822_v13 }
  0xff   : > { %v1501_v57 = vsel %vm331_vm3, %v4932_v7, %v1500_v60  ;;  %v3962_v25 = vpack.i.bf16 %v1617_v0, %v1505_v3  ;;  %v1413_v17 = vperm.slane %v1405_v41, %v4644_v50  ;;  %v1506_v2 = vrot.slane %v1493_v55, 4 }
 0x100   : > { %v3952_v47 = vpack.i.bf16 %v1613_v26, %v1501_v57  ;;  %v1618_v36 = vrot.slane %v1605_v12, 4  ;;  %v1600_v10 = vrot.slane %v1549_v34, 4  ;;  %v1614_v13 = vrot.slane %v5029_v59, 4 }
 0x101   : > { %v1502_v34 = vrot.slane %v1485_v61, 4  ;;  %v1464_v18 = vrot.slane %v1413_v17, 4 }
 0x102   : > { %3948 = vrot.lane.b32.xlu1 %v3947_v4, %s4442_s11  ;;  %v1517_v4 = vsel %vm331_vm3, %v4896_v21, %v1516_v42  ;;  %v1462_v21 = vrot.slane %v1425_v53, 4  ;;  %v1601_v16 = vsel %vm331_vm3, %v4997_v5, %v1600_v10 }
 0x103   : > { %3908 = vrot.lane.b32.xlu0 %v5012_v27, %s4435_s23  ;;  %3938 = vrot.lane.b32.xlu2 %v7394_v43, %s4443_s17  ;;  %v1525_v19 = vperm.slane %v1517_v4, %v4644_v50  ;;  %v1609_v5 = vperm.slane %v1601_v16, %v4685_v20  ;;  %v1615_v43 = vsel %vm331_vm3, %v1614_v13, %v5023_v9 }
 0x104   : > { %v1463_v7 = vsel %vm331_vm3, %v1462_v21, %v1413_v17  ;;  %v1465_v49 = vsel %vm331_vm3, %v1425_v53, %v1464_v18  ;;  %v1503_v40 = vsel %vm331_vm3, %v1502_v34, %v5015_v6  ;;  %v5139_v17 = vld [vmem:[#allocation2 + $0x32] sm:$0xff] }
 0x105   : > { %v1575_v31 = vsel %vm331_vm3, %v1574_v8, %v1525_v19  ;;  %v1469_v24 = vperm.slane %v1463_v7, %v4685_v20  ;;  %v1576_v28 = vrot.slane %v1525_v19, 4  ;;  %v3957_v54 = vpack.i.bf16 %v1615_v43, %v1503_v40  ;;  %v5146_v7 = vld [vmem:[#allocation2 + $0x6a] sm:$0xff] }
 0x106   : > { %v1581_v33 = vperm.slane %v1575_v31, %v4685_v20  ;;  %v1622_v62 = vrot.slane %v1609_v5, 4  ;;  %v5141_v31 = vld [vmem:[#allocation2 + $0x3a] sm:$0xff] }
 0x107   : > { %v1507_v22 = vsel %vm331_vm3, %v1506_v2, %v1469_v24  ;;  %v1577_v59 = vsel %vm331_vm3, %v1537_v23, %v1576_v28  ;;  %v1508_v52 = vrot.slane %v1469_v24, 4 }
 0x108   : > { %v1619_v14 = vsel %vm331_vm3, %v1618_v36, %v1581_v33  ;;  %v1585_v61 = vperm.slane %v1577_v59, %v4685_v20  ;;  %v1620_v23 = vrot.slane %v1581_v33, 4  ;;  %v5152_v33 = vld [vmem:[#allocation2 + $0xb2] sm:$0xff]  ;;  %v2776_v59 = vld [vmem:[#allocation2 + $0xaa] sm:$0xff] }
 0x109   : > { %v3967_v29 = vpack.i.bf16 %v1619_v14, %v1507_v22  ;;  %v1509_v60 = vsel %vm331_vm3, %v1493_v55, %v1508_v52  ;;  %v2769_v55 = vld [vmem:[#allocation2 + $0x52] sm:$0xff]  ;;  %v5157_v14 = vld [vmem:[#allocation2 + $0x82] sm:$0xff] }
 0x10a   : > { %3963 = vrot.lane.b32.xlu1 %v3962_v25, %s4444_s19  ;;  %v1624_v53 = vrot.slane %v1585_v61, 4  ;;  %v1623_v6 = vsel %vm331_vm3, %v1622_v62, %v1585_v61  ;;  %v1621_v0 = vsel %vm331_vm3, %v1605_v12, %v1620_v23  ;;  %v2768_v25 = vld [vmem:[#allocation2 + $0x4a] sm:$0xff]  ;;  %v2462_v22 = vld [vmem:[#allocation2 + $0x92] sm:$0xff]  ;;  %v2502_v61 = vrot.slane %v2776_v59, 4 }
 0x10b   : > { %3928 = vrot.lane.b32.xlu0 %v7395_v37, %s4444_s19  ;;  %3953 = vrot.lane.b32.xlu2 %v3952_v47, %s4439_s8  ;;  %v3972_v41 = vpack.i.bf16 %v1621_v0, %v1509_v60  ;;  %v3150_v47 = vld [vmem:[#allocation2 + $0x92] sm:$0xff]  ;;  %v5144_v37 = vld [vmem:[#allocation2 + $0x62] sm:$0xff]  ;;  %v5159_v16 = vpack.i.bf16 %v2769_v55, %v2768_v25  ;;  %v2490_v43 = vrot.slane %v2462_v22, 4 }
 0x10c   : > { %v5129_v12 = vpop.permute.xlu1 %3808  ;;  %v4062_v18 = vpack.i.bf16 %v5146_v7, %v5144_v37  ;;  %v5210_v22 = vld [vmem:[#allocation2 + $0x22] sm:$0xff] }
 0x10d   : > { %v5092_v42 = vpop.permute.xlu2 %3798  ;;  %v3811_v19 = vunpack.i.h.bf16 %v5129_v12  ;;  %v3810_v57 = vunpack.i.l.bf16 %v5129_v12 }
 0x10e   : > { %v3801_v36 = vunpack.i.h.bf16 %v5092_v42  ;;  %v3800_v24 = vunpack.i.l.bf16 %v5092_v42 }
 0x10f   : > { %v826_v10 = vrot.slane %v3811_v19, 4 }
 0x111   : > { %v827_v62 = vsel %vm331_vm3, %v826_v10, %v3801_v36 }
 0x112   : > { %3983 = vrot.lane.b32.xlu1 %v4694_v30, %s4438_s7  ;;  %v1489_v30 = vsel %vm331_vm3, %v5006_v45, %v1488_v58  ;;  %v1473_v45 = vperm.slane %v1465_v49, %v4685_v20  ;;  %v2463_v58 = vld [vmem:[#allocation2 + $0x9a] sm:$0xff] }
 0x113   : > { %3943 = vrot.lane.b32.xlu0 %v7396_v56, %s4445_s20  ;;  %3968 = vrot.lane.b32.xlu2 %v3967_v29, %s4440_s9  ;;  %v1497_v35 = vperm.slane %v1489_v30, %v4685_v20  ;;  %v714_v29 = vrot.slane %v3810_v57, 4  ;;  %v828_v56 = vrot.slane %v3801_v36, 4  ;;  %v4047_v30 = vpack.i.bf16 %v5141_v31, %v5139_v17 }
 0x114   : > { %v1512_v46 = vrot.slane %v1473_v45, 4  ;;  %v2602_v49 = vrot.slane %v2463_v58, 4 }
 0x115   : > { %v1510_v9 = vrot.slane %v1497_v35, 4  ;;  %v5116_v4 = vpop.permute.xlu2 %3813  ;;  %v829_v52 = vsel %vm331_vm3, %v3811_v19, %v828_v56 }
 0x116   : > { %v1513_v26 = vsel %vm331_vm3, %v1497_v35, %v1512_v46  ;;  %v716_v35 = vrot.slane %v3800_v24, 4  ;;  %v3815_v40 = vunpack.i.l.bf16 %v5116_v4  ;;  %v3816_v0 = vunpack.i.h.bf16 %v5116_v4 }
 0x117   : > { %v1511_v8 = vsel %vm331_vm3, %v1510_v9, %v1473_v45  ;;  %v715_v45 = vsel %vm331_vm3, %v714_v29, %v3800_v24  ;;  %v5197_v4 = vperm.slane %v827_v62, %v4644_v50  ;;  %v5208_v24 = vld [vmem:[#allocation2 + $0x1a] sm:$0xff] }
 0x118   : > { %v717_v19 = vsel %vm331_vm3, %v3810_v57, %v716_v35  ;;  %v5201_v25 = vperm.slane %v715_v45, %v4644_v50  ;;  %v726_v55 = vrot.slane %v3815_v40, 4 }
 0x119   : > { %v5219_v10 = vperm.slane %v717_v19, %v4644_v50 }
 0x11a   : > { %3998 = vrot.lane.b32.xlu1 %v4857_v11, %s4438_s7  ;;  %v1625_v11 = vsel %vm331_vm3, %v1609_v5, %v1624_v53  ;;  %v2777_v5 = vld [vmem:[#allocation2 + $0xb2] sm:$0xff]  ;;  %v2772_v53 = vld [vmem:[#allocation2 + $0x7a] sm:$0xff]  ;;  %v764_v62 = vrot.slane %v5201_v25, 4 }
 0x11b   : > { %3958 = vrot.lane.b32.xlu0 %v3957_v54, %s4441_s10  ;;  %3988 = vrot.lane.b32.xlu2 %v4904_v51, %s4438_s7  ;;  %v4002_v51 = vpack.i.bf16 %v1623_v6, %v1511_v8  ;;  %v4007_v3 = vpack.i.bf16 %v1625_v11, %v1513_v26  ;;  %v2614_v54 = vrot.slane %v2777_v5, 4  ;;  %v2773_v6 = vld [vmem:[#allocation2 + $0x82] sm:$0xff]  ;;  %v2771_v8 = vld [vmem:[#allocation2 + $0x6a] sm:$0xff]  ;;  %v2503_v60 = vsel %vm331_vm3, %v2502_v61, %v2772_v53 }
 0x11c   : > { %v2770_v11 = vld [vmem:[#allocation2 + $0x62] sm:$0xff] }
 0x11d   : > { %v2615_v26 = vsel %vm331_vm3, %v2614_v54, %v2773_v6 }
 0x11e   : > { %v5194_v12 = vperm.slane %v2615_v26, %v4644_v50 }
 0x120   : > { %7398 = vst [vmem:[#allocation11_spill] sm:$0xff] %v5194_v12 }
 0x122   : > { %4003 = vrot.lane.b32.xlu1 %v4002_v51, %s4445_s20 }
 0x123   : > { %3973 = vrot.lane.b32.xlu0 %v3972_v41, %s4443_s17  ;;  %4008 = vrot.lane.b32.xlu2 %v4007_v3, %s4442_s11  ;;  %v5190_v41 = vperm.slane %v2503_v60, %v4644_v50  ;;  %v2603_v3 = vsel %vm331_vm3, %v2602_v49, %v2771_v8 }
 0x124   : > { %v3804_v13 = vpop.permute.xlu0 %3803  ;;  %v5216_v58 = vperm.slane %v2603_v3, %v4644_v50 }
 0x125   : > { %v5127_v21 = vpop.permute.xlu2 %3828  ;;  %v3806_v9 = vunpack.i.h.bf16 %v3804_v13  ;;  %v3805_v23 = vunpack.i.l.bf16 %v3804_v13  ;;  %7397 = vst [vmem:[#allocation10_spill] sm:$0xff] %v5190_v41  ;;  %v2538_v36 = vrot.slane %v5190_v41, 4 }
 0x126   : > { %7400 = vst [vmem:[#allocation13_spill] sm:$0xff] %v5216_v58  ;;  %v3831_v13 = vunpack.i.h.bf16 %v5127_v21  ;;  %v3830_v56 = vunpack.i.l.bf16 %v5127_v21  ;;  %v4042_v21 = vpack.i.bf16 %v5210_v22, %v5208_v24 }
 0x127   : > { %v728_v17 = vrot.slane %v3805_v23, 4  ;;  %v727_v29 = vsel %vm331_vm3, %v726_v55, %v3805_v23 }
 0x128   : > { %v5246_v23 = vperm.slane %v727_v29, %v4644_v50 }
 0x129   : > { %v729_v35 = vsel %vm331_vm3, %v3815_v40, %v728_v17 }
 0x12a   : > { %4023 = vrot.lane.b32.xlu1 %v4894_v44, %s4438_s7  ;;  %v3151_v44 = vld [vmem:[#allocation2 + $0x9a] sm:$0xff]  ;;  %v5254_v6 = vperm.slane %v729_v35, %v4644_v50  ;;  %v762_v17 = vrot.slane %v5246_v23, 4  ;;  %v765_v54 = vsel %vm331_vm3, %v5246_v23, %v764_v62 }
 0x12b   : > { %3978 = vrot.lane.b32.xlu0 %v4937_v39, %s4438_s7  ;;  %4013 = vrot.lane.b32.xlu2 %v4940_v48, %s4438_s7  ;;  %v5150_v39 = vld [vmem:[#allocation2 + $0xaa] sm:$0xff]  ;;  %v5154_v48 = vld [vmem:[#allocation2 + $0x7a] sm:$0xff]  ;;  %v5161_v28 = vpack.i.bf16 %v3151_v44, %v3150_v47  ;;  %v840_v47 = vrot.slane %v3806_v9, 4  ;;  %v2650_v44 = vrot.slane %v5194_v12, 4  ;;  %v5330_v29 = vperm.slane %v765_v54, %v4685_v20 }
 0x12c   : > { %v4052_v34 = vpack.i.bf16 %v5152_v33, %v5150_v39  ;;  %v4067_v42 = vpack.i.bf16 %v5157_v14, %v5154_v48  ;;  %v5206_v39 = vperm.slane %v829_v52, %v4644_v50  ;;  %v838_v33 = vrot.slane %v3816_v0, 4 }
 0x12d   : > { %v5148_v2 = vpop.permute.xlu2 %3838  ;;  %v5232_v49 = vsel %vm331_vm3, %v2650_v44, %v5216_v58  ;;  %v841_v61 = vsel %vm331_vm3, %v3816_v0, %v840_v47  ;;  %v738_v0 = vrot.slane %v3830_v56, 4  ;;  %v7406_v41 = vrot.slane %v5254_v6, 4 }
 0x12e   : > { %v839_v59 = vsel %vm331_vm3, %v838_v33, %v3806_v9  ;;  %7402 = vst [vmem:[#allocation15_spill] sm:$0xff] %v5232_v49  ;;  %v5257_v52 = vperm.slane %v841_v61, %v4644_v50  ;;  %v3841_v8 = vunpack.i.h.bf16 %v5148_v2  ;;  %v3840_v60 = vunpack.i.l.bf16 %v5148_v2 }
 0x132   : > { %4033 = vrot.lane.b32.xlu1 %v5161_v28, %s4438_s7 }
 0x133   : > { %3993 = vrot.lane.b32.xlu0 %v4976_v1, %s4438_s7  ;;  %4038 = vrot.lane.b32.xlu2 %v5159_v16, %s4435_s23  ;;  %v2491_v1 = vsel %vm331_vm3, %v2490_v43, %v2770_v11 }
 0x134   : > { %v5182_v46 = vpop.permute.xlu1 %3823  ;;  %v5213_v57 = vperm.slane %v2491_v1, %v4644_v50 }
 0x135   : > { %v5186_v51 = vpop.permute.xlu2 %3853  ;;  %v3819_v31 = vpop.permute.xlu0 %3818  ;;  %v3826_v26 = vunpack.i.h.bf16 %v5182_v46  ;;  %v3825_v1 = vunpack.i.l.bf16 %v5182_v46 }
 0x136   : > { %7399 = vst [vmem:[#allocation12_spill] sm:$0xff] %v5213_v57  ;;  %v3820_v5 = vunpack.i.l.bf16 %v3819_v31  ;;  %v5228_v43 = vsel %vm331_vm3, %v2538_v36, %v5213_v57  ;;  %v3821_v45 = vunpack.i.h.bf16 %v3819_v31  ;;  %v7321_v47 = vunpack.i.h.bf16 %v5186_v51 }
 0x137   : > { %7401 = vst [vmem:[#allocation14_spill] sm:$0xff] %v5228_v43  ;;  %v7322_v31 = vunpack.i.l.bf16 %v5186_v51 }
 0x138   : > { %v740_v11 = vrot.slane %v3820_v5, 4  ;;  %v852_v3 = vrot.slane %v3821_v45, 4  ;;  %v739_v19 = vsel %vm331_vm3, %v738_v0, %v3820_v5  ;;  %v1092_v5 = vrot.slane %v3840_v60, 4 }
 0x139   : > { %v5277_v35 = vperm.slane %v739_v19, %v4644_v50  ;;  %v5291_v7 = vrot.slane %v7321_v47, 4 }
 0x13a   : > { %4048 = vrot.lane.b32.xlu1 %v4047_v30, %s4438_s7  ;;  %v876_v30 = vrot.slane %v5197_v4, 4  ;;  %v741_v46 = vsel %vm331_vm3, %v3830_v56, %v740_v11  ;;  %v864_v56 = vrot.slane %v3826_v26, 4  ;;  %v853_v37 = vsel %vm331_vm3, %v3831_v13, %v852_v3 }
 0x13b   : > { %4018 = vrot.lane.b32.xlu0 %v5012_v27, %s4438_s7  ;;  %4053 = vrot.lane.b32.xlu2 %v4052_v34, %s4438_s7  ;;  %v5249_v27 = vperm.slane %v839_v59, %v4644_v50  ;;  %v850_v34 = vrot.slane %v3831_v13, 4  ;;  %v1204_v59 = vrot.slane %v3841_v8, 4  ;;  %v788_v19 = vrot.slane %v5277_v35, 4 }
 0x13c   : > { %v3849_v9 = vpop.permute.xlu1 %3848 }
 0x13d   : > { %v5251_v53 = vpop.permute.xlu2 %3868  ;;  %v851_v55 = vsel %vm331_vm3, %v850_v34, %v3821_v45  ;;  %v3851_v36 = vunpack.i.h.bf16 %v3849_v9  ;;  %v3850_v44 = vunpack.i.l.bf16 %v3849_v9  ;;  %v874_v2 = vrot.slane %v5249_v27, 4 }
 0x13e   : > { %v5280_v61 = vperm.slane %v851_v55, %v4644_v50  ;;  %v752_v45 = vrot.slane %v3825_v1, 4  ;;  %v5296_v9 = vperm.slane %v741_v46, %v4644_v50  ;;  %v5308_v55 = vperm.slane %v853_v37, %v4644_v50 }
 0x13f   : > { %v1202_v34 = vrot.slane %v3851_v36, 4  ;;  %v1090_v48 = vrot.slane %v3850_v44, 4  ;;  %v1093_v13 = vsel %vm331_vm3, %v3850_v44, %v1092_v5  ;;  %v1205_v0 = vsel %vm331_vm3, %v3851_v36, %v1204_v59 }
 0x140   : > { %v900_v46 = vrot.slane %v5280_v61, 4  ;;  %v7323_v40 = vunpack.i.h.bf16 %v5251_v53  ;;  %v7325_v47 = vunpack.i.l.bf16 %v5251_v53  ;;  %v5317_v59 = vperm.slane %v1093_v13, %v4644_v50 }
 0x141   : > { %v1091_v36 = vsel %vm331_vm3, %v1090_v48, %v3840_v60  ;;  %v5320_v5 = vperm.slane %v1205_v0, %v4644_v50  ;;  %v877_v37 = vsel %vm331_vm3, %v5249_v27, %v876_v30  ;;  %v1203_v62 = vsel %vm331_vm3, %v1202_v34, %v3841_v8 }
 0x142   : > { %4063 = vrot.lane.b32.xlu1 %v4062_v18, %s4438_s7  ;;  %v800_v60 = vrot.slane %v5296_v9, 4  ;;  %v912_v48 = vrot.slane %v5308_v55, 4  ;;  %v5346_v30 = vrot.slane %v7323_v40, 4  ;;  %v5351_v27 = vperm.slane %v877_v37, %v4685_v20 }
 0x143   : > { %4028 = vrot.lane.b32.xlu0 %v5159_v16, %s4438_s7  ;;  %4068 = vrot.lane.b32.xlu2 %v4067_v42, %s4438_s7  ;;  %v5300_v16 = vrot.slane %v7322_v31, 4  ;;  %v763_v8 = vsel %vm331_vm3, %v762_v17, %v5201_v25  ;;  %v5361_v24 = vperm.slane %v1203_v62, %v4644_v50  ;;  %v5365_v22 = vrot.slane %v7325_v47, 4 }
 0x144   : > { %v5293_v18 = vpop.permute.xlu1 %3863  ;;  %v5379_v37 = vperm.slane %v763_v8, %v4685_v20  ;;  %v928_v25 = vrot.slane %v5351_v27, 4 }
 0x145   : > { %v3834_v14 = vpop.permute.xlu0 %3833  ;;  %v5302_v42 = vpop.permute.xlu2 %3888 }
 0x146   : > { %7403 = vst [vmem:[#allocation16_spill] sm:$0xff] %v5302_v42  ;;  %v3836_v11 = vunpack.i.h.bf16 %v3834_v14  ;;  %v3835_v3 = vunpack.i.l.bf16 %v3834_v14  ;;  %v7329_v17 = vunpack.i.h.bf16 %v5302_v42  ;;  %v7332_v8 = vunpack.i.l.bf16 %v5302_v42 }
 0x147   : > { %7404 = vst [vmem:[#allocation17_spill] sm:$0xff] %v5379_v37 }
 0x148   : > { %v862_v31 = vrot.slane %v3836_v11, 4  ;;  %v750_v44 = vrot.slane %v3835_v3, 4 }
 0x14a   : > { %v863_v23 = vsel %vm331_vm3, %v862_v31, %v3826_v26  ;;  %v751_v14 = vsel %vm331_vm3, %v750_v44, %v3825_v1  ;;  %v875_v26 = vsel %vm331_vm3, %v874_v2, %v5197_v4  ;;  %v5358_v1 = vperm.slane %v1091_v36, %v4644_v50 }
 0x14b   : > { %v5335_v13 = vperm.slane %v863_v23, %v4644_v50  ;;  %v5338_v0 = vperm.slane %v751_v14, %v4644_v50  ;;  %4043 = vrot.lane.b32.xlu0 %v4042_v21, %s4438_s7  ;;  %v7324_v21 = vunpack.i.h.bf16 %v5293_v18  ;;  %v7326_v4 = vunpack.i.l.bf16 %v5293_v18 }
 0x14c   : > { %v5348_v54 = vpop.permute.xlu1 %3883  ;;  %v816_v2 = vrot.slane %v5330_v29, 4  ;;  %v5382_v62 = vperm.slane %v875_v26, %v4685_v20  ;;  %v865_v23 = vsel %vm331_vm3, %v3836_v11, %v864_v56  ;;  %v753_v14 = vsel %vm331_vm3, %v3835_v3, %v752_v45 }
 0x14d   : > { %v3844_v31 = vpop.permute.xlu0 %3843  ;;  %v5368_v34 = vpop.permute.xlu2 %3903  ;;  %v789_v44 = vsel %vm331_vm3, %v5338_v0, %v788_v19  ;;  %v901_v36 = vsel %vm331_vm3, %v5335_v13, %v900_v46  ;;  %v5392_v46 = vrot.slane %v7324_v21, 4  ;;  %v5397_v26 = vrot.slane %v7326_v4, 4 }
 0x14e   : > { %7405 = vst [vmem:[#allocation18_spill] sm:$0xff] %v5382_v62  ;;  %v3845_v56 = vunpack.i.l.bf16 %v3844_v31  ;;  %v797_v45 = vperm.slane %v789_v44, %v4685_v20  ;;  %v909_v11 = vperm.slane %v901_v36, %v4685_v20  ;;  %v5402_v3 = vperm.slane %v865_v23, %v4644_v50 }
 0x14f   : > { %v5405_v19 = vperm.slane %v753_v14, %v4644_v50  ;;  %v812_v21 = vrot.slane %v5379_v37, 4  ;;  %v924_v47 = vrot.slane %v5382_v62, 4  ;;  %v5413_v4 = vrot.slane %v7329_v17, 4 }
 0x150   : > { %v3846_v44 = vunpack.i.h.bf16 %v3844_v31  ;;  %v814_v36 = vrot.slane %v797_v45, 4  ;;  %v926_v23 = vrot.slane %v909_v11, 4  ;;  %v786_v33 = vrot.slane %v5338_v0, 4 }
 0x151   : > { %v5420_v14 = vrot.slane %v7332_v8, 4  ;;  %v775_v17 = vsel %vm331_vm3, %v7406_v41, %v5219_v10  ;;  %v7407_v31 = vrot.slane %v5257_v52, 4  ;;  %v898_v57 = vrot.slane %v5335_v13, 4 }
 0x152   : > { %v1104_v0 = vrot.slane %v3845_v56, 4  ;;  %v815_v8 = vsel %vm331_vm3, %v814_v36, %v5330_v29  ;;  %v927_v49 = vsel %vm331_vm3, %v926_v23, %v5351_v27  ;;  %v798_v62 = vrot.slane %v5405_v19, 4 }
 0x153   : > { %4058 = vrot.lane.b32.xlu0 %v5161_v28, %s4435_s23  ;;  %v887_v58 = vsel %vm331_vm3, %v7407_v31, %v5206_v39  ;;  %v5441_v41 = vsel %vm331_vm3, %v5405_v19, %v800_v60  ;;  %v4077_v43 = vpack.i.bf16 %v927_v49, %v815_v8  ;;  %v5445_v31 = vsel %vm331_vm3, %v5402_v3, %v912_v48 }
 0x154   : > { %v5415_v40 = vpop.permute.xlu1 %3898  ;;  %v1216_v13 = vrot.slane %v3846_v44, 4  ;;  %v5448_v42 = vperm.slane %v775_v17, %v4685_v20  ;;  %v5451_v29 = vperm.slane %v887_v58, %v4685_v20  ;;  %v7338_v27 = vunpack.i.h.bf16 %v5348_v54 }
 0x155   : > { %v3859_v28 = vpop.permute.xlu0 %3858  ;;  %v5422_v12 = vpop.permute.xlu2 %3923  ;;  %v1103_v36 = vsel %vm331_vm3, %v5300_v16, %v3845_v56  ;;  %v1215_v60 = vsel %vm331_vm3, %v5291_v7, %v3846_v44  ;;  %4078 = vrot.lane.b32.xlu2 %v4077_v43, %s4441_s10  ;;  %v787_v49 = vsel %vm331_vm3, %v786_v33, %v5277_v35  ;;  %v7408_v48 = vunpack.i.l.bf16 %v5186_v51 }
 0x156   : > { %v3860_v8 = vunpack.i.l.bf16 %v3859_v28  ;;  %v5465_v58 = vperm.slane %v787_v49, %v4685_v20  ;;  %v899_v23 = vsel %vm331_vm3, %v898_v57, %v5280_v61  ;;  %v7337_v16 = vunpack.i.l.bf16 %v5348_v54 }
 0x157   : > { %v1105_v17 = vsel %vm331_vm3, %v7408_v48, %v1104_v0  ;;  %v7341_v7 = vunpack.i.h.bf16 %v5368_v34  ;;  %v7339_v43 = vunpack.i.l.bf16 %v5368_v34  ;;  %v3861_v56 = vunpack.i.h.bf16 %v3859_v28 }
 0x158   : > { %7409 = vst [vmem:[#allocation19_spill] sm:$0xff] %v5465_v58  ;;  %v7410_v33 = vunpack.i.h.bf16 %v5186_v51  ;;  %v813_v44 = vsel %vm331_vm3, %v5465_v58, %v812_v21  ;;  %v5478_v0 = vperm.slane %v899_v23, %v4685_v20  ;;  %v817_v49 = vsel %vm331_vm3, %v797_v45, %v816_v2 }
 0x159   : > { %v5484_v61 = vperm.slane %v1103_v36, %v4644_v50  ;;  %v5487_v48 = vperm.slane %v1105_v17, %v4644_v50  ;;  %v5490_v51 = vperm.slane %v1215_v60, %v4644_v50  ;;  %v929_v28 = vsel %vm331_vm3, %v909_v11, %v928_v25 }
 0x15a   : > { %v1217_v35 = vsel %vm331_vm3, %v7410_v33, %v1216_v13  ;;  %7411 = vst [vmem:[#allocation20_spill] sm:$0xff] %v5478_v0  ;;  %v1115_v2 = vsel %vm331_vm3, %v5365_v22, %v3860_v8  ;;  %v1116_v45 = vrot.slane %v3860_v8, 4  ;;  %v925_v36 = vsel %vm331_vm3, %v5478_v0, %v924_v47 }
 0x15b   : > { %v4082_v23 = vpack.i.bf16 %v929_v28, %v817_v49  ;;  %v5502_v17 = vperm.slane %v1217_v35, %v4644_v50  ;;  %v1228_v33 = vrot.slane %v3861_v56, 4  ;;  %v1227_v60 = vsel %vm331_vm3, %v5346_v30, %v3861_v56 }
 0x15c   : > { %v5481_v57 = vpop.permute.xlu1 %3913  ;;  %v4072_v25 = vpack.i.bf16 %v925_v36, %v813_v44  ;;  %v5508_v11 = vrot.slane %v7338_v27, 4  ;;  %v5512_v22 = vrot.slane %v7337_v16, 4  ;;  %v7340_v8 = vunpack.i.h.bf16 %v5415_v40 }
 0x15d   : > { %v5493_v13 = vpop.permute.xlu0 %3873  ;;  %v5495_v21 = vpop.permute.xlu2 %3938  ;;  %v7342_v47 = vunpack.i.l.bf16 %v5415_v40  ;;  %4083 = vrot.lane.b32.xlu0 %v4082_v23, %s4444_s19  ;;  %v1928_v30 = vrot.slane %v7341_v7, 4  ;;  %v1816_v56 = vrot.slane %v7339_v43, 4  ;;  %v5523_v44 = vperm.slane %v1115_v2, %v4644_v50 }
 0x15e   : > { %7412 = vst [vmem:[#allocation21_spill] sm:$0xff] %v5495_v21  ;;  %4073 = vrot.lane.b32.xlu1 %v4072_v25, %s4439_s8  ;;  %v7413_v49 = vrot.slane %v5358_v1, 4  ;;  %v7414_v23 = vunpack.i.l.bf16 %v5251_v53  ;;  %v5537_v27 = vperm.slane %v1227_v60, %v4644_v50  ;;  %v7415_v35 = vrot.slane %v5361_v24, 4 }
 0x15f   : > { %v7416_v43 = vunpack.i.h.bf16 %v5251_v53  ;;  %v5556_v60 = vrot.slane %v7342_v47, 4  ;;  %v3916_v2 = vunpack.i.h.bf16 %v5481_v57  ;;  %v3875_v37 = vunpack.i.l.bf16 %v5493_v13 }
 0x160   : > { %v5530_v28 = vsel %vm331_vm3, %v5484_v61, %v7413_v49  ;;  %v1117_v16 = vsel %vm331_vm3, %v7414_v23, %v1116_v45  ;;  %v5544_v25 = vsel %vm331_vm3, %v5490_v51, %v7415_v35  ;;  %v5552_v45 = vrot.slane %v7340_v8, 4 }
 0x161   : > { %v1229_v36 = vsel %vm331_vm3, %v7416_v43, %v1228_v33  ;;  %7418 = vst [vmem:[#allocation23_spill] sm:$0xff] %v5556_v60  ;;  %v5563_v49 = vperm.slane %v1117_v16, %v4644_v50  ;;  %v3876_v33 = vunpack.i.h.bf16 %v5493_v13  ;;  %v799_v16 = vsel %vm331_vm3, %v798_v62, %v5296_v9 }
 0x162   : > { %7417 = vst [vmem:[#allocation22_spill] sm:$0xff] %v5552_v45  ;;  %v5571_v47 = vperm.slane %v1229_v36, %v4644_v50  ;;  %v3915_v53 = vunpack.i.l.bf16 %v5481_v57  ;;  %v805_v43 = vperm.slane %v799_v16, %v4685_v20  ;;  %v820_v21 = vrot.slane %v5448_v42, 4 }
 0x163   : > { %v7419_v58 = vrot.slane %v5402_v3, 4  ;;  %v1926_v0 = vrot.slane %v3916_v2, 4  ;;  %v1929_v23 = vsel %vm331_vm3, %v3916_v2, %v1928_v30  ;;  %v932_v19 = vrot.slane %v5451_v29, 4 }
 0x164   : > { %v5560_v35 = vpop.permute.xlu1 %3918  ;;  %v1238_v45 = vrot.slane %v3876_v33, 4  ;;  %v821_v9 = vsel %vm331_vm3, %v805_v43, %v820_v21  ;;  %v818_v62 = vrot.slane %v805_v43, 4  ;;  %v7420_v57 = vrot.slane %v5219_v10, 4 }
 0x165   : > { %v5568_v8 = vpop.permute.xlu0 %3878  ;;  %v3954_v7 = vpop.permute.xlu2 %3953  ;;  %v911_v36 = vsel %vm331_vm3, %v7419_v58, %v5308_v55  ;;  %v1126_v60 = vrot.slane %v3875_v37, 4  ;;  %v809_v58 = vperm.slane %v5441_v41, %v4685_v20  ;;  %v921_v10 = vperm.slane %v5445_v31, %v4685_v20 }
 0x166   : > { %v917_v13 = vperm.slane %v911_v36, %v4685_v20  ;;  %v777_v16 = vsel %vm331_vm3, %v5254_v6, %v7420_v57  ;;  %v819_v2 = vsel %vm331_vm3, %v818_v62, %v5448_v42  ;;  %v7421_v36 = vrot.slane %v5206_v39, 4 }
 0x167   : > { %v1814_v6 = vrot.slane %v3915_v53, 4  ;;  %v1817_v31 = vsel %vm331_vm3, %v3915_v53, %v1816_v56  ;;  %v5631_v53 = vperm.slane %v1929_v23, %v4644_v50 }
 0x168   : > { %v933_v3 = vsel %vm331_vm3, %v917_v13, %v932_v19  ;;  %v930_v55 = vrot.slane %v917_v13, 4  ;;  %v889_v21 = vsel %vm331_vm3, %v5257_v52, %v7421_v36  ;;  %v785_v13 = vperm.slane %v777_v16, %v4685_v20 }
 0x169   : > { %v4092_v30 = vpack.i.bf16 %v933_v3, %v821_v9  ;;  %v822_v19 = vrot.slane %v809_v58, 4  ;;  %v897_v39 = vperm.slane %v889_v21, %v4685_v20  ;;  %v934_v9 = vrot.slane %v921_v10, 4 }
 0x16a   : > { %v931_v43 = vsel %vm331_vm3, %v930_v55, %v5451_v29  ;;  %v7424_v29 = vunpack.i.l.bf16 %v5293_v18  ;;  %v3956_v3 = vunpack.i.h.bf16 %v3954_v7  ;;  %v1176_v55 = vrot.slane %v5563_v49, 4 }
 0x16b   : > { %4093 = vrot.lane.b32.xlu2 %v4092_v30, %s4443_s17  ;;  %v4087_v42 = vpack.i.bf16 %v931_v43, %v819_v2  ;;  %v823_v16 = vsel %vm331_vm3, %v822_v19, %v785_v13  ;;  %v7425_v30 = vunpack.i.h.bf16 %v5368_v34  ;;  %v7426_v36 = vunpack.i.h.bf16 %v5293_v18 }
 0x16c   : > { %v5608_v41 = vpop.permute.xlu1 %3933  ;;  %v1127_v57 = vsel %vm331_vm3, %v1126_v60, %v7424_v29  ;;  %v935_v56 = vsel %vm331_vm3, %v934_v9, %v897_v39  ;;  %v1241_v60 = vsel %vm331_vm3, %v3876_v33, %v5392_v46  ;;  %v5637_v19 = vsel %vm611_vm4, %v5037_v15, %v3956_v3 }
 0x16d   : > { %7422 = vst [vmem:[#allocation24_spill] sm:$0xff] %v5608_v41  ;;  %v5612_v52 = vpop.permute.xlu0 %3893  ;;  %v5614_v62 = vpop.permute.xlu2 %3968  ;;  %v1927_v2 = vsel %vm331_vm3, %v1926_v0, %v7425_v30  ;;  %v1239_v21 = vsel %vm331_vm3, %v1238_v45, %v7426_v36  ;;  %4088 = vrot.lane.b32.xlu1 %v4087_v42, %s4440_s9  ;;  %v4097_v43 = vpack.i.bf16 %v935_v56, %v823_v16  ;;  %v7427_v0 = vunpack.i.l.bf16 %v5368_v34 }
 0x16e   : > { %7423 = vst [vmem:[#allocation25_spill] sm:$0xff] %v5614_v62  ;;  %v5643_v45 = vperm.slane %v1817_v31, %v4644_v50  ;;  %v1133_v42 = vperm.slane %v1127_v57, %v4644_v50  ;;  %v3955_v9 = vunpack.i.l.bf16 %v3954_v7  ;;  %v5647_v23 = vperm.slane %v1927_v2, %v4644_v50 }
 0x16f   : > { %v1815_v18 = vsel %vm331_vm3, %v1814_v6, %v7427_v0  ;;  %v5650_v46 = vperm.slane %v1239_v21, %v4644_v50  ;;  %4098 = vrot.lane.b32.xlu0 %v4097_v43, %s4445_s20  ;;  %v824_v15 = vrot.slane %v785_v13, 4  ;;  %v936_v33 = vrot.slane %v897_v39, 4 }
 0x170   : > { %v5654_v34 = vperm.slane %v1241_v60, %v4644_v50  ;;  %v5658_v6 = vsel %vm611_vm4, %v4966_v63, %v3955_v9  ;;  %v3921_v31 = vunpack.i.h.bf16 %v5560_v35  ;;  %v3920_v7 = vunpack.i.l.bf16 %v5560_v35 }
 0x171   : > { %v1129_v29 = vsel %vm331_vm3, %v3875_v37, %v5397_v26  ;;  %v825_v57 = vsel %vm331_vm3, %v809_v58, %v824_v15  ;;  %v937_v16 = vsel %vm331_vm3, %v921_v10, %v936_v33  ;;  %v1149_v13 = vperm.slane %v5530_v28, %v4685_v20 }
 0x172   : > { %v4102_v3 = vpack.i.bf16 %v937_v16, %v825_v57  ;;  %v5672_v63 = vsel %vm611_vm4, %v5041_v32, %v3921_v31  ;;  %v5676_v35 = vsel %vm611_vm4, %v4970_v38, %v3920_v7  ;;  %v7429_v37 = vrot.slane %v5523_v44, 4 }
 0x173   : > { %v1192_v28 = vrot.slane %v1149_v13, 4  ;;  %v1261_v30 = vperm.slane %v5544_v25, %v4685_v20  ;;  %v7430_v2 = vrot.slane %v5537_v27, 4  ;;  %v1288_v38 = vrot.slane %v5571_v47, 4 }
 0x174   : > { %v5668_v39 = vpop.permute.xlu1 %3948  ;;  %v1165_v26 = vsel %vm331_vm3, %v1133_v42, %v7429_v37  ;;  %v5693_v21 = vperm.slane %v1129_v29, %v4644_v50  ;;  %v3881_v25 = vunpack.i.h.bf16 %v5568_v8  ;;  %v5702_v15 = vperm.slane %v1815_v18, %v4644_v50 }
 0x175   : > { %7428 = vst [vmem:[#allocation26_spill] sm:$0xff] %v5668_v39  ;;  %v5681_v58 = vpop.permute.xlu0 %3908  ;;  %v1173_v10 = vperm.slane %v1165_v26, %v4685_v20  ;;  %v1277_v32 = vsel %vm331_vm3, %v5650_v46, %v7430_v2  ;;  %4103 = vrot.lane.b32.xlu1 %v4102_v3, %s4442_s11  ;;  %v5697_v60 = vpop.permute.xlu2 %3988  ;;  %v1304_v0 = vrot.slane %v1261_v30, 4  ;;  %v1162_v7 = vrot.slane %v1133_v42, 4 }
 0x176   : > { %v1285_v56 = vperm.slane %v1277_v32, %v4685_v20  ;;  %v1274_v29 = vrot.slane %v5650_v46, 4  ;;  %v1289_v57 = vsel %vm331_vm3, %v5654_v34, %v1288_v38  ;;  %v3880_v16 = vunpack.i.l.bf16 %v5568_v8 }
 0x177   : > { %v1193_v43 = vsel %vm331_vm3, %v1173_v10, %v1192_v28  ;;  %v1190_v9 = vrot.slane %v1173_v10, 4  ;;  %v1174_v37 = vrot.slane %v5693_v21, 4  ;;  %v1177_v28 = vsel %vm331_vm3, %v5693_v21, %v1176_v55 }
 0x178   : > { %v1305_v3 = vsel %vm331_vm3, %v1285_v56, %v1304_v0  ;;  %v1302_v10 = vrot.slane %v1285_v56, 4  ;;  %v1891_v42 = vsel %vm331_vm3, %v5413_v4, %v3881_v25  ;;  %v3896_v46 = vunpack.i.h.bf16 %v5612_v52 }
 0x179   : > { %v4117_v26 = vpack.i.bf16 %v1305_v3, %v1193_v43  ;;  %v1191_v18 = vsel %vm331_vm3, %v1190_v9, %v1149_v13  ;;  %v3895_v2 = vunpack.i.l.bf16 %v5612_v52  ;;  %v7431_v13 = vrot.slane %v5484_v61, 4 }
 0x17a   : > { %v1303_v8 = vsel %vm331_vm3, %v1302_v10, %v1261_v30  ;;  %v1163_v55 = vsel %vm331_vm3, %v1162_v7, %v5523_v44  ;;  %v7432_v4 = vrot.slane %v5490_v51, 4  ;;  %v1892_v43 = vrot.slane %v3881_v25, 4 }
 0x17b   : > { %4118 = vrot.lane.b32.xlu0 %v4117_v26, %s4444_s19  ;;  %v1139_v38 = vsel %vm331_vm3, %v7431_v13, %v5358_v1  ;;  %v1779_v0 = vsel %vm331_vm3, %v5420_v14, %v3880_v16  ;;  %v4112_v30 = vpack.i.bf16 %v1303_v8, %v1191_v18  ;;  %v1780_v61 = vrot.slane %v3880_v16, 4 }
 0x17c   : > { %v5719_v32 = vpop.permute.xlu1 %3963  ;;  %v1251_v21 = vsel %vm331_vm3, %v7432_v4, %v5361_v24  ;;  %v5738_v9 = vperm.slane %v1139_v38, %v4685_v20  ;;  %v5741_v1 = vperm.slane %v1163_v55, %v4685_v20  ;;  %v1275_v24 = vsel %vm331_vm3, %v1274_v29, %v5537_v27 }
 0x17d   : > { %v5733_v56 = vpop.permute.xlu0 %3928  ;;  %v5744_v44 = vperm.slane %v1251_v21, %v4685_v20  ;;  %v5749_v51 = vperm.slane %v1891_v42, %v4644_v50  ;;  %4113 = vrot.lane.b32.xlu2 %v4112_v30, %s4441_s10  ;;  %v5754_v25 = vperm.slane %v1275_v24, %v4685_v20  ;;  %v7433_v7 = vrot.slane %v5317_v59, 4  ;;  %v5768_v18 = vpop.permute.xlu2 %4008 }
 0x17e   : > { %v1188_v14 = vrot.slane %v5738_v9, 4  ;;  %v1902_v3 = vrot.slane %v3896_v46, 4  ;;  %v1790_v27 = vrot.slane %v3895_v2, 4  ;;  %v5766_v26 = vperm.slane %v1177_v28, %v4685_v20  ;;  %7434 = vst [vmem:[#allocation27_spill] sm:$0xff] %v5768_v18 }
 0x17f   : > { %v1153_v16 = vsel %vm331_vm3, %v5487_v48, %v7433_v7  ;;  %v1300_v29 = vrot.slane %v5744_v44, 4  ;;  %v7435_v8 = vrot.slane %v5320_v5, 4  ;;  %v5780_v38 = vperm.slane %v1289_v57, %v4685_v20 }
 0x180   : > { %v1189_v10 = vsel %vm331_vm3, %v5741_v1, %v1188_v14  ;;  %v5773_v42 = vperm.slane %v1153_v16, %v4685_v20  ;;  %v1198_v55 = vrot.slane %v5766_v26, 4  ;;  %v3911_v21 = vunpack.i.h.bf16 %v5681_v58 }
 0x181   : > { %v1265_v13 = vsel %vm331_vm3, %v5502_v17, %v7435_v8  ;;  %v1301_v28 = vsel %vm331_vm3, %v5754_v25, %v1300_v29  ;;  %v1310_v24 = vrot.slane %v5780_v38, 4  ;;  %v3910_v14 = vunpack.i.l.bf16 %v5681_v58 }
 0x182   : > { %v5786_v4 = vperm.slane %v1265_v13, %v4685_v20  ;;  %v4107_v30 = vpack.i.bf16 %v1301_v28, %v1189_v10  ;;  %v7436_v7 = vrot.slane %v5487_v48, 4  ;;  %v5798_v29 = vperm.slane %v1779_v0, %v4644_v50  ;;  %v7440_v48 = vld [vmem:[#allocation16_spill] sm:$0xff] }
 0x183   : > { %v7437_v8 = vunpack.i.h.bf16 %v5348_v54  ;;  %v7438_v10 = vunpack.i.l.bf16 %v5348_v54  ;;  %v1199_v36 = vsel %vm331_vm3, %v1198_v55, %v5773_v42  ;;  %v1914_v54 = vrot.slane %v3911_v21, 4 }
 0x184   : > { %v1151_v57 = vsel %vm331_vm3, %v7436_v7, %v5317_v59  ;;  %v5795_v16 = vpop.permute.xlu1 %3983  ;;  %v1286_v59 = vrot.slane %v5654_v34, 4  ;;  %v7441_v7 = vunpack.i.h.bf16 %v7440_v48  ;;  %4108 = vrot.lane.b32.xlu1 %v4107_v30, %s4439_s8  ;;  %v1850_v34 = vrot.slane %v5702_v15, 4 }
 0x185   : > { %v1903_v13 = vsel %vm331_vm3, %v1902_v3, %v7437_v8  ;;  %v1791_v28 = vsel %vm331_vm3, %v1790_v27, %v7438_v10  ;;  %v5808_v33 = vpop.permute.xlu0 %3943  ;;  %v1311_v3 = vsel %vm331_vm3, %v1310_v24, %v5786_v4  ;;  %v1802_v8 = vrot.slane %v3910_v14, 4 }
 0x186   : > { %7439 = vst [vmem:[#allocation28_spill] sm:$0xff] %v5808_v33  ;;  %v1893_v0 = vsel %vm331_vm3, %v7441_v7, %v1892_v43  ;;  %v4132_v27 = vpack.i.bf16 %v1311_v3, %v1199_v36  ;;  %v1157_v55 = vperm.slane %v1151_v57, %v4685_v20  ;;  %v1175_v10 = vsel %vm331_vm3, %v1174_v37, %v5563_v49 }
 0x187   : > { %v7442_v31 = vunpack.i.l.bf16 %v7440_v48  ;;  %v5829_v30 = vperm.slane %v1903_v13, %v4644_v50  ;;  %v5832_v24 = vperm.slane %v1791_v28, %v4644_v50  ;;  %v1828_v36 = vrot.slane %v5798_v29, 4 }
 0x188   : > { %v5836_v57 = vperm.slane %v1893_v0, %v4644_v50  ;;  %4133 = vrot.lane.b32.xlu0 %v4132_v27, %s4445_s20  ;;  %v1181_v37 = vperm.slane %v1175_v10, %v4685_v20  ;;  %v7444_v28 = vrot.slane %v5502_v17, 4  ;;  %v1287_v7 = vsel %vm331_vm3, %v1286_v59, %v5571_v47 }
 0x189   : > { %v5826_v43 = vsel %vm331_vm3, %v7442_v31, %v1780_v61  ;;  %v1905_v31 = vsel %vm331_vm3, %v3896_v46, %v5508_v11  ;;  %v7443_v61 = vunpack.i.h.bf16 %v5415_v40  ;;  %v7445_v0 = vunpack.i.l.bf16 %v5415_v40  ;;  %v5859_v46 = vpop.permute.xlu2 %4013 }
 0x18a   : > { %v1263_v48 = vsel %vm331_vm3, %v7444_v28, %v5320_v5  ;;  %v1196_v27 = vrot.slane %v1157_v55, 4  ;;  %v1293_v11 = vperm.slane %v1287_v7, %v4685_v20  ;;  %v1793_v5 = vsel %vm331_vm3, %v3895_v2, %v5512_v22 }
 0x18b   : > { %v1915_v13 = vsel %vm331_vm3, %v1914_v54, %v7443_v61  ;;  %v1803_v3 = vsel %vm331_vm3, %v1802_v8, %v7445_v0  ;;  %v1269_v10 = vperm.slane %v1263_v48, %v4685_v20  ;;  %v1938_v54 = vrot.slane %v5829_v30, 4 }
 0x18c   : > { %v1826_v17 = vrot.slane %v5832_v24, 4  ;;  %v1194_v47 = vrot.slane %v1181_v37, 4  ;;  %v5868_v40 = vperm.slane %v1915_v13, %v4644_v50  ;;  %v1197_v59 = vsel %vm331_vm3, %v1181_v37, %v1196_v27  ;;  %v5875_v52 = vpop.permute.xlu1 %3998 }
 0x18d   : > { %v1308_v8 = vrot.slane %v1269_v10, 4  ;;  %v1306_v61 = vrot.slane %v1293_v11, 4  ;;  %v5871_v28 = vpop.permute.xlu0 %3958  ;;  %v1809_v48 = vperm.slane %v1803_v3, %v4644_v50  ;;  %v3931_v13 = vunpack.i.h.bf16 %v5733_v56 }
 0x18e   : > { %v1195_v7 = vsel %vm331_vm3, %v1194_v47, %v1157_v55  ;;  %v3930_v37 = vunpack.i.l.bf16 %v5733_v56  ;;  %v7446_v49 = vunpack.i.l.bf16 %v5422_v12  ;;  %v7447_v55 = vunpack.i.h.bf16 %v5422_v12 }
 0x18f   : > { %v1309_v22 = vsel %vm331_vm3, %v1293_v11, %v1308_v8  ;;  %v1307_v2 = vsel %vm331_vm3, %v1306_v61, %v1269_v10  ;;  %v5890_v11 = vperm.slane %v1905_v31, %v4644_v50  ;;  %v7448_v10 = vld [vmem:[#allocation23_spill] sm:$0xff]  ;;  %v5901_v61 = vperm.slane %v1793_v5, %v4644_v50 }
 0x190   : > { %v4127_v0 = vpack.i.bf16 %v1309_v22, %v1197_v59  ;;  %v4122_v27 = vpack.i.bf16 %v1307_v2, %v1195_v7  ;;  %v614_v3 = vsel %vm613_vm5, %v5676_v35, %v7446_v49  ;;  %v626_v47 = vsel %vm613_vm5, %v5672_v63, %v7447_v55  ;;  %v7451_v35 = vld [vmem:[#allocation22_spill] sm:$0xff] }
 0x191   : > { %v1805_v8 = vsel %vm331_vm3, %v3910_v14, %v7448_v10  ;;  %v5895_v56 = vsel %vm615_vm6, %v614_v3, %v3930_v37  ;;  %v5898_v59 = vsel %vm615_vm6, %v626_v47, %v3931_v13  ;;  %v1917_v12 = vsel %vm331_vm3, %v3911_v21, %v7451_v35  ;;  %v5939_v13 = vpop.permute.xlu2 %4038 }
 0x192   : > { %7449 = vst [vmem:[#allocation16_spill] sm:$0xff] %v5895_v56  ;;  %4128 = vrot.lane.b32.xlu2 %v4127_v0, %s4443_s17  ;;  %4123 = vrot.lane.b32.xlu1 %v4122_v27, %s4440_s9  ;;  %v1200_v63 = vrot.slane %v5773_v42, 4  ;;  %v1312_v14 = vrot.slane %v5786_v4, 4  ;;  %v1827_v49 = vsel %vm331_vm3, %v1826_v17, %v5798_v29  ;;  %v1851_v31 = vsel %vm331_vm3, %v1850_v34, %v1809_v48 }
 0x193   : > { %7450 = vst [vmem:[#allocation23_spill] sm:$0xff] %v5898_v59  ;;  %v1939_v5 = vsel %vm331_vm3, %v1938_v54, %v5749_v51  ;;  %v7452_v58 = vrot.slane %v5647_v23, 4  ;;  %v5921_v7 = vperm.slane %v1805_v8, %v4644_v50  ;;  %v1852_v22 = vrot.slane %v1809_v48, 4 }
 0x194   : > { %v5924_v42 = vperm.slane %v1827_v49, %v4685_v20  ;;  %v5927_v4 = vperm.slane %v1851_v31, %v4685_v20  ;;  %v1201_v34 = vsel %vm331_vm3, %v5766_v26, %v1200_v63  ;;  %v1313_v54 = vsel %vm331_vm3, %v5780_v38, %v1312_v14  ;;  %v5962_v35 = vpop.permute.xlu1 %4003 }
 0x195   : > { %v1963_v21 = vsel %vm331_vm3, %v7452_v58, %v5868_v40  ;;  %v5934_v17 = vperm.slane %v1939_v5, %v4685_v20  ;;  %v5941_v48 = vpop.permute.xlu0 %3973  ;;  %v1789_v37 = vperm.slane %v5826_v43, %v4644_v50  ;;  %v1950_v0 = vrot.slane %v5890_v11, 4  ;;  %7454 = vst [vmem:[#allocation29_spill] sm:$0xff] %v5962_v35 }
 0x196   : > { %v5937_v2 = vperm.slane %v1963_v21, %v4685_v20  ;;  %7453 = vst [vmem:[#allocation22_spill] sm:$0xff] %v5941_v48  ;;  %v1964_v26 = vrot.slane %v5868_v40, 4  ;;  %v1876_v27 = vrot.slane %v5924_v42, 4  ;;  %v1838_v38 = vrot.slane %v5901_v61, 4 }
 0x197   : > { %v5950_v3 = vperm.slane %v1917_v12, %v4644_v50  ;;  %v1988_v55 = vrot.slane %v5934_v17, 4  ;;  %v1829_v47 = vsel %vm331_vm3, %v5832_v24, %v1828_v36  ;;  %v4137_v10 = vpack.i.bf16 %v1313_v54, %v1201_v34 }
 0x198   : > { %v1877_v43 = vsel %vm331_vm3, %v5927_v4, %v1876_v27  ;;  %v1837_v40 = vperm.slane %v1829_v47, %v4685_v20  ;;  %v1853_v8 = vsel %vm331_vm3, %v5702_v15, %v1852_v22  ;;  %v7455_v12 = vrot.slane %v5643_v45, 4 }
 0x199   : > { %v1989_v29 = vsel %vm331_vm3, %v5937_v2, %v1988_v55  ;;  %v1861_v24 = vperm.slane %v1853_v8, %v4685_v20  ;;  %v7456_v36 = vrot.slane %v5749_v51, 4  ;;  %v1965_v5 = vsel %vm331_vm3, %v5647_v23, %v1964_v26 }
 0x19a   : > { %v1863_v63 = vsel %vm331_vm3, %v7455_v12, %v5921_v7  ;;  %4138 = vrot.lane.b32.xlu1 %v4137_v10, %s4442_s11  ;;  %v4142_v15 = vpack.i.bf16 %v1989_v29, %v1877_v43  ;;  %v1880_v49 = vrot.slane %v1837_v40, 4  ;;  %v1840_v58 = vrot.slane %v1789_v37, 4 }
 0x19b   : > { %v1941_v14 = vsel %vm331_vm3, %v5829_v30, %v7456_v36  ;;  %v7457_v21 = vrot.slane %v5631_v53, 4  ;;  %v1973_v51 = vperm.slane %v1965_v5, %v4685_v20  ;;  %v1878_v34 = vrot.slane %v1861_v24, 4 }
 0x19c   : > { %v1949_v31 = vperm.slane %v1941_v14, %v4685_v20  ;;  %4143 = vrot.lane.b32.xlu2 %v4142_v15, %s4439_s8  ;;  %v1881_v30 = vsel %vm331_vm3, %v1861_v24, %v1880_v49  ;;  %v1839_v27 = vsel %vm331_vm3, %v1838_v38, %v1789_v37  ;;  %v1869_v55 = vperm.slane %v1863_v63, %v4685_v20  ;;  %v6000_v63 = vpop.permute.xlu2 %4053 }
 0x19d   : > { %v1975_v22 = vsel %vm331_vm3, %v7457_v21, %v5950_v3  ;;  %v1976_v23 = vrot.slane %v5950_v3, 4  ;;  %v1864_v26 = vrot.slane %v5921_v7, 4  ;;  %v1879_v47 = vsel %vm331_vm3, %v1878_v34, %v1837_v40  ;;  %v5991_v43 = vpop.permute.xlu0 %3978 }
 0x19e   : > { %v1992_v54 = vrot.slane %v1949_v31, 4  ;;  %v1990_v10 = vrot.slane %v1973_v51, 4  ;;  %v3966_v8 = vunpack.i.h.bf16 %v5719_v32  ;;  %v1882_v29 = vrot.slane %v1869_v55, 4 }
 0x19f   : > { %v1951_v24 = vsel %vm331_vm3, %v1950_v0, %v5836_v57  ;;  %v1845_v3 = vperm.slane %v1839_v27, %v4685_v20  ;;  %v1981_v7 = vperm.slane %v1975_v22, %v4685_v20  ;;  %v3965_v40 = vunpack.i.l.bf16 %v5719_v32  ;;  %v6016_v22 = vpop.permute.xlu1 %4023 }
 0x1a0   : > { %v1993_v12 = vsel %vm331_vm3, %v1973_v51, %v1992_v54  ;;  %v1991_v38 = vsel %vm331_vm3, %v1990_v10, %v1949_v31  ;;  %v3961_v14 = vunpack.i.h.bf16 %v5871_v28  ;;  %v3960_v15 = vunpack.i.l.bf16 %v5871_v28 }
 0x1a1   : > { %v4152_v37 = vpack.i.bf16 %v1993_v12, %v1881_v30  ;;  %v4147_v36 = vpack.i.bf16 %v1991_v38, %v1879_v47  ;;  %v1883_v49 = vsel %vm331_vm3, %v1882_v29, %v1845_v3  ;;  %v1957_v0 = vperm.slane %v1951_v24, %v4685_v20  ;;  %v6040_v38 = vld [vmem:[#allocation2 + $0x32] sm:$0xff] }
 0x1a2   : > { %v1994_v5 = vrot.slane %v1981_v7, 4  ;;  %v1841_v31 = vsel %vm331_vm3, %v5901_v61, %v1840_v58  ;;  %v1952_v21 = vrot.slane %v5836_v57, 4  ;;  %v1683_v32 = vsel %vm613_vm5, %v5658_v6, %v3960_v15 }
 0x1a3   : > { %4153 = vrot.lane.b32.xlu1 %v4152_v37, %s4444_s19  ;;  %4148 = vrot.lane.b32.xlu0 %v4147_v36, %s4441_s10  ;;  %v1690_v28 = vsel %vm613_vm5, %v5637_v19, %v3961_v14  ;;  %v6020_v34 = vsel %vm615_vm6, %v1683_v32, %v3965_v40  ;;  %v1849_v57 = vperm.slane %v1841_v31, %v4685_v20  ;;  %v1996_v12 = vrot.slane %v1957_v0, 4  ;;  %v6042_v40 = vld [vmem:[#allocation2 + $0x4a] sm:$0xff] }
 0x1a4   : > { %v1995_v51 = vsel %vm331_vm3, %v1994_v5, %v1957_v0  ;;  %7458 = vst [vmem:[#allocation30_spill] sm:$0xff] %v6020_v34  ;;  %v6023_v61 = vsel %vm615_vm6, %v1690_v28, %v3966_v8  ;;  %v1865_v30 = vsel %vm331_vm3, %v5643_v45, %v1864_v26  ;;  %v1953_v6 = vsel %vm331_vm3, %v5890_v11, %v1952_v21  ;;  %v4069_v14 = vpop.permute.xlu2 %4068 }
 0x1a5   : > { %7459 = vst [vmem:[#allocation31_spill] sm:$0xff] %v6023_v61  ;;  %v4157_v58 = vpack.i.bf16 %v1995_v51, %v1883_v49  ;;  %v1873_v19 = vperm.slane %v1865_v30, %v4685_v20  ;;  %v1961_v54 = vperm.slane %v1953_v6, %v4685_v20  ;;  %v1977_v27 = vsel %vm331_vm3, %v5631_v53, %v1976_v23  ;;  %v6034_v47 = vpop.permute.xlu0 %3993  ;;  %v6048_v49 = vld [vmem:[#allocation2 + $0x52] sm:$0xff] }
 0x1a6   : > { %v1985_v10 = vperm.slane %v1977_v27, %v4685_v20  ;;  %v1884_v8 = vrot.slane %v1845_v3, 4  ;;  %v1888_v45 = vrot.slane %v1849_v57, 4  ;;  %v1997_v37 = vsel %vm331_vm3, %v1981_v7, %v1996_v12 }
 0x1a7   : > { %4158 = vrot.lane.b32.xlu2 %v4157_v58, %s4440_s9  ;;  %v1886_v29 = vrot.slane %v1873_v19, 4  ;;  %v2000_v26 = vrot.slane %v1961_v54, 4  ;;  %v2466_v7 = vrot.slane %v6040_v38, 4  ;;  %v2478_v5 = vrot.slane %v6042_v40, 4  ;;  %v6056_v51 = vpop.permute.xlu1 %4033 }
 0x1a8   : > { %v1998_v24 = vrot.slane %v1985_v10, 4  ;;  %v1885_v11 = vsel %vm331_vm3, %v1869_v55, %v1884_v8  ;;  %v1889_v36 = vsel %vm331_vm3, %v1873_v19, %v1888_v45  ;;  %v4055_v55 = vunpack.i.l.bf16 %v6000_v63 }
 0x1a9   : > { %v1887_v53 = vsel %vm331_vm3, %v1886_v29, %v1849_v57  ;;  %v4162_v23 = vpack.i.bf16 %v1997_v37, %v1885_v11  ;;  %v2001_v3 = vsel %vm331_vm3, %v1985_v10, %v2000_v26  ;;  %v4056_v21 = vunpack.i.h.bf16 %v6000_v63  ;;  %v6058_v57 = vld [vmem:[#allocation2 + $0x3a] sm:$0xff]  ;;  %v6069_v10 = vld [vmem:[#allocation2 + $0x2] sm:$0xff] }
 0x1aa   : > { %v1999_v15 = vsel %vm331_vm3, %v1998_v24, %v1961_v54  ;;  %v4172_v31 = vpack.i.bf16 %v2001_v3, %v1889_v36  ;;  %v7346_v32 = vunpack.i.h.bf16 %v5991_v43  ;;  %v4071_v28 = vunpack.i.h.bf16 %v4069_v14  ;;  %v6079_v37 = vld [vmem:[#allocation2 + $0x1a] sm:$0xff] }
 0x1ab   : > { %v4167_v0 = vpack.i.bf16 %v1999_v15, %v1887_v53  ;;  %4163 = vrot.lane.b32.xlu0 %v4162_v23, %s4443_s17  ;;  %v7347_v58 = vunpack.i.h.bf16 %v5859_v46  ;;  %v3254_v30 = vrot.slane %v4055_v55, 4  ;;  %v4070_v6 = vunpack.i.l.bf16 %v4069_v14  ;;  %v6081_v53 = vld [vmem:[#allocation2 + $0x22] sm:$0xff]  ;;  %v6083_v23 = vld [vmem:[#allocation2 + $0xa] sm:$0xff] }
 0x1ac   : > { %v2590_v54 = vrot.slane %v6048_v49, 4  ;;  %v3991_v27 = vunpack.i.h.bf16 %v5697_v60  ;;  %v2268_v63 = vrot.slane %v7346_v32, 4  ;;  %v3368_v8 = vrot.slane %v4071_v28, 4 }
 0x1ad   : > { %4168 = vrot.lane.b32.xlu1 %v4167_v0, %s4445_s20  ;;  %v6062_v19 = vpop.permute.xlu0 %4018  ;;  %v6072_v12 = vsel %vm331_vm3, %v3254_v30, %v4070_v6  ;;  %v2578_v29 = vrot.slane %v6058_v57, 4  ;;  %v3366_v45 = vrot.slane %v4056_v21, 4  ;;  %v3256_v24 = vrot.slane %v4070_v6, 4 }
 0x1ae   : > { %v6076_v26 = vsel %vm331_vm3, %v3991_v27, %v2268_v63  ;;  %v4026_v11 = vunpack.i.h.bf16 %v6016_v22  ;;  %v2304_v36 = vrot.slane %v7347_v58, 4  ;;  %v2467_v3 = vsel %vm331_vm3, %v2466_v7, %v6069_v10 }
 0x1af   : > { %4173 = vrot.lane.b32.xlu2 %v4172_v31, %s4442_s11  ;;  %7460 = vst [vmem:[#allocation32_spill] sm:$0xff] %v6076_v26  ;;  %v2479_v14 = vsel %vm331_vm3, %v2478_v5, %v6079_v37  ;;  %v2591_v15 = vsel %vm331_vm3, %v2590_v54, %v6081_v53  ;;  %v6094_v0 = vsel %vm331_vm3, %v4055_v55, %v3256_v24  ;;  %v4025_v6 = vunpack.i.l.bf16 %v6016_v22  ;;  %v6124_v24 = vpop.permute.xlu1 %4048 }
 0x1b0   : > { %v6097_v31 = vsel %vm331_vm3, %v3366_v45, %v4071_v28  ;;  %v6100_v30 = vsel %vm331_vm3, %v4056_v21, %v3368_v8  ;;  %v3990_v63 = vunpack.i.l.bf16 %v5697_v60  ;;  %v3986_v7 = vunpack.i.h.bf16 %v5795_v16  ;;  %7461 = vst [vmem:[#allocation33_spill] sm:$0xff] %v6124_v24 }
 0x1b1   : > { %v2579_v5 = vsel %vm331_vm3, %v2578_v29, %v6083_v23  ;;  %v6108_v54 = vsel %vm331_vm3, %v4026_v11, %v2304_v36  ;;  %v6111_v55 = vperm.slane %v2479_v14, %v4644_v50  ;;  %v6114_v28 = vperm.slane %v2591_v15, %v4644_v50 }
 0x1b2   : > { %v3980_v21 = vunpack.i.l.bf16 %v5991_v43  ;;  %v6120_v60 = vperm.slane %v2467_v3, %v4644_v50  ;;  %v4015_v8 = vunpack.i.l.bf16 %v5859_v46  ;;  %v3985_v29 = vunpack.i.l.bf16 %v5795_v16 }
 0x1b3   : > { %v2190_v45 = vrot.slane %v4025_v6, 4  ;;  %v6129_v14 = vperm.slane %v2579_v5, %v4644_v50  ;;  %v2154_v15 = vrot.slane %v3990_v63, 4  ;;  %v2280_v32 = vrot.slane %v3986_v7, 4 }
 0x1b4   : > { %v4001_v58 = vunpack.i.h.bf16 %v5875_v52  ;;  %v3996_v22 = vunpack.i.h.bf16 %v6034_v47  ;;  %v2266_v3 = vrot.slane %v3991_v27, 4  ;;  %v3995_v18 = vunpack.i.l.bf16 %v6034_v47 }
 0x1b5   : > { %v6126_v36 = vpop.permute.xlu0 %4028  ;;  %v2155_v48 = vsel %vm331_vm3, %v2154_v15, %v3980_v21  ;;  %v2302_v61 = vrot.slane %v4026_v11, 4  ;;  %v2192_v62 = vrot.slane %v4015_v8, 4  ;;  %v2168_v39 = vrot.slane %v3985_v29, 4 }
 0x1b6   : > { %v2278_v34 = vrot.slane %v3996_v22, 4  ;;  %v6138_v5 = vsel %vm331_vm3, %v3996_v22, %v2280_v32  ;;  %v2191_v33 = vsel %vm331_vm3, %v2190_v45, %v4015_v8  ;;  %v2166_v59 = vrot.slane %v3995_v18, 4 }
 0x1b7   : > { %v2292_v56 = vrot.slane %v4001_v58, 4  ;;  %v4000_v27 = vunpack.i.l.bf16 %v5875_v52  ;;  %v2156_v47 = vrot.slane %v3980_v21, 4  ;;  %v4021_v35 = vunpack.i.h.bf16 %v6062_v19 }
 0x1b8   : > { %v2161_v16 = vperm.slane %v2155_v48, %v4644_v50  ;;  %v2167_v15 = vsel %vm331_vm3, %v2166_v59, %v3985_v29  ;;  %v2279_v11 = vsel %vm331_vm3, %v2278_v34, %v3986_v7  ;;  %v4020_v32 = vunpack.i.l.bf16 %v6062_v19 }
 0x1b9   : > { %v7462_v22 = vunpack.i.h.bf16 %v5859_v46  ;;  %v2197_v8 = vperm.slane %v2191_v33, %v4644_v50  ;;  %v2290_v45 = vrot.slane %v4021_v35, 4  ;;  %v6152_v52 = vsel %vm331_vm3, %v4021_v35, %v2292_v56 }
 0x1ba   : > { %7463 = vst [vmem:[#allocation34_spill] sm:$0xff] %v6152_v52  ;;  %v2173_v21 = vperm.slane %v2167_v15, %v4644_v50  ;;  %v4036_v48 = vunpack.i.h.bf16 %v6056_v51  ;;  %v4035_v59 = vunpack.i.l.bf16 %v6056_v51  ;;  %v2178_v29 = vrot.slane %v4020_v32, 4  ;;  %v4064_v51 = vpop.permute.xlu1 %4063 }
 0x1bb   : > { %v2303_v41 = vsel %vm331_vm3, %v2302_v61, %v7462_v22  ;;  %v2180_v34 = vrot.slane %v4000_v27, 4  ;;  %v2157_v19 = vsel %vm331_vm3, %v3990_v63, %v2156_v47  ;;  %v7464_v46 = vunpack.i.h.bf16 %v5991_v43 }
 0x1bc   : > { %v6162_v33 = vperm.slane %v2279_v11, %v4644_v50  ;;  %v2204_v7 = vrot.slane %v2161_v16, 4  ;;  %v6165_v56 = vperm.slane %v2303_v41, %v4644_v50  ;;  %v2193_v35 = vsel %vm331_vm3, %v4025_v6, %v2192_v62 }
 0x1bd   : > { %v2267_v61 = vsel %vm331_vm3, %v2266_v3, %v7464_v46  ;;  %v2179_v15 = vsel %vm331_vm3, %v2178_v29, %v4000_v27  ;;  %v4044_v22 = vpop.permute.xlu0 %4043  ;;  %v2226_v52 = vrot.slane %v2197_v8, 4  ;;  %v2181_v63 = vsel %vm331_vm3, %v4020_v32, %v2180_v34 }
 0x1be   : > { %7465 = vst [vmem:[#allocation35_spill] sm:$0xff] %v6162_v33  ;;  %v2185_v43 = vperm.slane %v2179_v15, %v4644_v50  ;;  %v2291_v3 = vsel %vm331_vm3, %v2290_v45, %v4001_v58  ;;  %v2169_v47 = vsel %vm331_vm3, %v3995_v18, %v2168_v39  ;;  %v2202_v11 = vrot.slane %v2173_v21, 4 }
 0x1bf   : > { %7466 = vst [vmem:[#allocation36_spill] sm:$0xff] %v6165_v56  ;;  %v3354_v46 = vrot.slane %v4036_v48, 4  ;;  %v3242_v24 = vrot.slane %v4035_v59, 4  ;;  %v2314_v41 = vrot.slane %v6162_v33, 4  ;;  %v4066_v62 = vunpack.i.h.bf16 %v4064_v51 }
 0x1c0   : > { %v2228_v26 = vrot.slane %v2185_v43, 4  ;;  %v4065_v6 = vunpack.i.l.bf16 %v4064_v51  ;;  %v6175_v27 = vperm.slane %v2181_v63, %v4644_v50  ;;  %v6178_v29 = vperm.slane %v2291_v3, %v4644_v50 }
 0x1c1   : > { %v4031_v32 = vunpack.i.h.bf16 %v6126_v36  ;;  %v2205_v58 = vsel %vm331_vm3, %v2173_v21, %v2204_v7  ;;  %v4030_v39 = vunpack.i.l.bf16 %v6126_v36  ;;  %v3356_v18 = vrot.slane %v4066_v62, 4 }
 0x1c2   : > { %7467 = vst [vmem:[#allocation37_spill] sm:$0xff] %v6178_v29  ;;  %v6184_v45 = vsel %vm331_vm3, %v3242_v24, %v4065_v6  ;;  %v3244_v34 = vrot.slane %v4065_v6, 4  ;;  %v6187_v15 = vsel %vm331_vm3, %v3354_v46, %v4066_v62  ;;  %v2213_v51 = vperm.slane %v2205_v58, %v4685_v20 }
 0x1c3   : > { %v2229_v63 = vsel %vm331_vm3, %v2197_v8, %v2228_v26  ;;  %v2203_v3 = vsel %vm331_vm3, %v2202_v11, %v2161_v16  ;;  %v6196_v21 = vsel %vm331_vm3, %v4036_v48, %v3356_v18  ;;  %v2227_v24 = vsel %vm331_vm3, %v2226_v52, %v2185_v43 }
 0x1c4   : > { %v6193_v33 = vsel %vm331_vm3, %v4035_v59, %v3244_v34  ;;  %7468 = vst [vmem:[#allocation38_spill] sm:$0xff] %v6196_v21  ;;  %v2237_v36 = vperm.slane %v2229_v63, %v4685_v20  ;;  %v2165_v7 = vperm.slane %v2157_v19, %v4644_v50  ;;  %v6202_v46 = vperm.slane %v2267_v61, %v4644_v50 }
 0x1c5   : > { %v2338_v62 = vrot.slane %v6165_v56, 4  ;;  %v2201_v26 = vperm.slane %v2193_v35, %v4644_v50  ;;  %v2177_v16 = vperm.slane %v2169_v47, %v4644_v50  ;;  %v2240_v8 = vrot.slane %v6175_v27, 4  ;;  %v6216_v61 = vpop.permute.xlu0 %4058 }
 0x1c6   : > { %v2256_v59 = vrot.slane %v2213_v51, 4  ;;  %v6209_v48 = vperm.slane %v2203_v3, %v4685_v20  ;;  %v3342_v11 = vrot.slane %v4031_v32, 4  ;;  %v3230_v6 = vrot.slane %v4030_v39, 4  ;;  %7469 = vst [vmem:[#allocation39_spill] sm:$0xff] %v6216_v61 }
 0x1c7   : > { %v6212_v52 = vperm.slane %v2227_v24, %v4685_v20  ;;  %v2315_v19 = vsel %vm331_vm3, %v2314_v41, %v6202_v46  ;;  %v2339_v58 = vsel %vm331_vm3, %v2338_v62, %v6178_v29  ;;  %v4046_v34 = vunpack.i.h.bf16 %v4044_v22 }
 0x1c8   : > { %v2257_v35 = vsel %vm331_vm3, %v2237_v36, %v2256_v59  ;;  %v2252_v43 = vrot.slane %v6209_v48, 4  ;;  %v6221_v47 = vperm.slane %v2315_v19, %v4685_v20  ;;  %v6227_v18 = vperm.slane %v2339_v58, %v4685_v20 }
 0x1c9   : > { %2387 = vrot.lane.b32.xlu1 %v2257_v35, %s4444_s19  ;;  %v4045_v63 = vunpack.i.l.bf16 %v4044_v22  ;;  %v2254_v41 = vrot.slane %v2237_v36, 4  ;;  %v2214_v3 = vrot.slane %v2177_v16, 4  ;;  %v7472_v19 = vrot.slane %v6111_v55, 4 }
 0x1ca   : > { %7470 = vst [vmem:[#allocation40_spill] sm:$0xff] %v6221_v47  ;;  %v2253_v24 = vsel %vm331_vm3, %v6212_v52, %v2252_v43  ;;  %v2364_v59 = vrot.slane %v6221_v47, 4  ;;  %v3344_v62 = vrot.slane %v4046_v34, 4  ;;  %v6240_v61 = vsel %vm331_vm3, %v3342_v11, %v4046_v34  ;;  %v7483_v34 = vld [vmem:[#allocation18_spill] sm:$0xff] }
 0x1cb   : > { %7471 = vst [vmem:[#allocation41_spill] sm:$0xff] %v6227_v18  ;;  %v2515_v56 = vsel %vm331_vm3, %v7472_v19, %v6120_v60  ;;  %v6237_v35 = vsel %vm331_vm3, %v3230_v6, %v4045_v63  ;;  %v3232_v58 = vrot.slane %v4045_v63, 4  ;;  %v2216_v22 = vrot.slane %v2165_v7, 4 }
 0x1cc   : > { %7473 = vst [vmem:[#allocation42_spill] sm:$0xff] %v6237_v35  ;;  %v2365_v36 = vsel %vm331_vm3, %v6227_v18, %v2364_v59  ;;  %v2255_v43 = vsel %vm331_vm3, %v2254_v41, %v2213_v51  ;;  %v2241_v47 = vsel %vm331_vm3, %v2201_v26, %v2240_v8  ;;  %v2238_v29 = vrot.slane %v2201_v26, 4  ;;  %v7478_v8 = vld [vmem:[#allocation20_spill] sm:$0xff]  ;;  %v7479_v59 = vld [vmem:[#allocation19_spill] sm:$0xff] }
 0x1cd   : > { %7474 = vst [vmem:[#allocation43_spill] sm:$0xff] %v6240_v61  ;;  %v4177_v21 = vpack.i.bf16 %v2365_v36, %v2253_v24  ;;  %v6247_v19 = vsel %vm331_vm3, %v4030_v39, %v3232_v58  ;;  %v6250_v6 = vsel %vm331_vm3, %v4031_v32, %v3344_v62  ;;  %2383 = vrot.lane.b32.xlu0 %v2255_v43, %s4441_s10  ;;  %v7477_v26 = vrot.slane %v6114_v28, 4  ;;  %v4079_v32 = vpop.permute.xlu2 %4078 }
 0x1ce   : > { %7475 = vst [vmem:[#allocation44_spill] sm:$0xff] %v6247_v19  ;;  %v2217_v11 = vsel %vm331_vm3, %v2177_v16, %v2216_v22  ;;  %v6258_v51 = vpack.i.bf16 %v6083_v23, %v6069_v10  ;;  %v922_v63 = vrot.slane %v7478_v8, 4  ;;  %v6267_v41 = vperm.slane %v2241_v47, %v4685_v20 }
 0x1cf   : > { %7476 = vst [vmem:[#allocation45_spill] sm:$0xff] %v6250_v6  ;;  %v2627_v39 = vsel %vm331_vm3, %v7477_v26, %v6129_v14  ;;  %4178 = vrot.lane.b32.xlu2 %v4177_v21, %s4439_s8  ;;  %v2215_v16 = vsel %vm331_vm3, %v2214_v3, %v2165_v7  ;;  %v2239_v24 = vsel %vm331_vm3, %v2238_v29, %v6175_v27  ;;  %v810_v62 = vrot.slane %v7479_v59, 4  ;;  %v4084_v26 = vpop.permute.xlu0 %4083  ;;  %v7481_v7 = vld [vmem:[#allocation14_spill] sm:$0xff] }
 0x1d0   : > { %v2221_v58 = vperm.slane %v2215_v16, %v4685_v20  ;;  %v2245_v22 = vperm.slane %v2239_v24, %v4685_v20  ;;  %v4074_v36 = vpop.permute.xlu1 %4073  ;;  %v6276_v43 = vperm.slane %v2515_v56, %v4685_v20  ;;  %v2225_v21 = vperm.slane %v2217_v11, %v4685_v20 }
 0x1d1   : > { %v2262_v47 = vrot.slane %v6267_v41, 4  ;;  %v6282_v3 = vperm.slane %v7481_v7, %v4685_v20  ;;  %v6285_v27 = vperm.slane %v2627_v39, %v4685_v20  ;;  %v4081_v29 = vunpack.i.h.bf16 %v4079_v32  ;;  %v7484_v7 = vld [vmem:[#allocation17_spill] sm:$0xff] }
 0x1d2   : > { %7480 = vst [vmem:[#allocation20_spill] sm:$0xff] %v6276_v43  ;;  %v2258_v8 = vrot.slane %v2245_v22, 4  ;;  %v2260_v16 = vrot.slane %v2221_v58, 4  ;;  %v4076_v24 = vunpack.i.h.bf16 %v4074_v36  ;;  %v4080_v59 = vunpack.i.l.bf16 %v4079_v32 }
 0x1d3   : > { %7482 = vst [vmem:[#allocation19_spill] sm:$0xff] %v6282_v3  ;;  %v2263_v56 = vsel %vm331_vm3, %v2262_v47, %v2225_v21  ;;  %v923_v11 = vsel %vm331_vm3, %v922_v63, %v7483_v34  ;;  %v4075_v18 = vunpack.i.l.bf16 %v4074_v36  ;;  %v811_v19 = vsel %vm331_vm3, %v810_v62, %v7484_v7  ;;  %v7485_v62 = vld [vmem:[#allocation15_spill] sm:$0xff] }
 0x1d4   : > { %2399 = vrot.lane.b32.xlu1 %v2263_v56, %s4445_s20  ;;  %v2261_v6 = vsel %vm331_vm3, %v2245_v22, %v2260_v16  ;;  %v1001_v39 = vsel %vm611_vm4, %v923_v11, %v4076_v24  ;;  %v4086_v61 = vunpack.i.h.bf16 %v4084_v26  ;;  %v4085_v35 = vunpack.i.l.bf16 %v4084_v26 }
 0x1d5   : > { %2395 = vrot.lane.b32.xlu0 %v2261_v6, %s4443_s17  ;;  %v994_v32 = vsel %vm611_vm4, %v811_v19, %v4075_v18  ;;  %v1002_v47 = vsel %vm613_vm5, %v1001_v39, %v4081_v29  ;;  %v2564_v34 = vrot.slane %v6276_v43, 4  ;;  %v2259_v63 = vsel %vm331_vm3, %v2258_v8, %v2221_v58  ;;  %v6308_v18 = vld [vmem:[#allocation2 + $0x62] sm:$0xff]  ;;  %v6310_v19 = vld [vmem:[#allocation2 + $0x6a] sm:$0xff]  ;;  %v6327_v11 = vpop.permute.xlu2 %4093 }
 0x1d6   : > { %v995_v36 = vsel %vm613_vm5, %v994_v32, %v4080_v59  ;;  %v1003_v22 = vsel %vm615_vm6, %v1002_v47, %v4086_v61  ;;  %v6304_v16 = vperm.slane %v7485_v62, %v4685_v20  ;;  %v4202_v26 = vpack.i.bf16 %v6310_v19, %v6308_v18  ;;  %v6316_v61 = vld [vmem:[#allocation2 + $0x7a] sm:$0xff]  ;;  %7486 = vst [vmem:[#allocation14_spill] sm:$0xff] %v6327_v11  ;;  %v7487_v32 = vld [vmem:[#allocation12_spill] sm:$0xff] }
 0x1d7   : > { %2391 = vrot.lane.b32.xlu2 %v2259_v63, %s4440_s9  ;;  %v996_v6 = vsel %vm615_vm6, %v995_v36, %v4085_v35  ;;  %v2492_v58 = vrot.slane %v6308_v18, 4  ;;  %v2504_v8 = vrot.slane %v6316_v61, 4  ;;  %v6321_v24 = vsel %vm331_vm3, %v6282_v3, %v2564_v34  ;;  %v6323_v35 = vld [vmem:[#allocation2 + $0x82] sm:$0xff]  ;;  %v7488_v34 = vld [vmem:[#allocation13_spill] sm:$0xff] }
 0x1d8   : > { %v2616_v59 = vrot.slane %v6323_v35, 4  ;;  %v2676_v56 = vrot.slane %v6285_v27, 4  ;;  %v2264_v7 = vrot.slane %v2225_v21, 4  ;;  %v2516_v39 = vrot.slane %v6120_v60, 4  ;;  %v7489_v21 = vld [vmem:[#allocation10_spill] sm:$0xff]  ;;  %v7491_v3 = vld [vmem:[#allocation11_spill] sm:$0xff] }
 0x1d9   : > { %v2540_v47 = vrot.slane %v7487_v32, 4  ;;  %v2628_v63 = vrot.slane %v6129_v14, 4  ;;  %v2652_v62 = vrot.slane %v7488_v34, 4  ;;  %v2468_v18 = vrot.slane %v6069_v10, 4 }
 0x1da   : > { %v6334_v36 = vsel %vm331_vm3, %v6304_v16, %v2676_v56  ;;  %v2480_v29 = vrot.slane %v6079_v37, 4  ;;  %v2517_v60 = vsel %vm331_vm3, %v6111_v55, %v2516_v39  ;;  %v7490_v56 = vpack.i.bf16 %v6058_v57, %v6040_v38 }
 0x1db   : > { %v2541_v32 = vsel %vm331_vm3, %v7489_v21, %v2540_v47  ;;  %v2629_v14 = vsel %vm331_vm3, %v6114_v28, %v2628_v63  ;;  %v2525_v10 = vperm.slane %v2517_v60, %v4685_v20  ;;  %v2653_v55 = vsel %vm331_vm3, %v7491_v3, %v2652_v62 }
 0x1dc   : > { %4188 = vrot.lane.b32.xlu1 %v7490_v56, %s4435_s23  ;;  %v2549_v34 = vperm.slane %v2541_v32, %v4685_v20  ;;  %v2637_v43 = vperm.slane %v2629_v14, %v4685_v20  ;;  %v2265_v39 = vsel %vm331_vm3, %v6267_v41, %v2264_v7  ;;  %v7492_v28 = vpack.i.bf16 %v6081_v53, %v6079_v37  ;;  %v4329_v56 = vld [vmem:[#allocation2 + $0x92] sm:$0xff] }
 0x1dd   : > { %v2661_v47 = vperm.slane %v2653_v55, %v4685_v20  ;;  %v2481_v63 = vsel %vm331_vm3, %v6042_v40, %v2480_v29  ;;  %v2568_v32 = vrot.slane %v2525_v10, 4  ;;  %v2493_v3 = vsel %vm331_vm3, %v4329_v56, %v2492_v58  ;;  %v6379_v58 = vpop.permute.xlu2 %4113 }
 0x1de   : > { %4183 = vrot.lane.b32.xlu0 %v7492_v28, %s4435_s23  ;;  %v2566_v21 = vrot.slane %v2549_v34, 4  ;;  %v2680_v14 = vrot.slane %v2637_v43, 4  ;;  %v2469_v37 = vsel %vm331_vm3, %v6040_v38, %v2468_v18  ;;  %v2489_v28 = vperm.slane %v2481_v63, %v4644_v50  ;;  %v4330_v63 = vld [vmem:[#allocation2 + $0xaa] sm:$0xff] }
 0x1df   : > { %v4089_v60 = vpop.permute.xlu1 %4088  ;;  %2403 = vrot.lane.b32.xlu2 %v2265_v39, %s4442_s11  ;;  %v2678_v62 = vrot.slane %v2661_v47, 4  ;;  %v6373_v40 = vsel %vm331_vm3, %v2549_v34, %v2568_v32  ;;  %v2477_v34 = vperm.slane %v2469_v37, %v4644_v50  ;;  %v2580_v32 = vrot.slane %v6083_v23, 4 }
 0x1e0   : > { %v4091_v41 = vunpack.i.h.bf16 %v4089_v60  ;;  %v4090_v7 = vunpack.i.l.bf16 %v4089_v60  ;;  %v6370_v55 = vsel %vm331_vm3, %v2566_v21, %v2525_v10  ;;  %v6376_v29 = vsel %vm331_vm3, %v2661_v47, %v2680_v14  ;;  %v4331_v14 = vld [vmem:[#allocation2 + $0xb2] sm:$0xff] }
 0x1e1   : > { %v6388_v38 = vsel %vm331_vm3, %v2678_v62, %v2637_v43  ;;  %v2501_v47 = vperm.slane %v2493_v3, %v4644_v50  ;;  %v2592_v43 = vrot.slane %v6081_v53, 4  ;;  %v4192_v56 = vpack.i.bf16 %v4331_v14, %v4330_v63 }
 0x1e2   : > { %v6382_v39 = vsel %vm617_vm7, %v996_v6, %v4090_v7  ;;  %v6385_v60 = vsel %vm617_vm7, %v1003_v22, %v4091_v41  ;;  %v2505_v6 = vsel %vm331_vm3, %v4330_v63, %v2504_v8  ;;  %v2526_v22 = vrot.slane %v2489_v28, 4  ;;  %v4332_v41 = vld [vmem:[#allocation2 + $0x9a] sm:$0xff] }
 0x1e3   : > { %7493 = vst [vmem:[#allocation18_spill] sm:$0xff] %v6382_v39  ;;  %v2513_v21 = vperm.slane %v2505_v6, %v4644_v50  ;;  %v7495_v7 = vrot.slane %v6310_v19, 4  ;;  %v2617_v3 = vsel %vm331_vm3, %v4331_v14, %v2616_v59  ;;  %v2581_v53 = vsel %vm331_vm3, %v6058_v57, %v2580_v32 }
 0x1e4   : > { %7494 = vst [vmem:[#allocation17_spill] sm:$0xff] %v6385_v60  ;;  %4203 = vrot.lane.b32.xlu1 %v4202_v26, %s4435_s23  ;;  %v2527_v8 = vsel %vm331_vm3, %v2526_v22, %v2477_v34  ;;  %v2593_v23 = vsel %vm331_vm3, %v6048_v49, %v2592_v43  ;;  %v2589_v26 = vperm.slane %v2581_v53, %v4644_v50  ;;  %v2528_v63 = vrot.slane %v2477_v34, 4 }
 0x1e5   : > { %v2605_v62 = vsel %vm331_vm3, %v4332_v41, %v7495_v7  ;;  %v2550_v37 = vrot.slane %v2513_v21, 4  ;;  %v2601_v19 = vperm.slane %v2593_v23, %v4644_v50  ;;  %v2533_v59 = vperm.slane %v2527_v8, %v4685_v20  ;;  %v6424_v7 = vpop.permute.xlu0 %4098 }
 0x1e6   : > { %4198 = vrot.lane.b32.xlu0 %v6258_v51, %s4438_s7  ;;  %v2625_v22 = vperm.slane %v2617_v3, %v4644_v50  ;;  %v2552_v14 = vrot.slane %v2501_v47, 4  ;;  %v2613_v57 = vperm.slane %v2605_v62, %v4644_v50  ;;  %v2529_v49 = vsel %vm331_vm3, %v2489_v28, %v2528_v63  ;;  %7496 = vst [vmem:[#allocation15_spill] sm:$0xff] %v6424_v7  ;;  %s3715_s7 = sshll.u32 %s4489_s16, 5  ;;  %s3608_s16 = scalar_lea.sflag [#allocation6], %s4554_s29 }
 0x1e7   : > { %4193 = vrot.lane.b32.xlu2 %v4192_v56, %s4435_s23  ;;  %v2551_v6 = vsel %vm331_vm3, %v2550_v37, %v2501_v47  ;;  %v2638_v32 = vrot.slane %v2601_v19, 4  ;;  %v4207_v43 = vpack.i.bf16 %v6323_v35, %v6316_v61  ;;  %v2537_v47 = vperm.slane %v2529_v49, %v4685_v20  ;;  %v6430_v62 = vpop.permute.xlu1 %4103 }
 0x1e8   : > { %v2557_v41 = vperm.slane %v2551_v6, %v4685_v20  ;;  %v2662_v34 = vrot.slane %v2625_v22, 4  ;;  %v2553_v56 = vsel %vm331_vm3, %v2513_v21, %v2552_v14  ;;  %v2640_v3 = vrot.slane %v2589_v26, 4  ;;  %7498 = vst [vmem:[#allocation13_spill] sm:$0xff] %v6430_v62 }
 0x1e9   : > { %v2639_v37 = vsel %vm331_vm3, %v2638_v32, %v2589_v26  ;;  %v2572_v61 = vrot.slane %v2533_v59, 4  ;;  %v2561_v35 = vperm.slane %v2553_v56, %v4685_v20  ;;  %v2674_v21 = vrot.slane %v6304_v16, 4 }
 0x1ea   : > { %v2570_v8 = vrot.slane %v2557_v41, 4  ;;  %v2645_v28 = vperm.slane %v2639_v37, %v4685_v20  ;;  %v2663_v23 = vsel %vm331_vm3, %v2662_v34, %v2613_v57  ;;  %v2641_v6 = vsel %vm331_vm3, %v2601_v19, %v2640_v3 }
 0x1eb   : > { %v2669_v63 = vperm.slane %v2663_v23, %v4685_v20  ;;  %v2664_v14 = vrot.slane %v2613_v57, 4  ;;  %v6444_v32 = vsel %vm331_vm3, %v2557_v41, %v2572_v61  ;;  %v2574_v34 = vrot.slane %v2561_v35, 4 }
 0x1ec   : > { %v6428_v53 = vpop.permute.xlu2 %4128  ;;  %v6441_v26 = vsel %vm331_vm3, %v2570_v8, %v2533_v59  ;;  %7500 = vst [vmem:[#allocation11_spill] sm:$0xff] %v6444_v32  ;;  %v2684_v49 = vrot.slane %v2645_v28, 4  ;;  %v2649_v56 = vperm.slane %v2641_v6, %v4685_v20  ;;  %v2576_v23 = vrot.slane %v2537_v47, 4 }
 0x1ed   : > { %7497 = vst [vmem:[#allocation12_spill] sm:$0xff] %v6428_v53  ;;  %v2682_v37 = vrot.slane %v2669_v63, 4  ;;  %v2665_v16 = vsel %vm331_vm3, %v2625_v22, %v2664_v14  ;;  %v1874_v19 = vrot.slane %v5927_v4, 4  ;;  %v1986_v57 = vrot.slane %v5937_v2, 4 }
 0x1ee   : > { %4213 = vrot.lane.b32.xlu0 %v6258_v51, %s4435_s23  ;;  %7499 = vst [vmem:[#allocation10_spill] sm:$0xff] %v6441_v26  ;;  %v6452_v51 = vsel %vm331_vm3, %v2669_v63, %v2684_v49  ;;  %v2673_v59 = vperm.slane %v2665_v16, %v4685_v20  ;;  %v6461_v22 = vsel %vm331_vm3, %v2561_v35, %v2576_v23  ;;  %v2688_v3 = vrot.slane %v2649_v56, 4 }
 0x1ef   : > { %4208 = vrot.lane.b32.xlu2 %v4207_v43, %s4435_s23  ;;  %7501 = vst [vmem:[#allocation46_spill] sm:$0xff] %v6452_v51  ;;  %v6456_v41 = vsel %vm331_vm3, %v2682_v37, %v2645_v28  ;;  %v6466_v2 = vsel %vm331_vm3, %v2574_v34, %v2537_v47  ;;  %v6470_v61 = vsel %vm331_vm3, %v2674_v21, %v6285_v27  ;;  %v1186_v63 = vrot.slane %v5741_v1, 4  ;;  %v4119_v21 = vpop.permute.xlu0 %4118  ;;  %s3704_s23 = sshll.u32 %s4554_s29, 5 }
 0x1f0   : > { %7502 = vst [vmem:[#allocation47_spill] sm:$0xff] %v6456_v41  ;;  %v2686_v43 = vrot.slane %v2673_v59, 4  ;;  %v6473_v28 = vsel %vm331_vm3, %v2673_v59, %v2688_v3  ;;  %v1298_v35 = vrot.slane %v5754_v25, 4  ;;  %v1875_v37 = vsel %vm331_vm3, %v1874_v19, %v5924_v42 }
 0x1f1   : > { %7503 = vst [vmem:[#allocation48_spill] sm:$0xff] %v6461_v22  ;;  %v1987_v1 = vsel %vm331_vm3, %v1986_v57, %v5934_v17  ;;  %v4116_v3 = vunpack.i.h.bf16 %v6379_v58  ;;  %v4121_v19 = vunpack.i.h.bf16 %v4119_v21  ;;  %v4120_v47 = vunpack.i.l.bf16 %v4119_v21 }
 0x1f2   : > { %7504 = vst [vmem:[#allocation49_spill] sm:$0xff] %v6466_v2  ;;  %v6478_v14 = vsel %vm331_vm3, %v2686_v43, %v2649_v56  ;;  %v4115_v43 = vunpack.i.l.bf16 %v6379_v58  ;;  %v1299_v42 = vsel %vm331_vm3, %v1298_v35, %v5744_v44  ;;  %v7365_v27 = vunpack.i.l.bf16 %v5939_v13 }
 0x1f3   : > { %7505 = vst [vmem:[#allocation50_spill] sm:$0xff] %v6470_v61  ;;  %v7538_v11 = vunpack.i.l.bf16 %v5939_v13 }
 0x1f4   : > { %7506 = vst [vmem:[#allocation51_spill] sm:$0xff] %v6473_v28 }
 0x1f5   : > { %7507 = vst [vmem:[#allocation52_spill] sm:$0xff] %v6478_v14 }
 0x1f6   : > { %v4144_v6 = vpop.permute.xlu2 %4143  ;;  %v4109_v25 = vpop.permute.xlu1 %4108 }
 0x1f7   : > { %v4146_v49 = vunpack.i.h.bf16 %v4144_v6  ;;  %v4145_v34 = vunpack.i.l.bf16 %v4144_v6  ;;  %v4111_v23 = vunpack.i.h.bf16 %v4109_v25  ;;  %v4110_v59 = vunpack.i.l.bf16 %v4109_v25 }
 0x1f8   : > { %v1187_v6 = vsel %vm331_vm3, %v1186_v63, %v5738_v9 }
 0x1f9   : > { %v2065_v16 = vsel %vm611_vm4, %v1987_v1, %v4146_v49  ;;  %v2058_v56 = vsel %vm611_vm4, %v1875_v37, %v4145_v34  ;;  %v1377_v17 = vsel %vm611_vm4, %v1299_v42, %v4111_v23  ;;  %v1370_v57 = vsel %vm611_vm4, %v1187_v6, %v4110_v59 }
 0x1fa   : > { %v1378_v49 = vsel %vm613_vm5, %v1377_v17, %v4116_v3  ;;  %v1371_v34 = vsel %vm613_vm5, %v1370_v57, %v4115_v43  ;;  %v6508_v35 = vpop.permute.xlu0 %4133  ;;  %v3373_v3 = vperm.slane %v6097_v31, %v4644_v50  ;;  %v3249_v42 = vperm.slane %v6184_v45, %v4644_v50 }
 0x1fb   : > { %v1372_v37 = vsel %vm615_vm6, %v1371_v34, %v4120_v47  ;;  %v1379_v58 = vsel %vm615_vm6, %v1378_v49, %v4121_v19  ;;  %7510 = vst [vmem:[#allocation55_spill] sm:$0xff] %v6508_v35  ;;  %v3261_v47 = vperm.slane %v6072_v12, %v4644_v50  ;;  %v3361_v19 = vperm.slane %v6187_v15, %v4644_v50  ;;  %v7533_v35 = vld [vmem:[#allocation39_spill] sm:$0xff] }
 0x1fd   : > { %v3290_v31 = vrot.slane %v3261_v47, 4 }
 0x1ff   : > { %v6531_v15 = vsel %vm331_vm3, %v3290_v31, %v3249_v42 }
 0x201   : > { %v6528_v45 = vpop.permute.xlu2 %4158 }
 0x202   : > { %7514 = vst [vmem:[#allocation59_spill] sm:$0xff] %v6528_v45 }
 0x204   : > { %v4124_v1 = vpop.permute.xlu1 %4123 }
 0x205   : > { %v4126_v25 = vunpack.i.h.bf16 %v4124_v1  ;;  %v4125_v9 = vunpack.i.l.bf16 %v4124_v1  ;;  %v3292_v1 = vrot.slane %v3249_v42, 4 }
 0x207   : > { %v6503_v63 = vsel %vm617_vm7, %v1372_v37, %v4125_v9  ;;  %v6506_v44 = vsel %vm617_vm7, %v1379_v58, %v4126_v25  ;;  %v3402_v58 = vrot.slane %v3373_v3, 4  ;;  %v3404_v25 = vrot.slane %v3361_v19, 4 }
 0x208   : > { %7508 = vst [vmem:[#allocation53_spill] sm:$0xff] %v6503_v63 }
 0x209   : > { %7509 = vst [vmem:[#allocation54_spill] sm:$0xff] %v6506_v44  ;;  %v6534_v9 = vsel %vm331_vm3, %v3402_v58, %v3361_v19  ;;  %v2250_v19 = vrot.slane %v6212_v52, 4  ;;  %v7366_v58 = vunpack.i.h.bf16 %v5939_v13  ;;  %v6563_v52 = vperm.slane %v6094_v0, %v4644_v50 }
 0x20a   : > { %v6584_v0 = vrot.slane %v7365_v27, 4  ;;  %v4060_v44 = vunpack.i.l.bf16 %v7533_v35 }
 0x20c   : > { %v6510_v21 = vpop.permute.xlu1 %4138 }
 0x20d   : > { %7511 = vst [vmem:[#allocation56_spill] sm:$0xff] %v6510_v21 }
 0x215   : > { %v4154_v23 = vpop.permute.xlu1 %4153  ;;  %v4149_v59 = vpop.permute.xlu0 %4148 }
 0x216   : > { %v4151_v43 = vunpack.i.h.bf16 %v4149_v59  ;;  %v4150_v6 = vunpack.i.l.bf16 %v4149_v59  ;;  %v4156_v17 = vunpack.i.h.bf16 %v4154_v23  ;;  %v4155_v57 = vunpack.i.l.bf16 %v4154_v23  ;;  %v6542_v23 = vpop.permute.xlu2 %4173 }
 0x217   : > { %7515 = vst [vmem:[#allocation60_spill] sm:$0xff] %v6542_v23 }
 0x218   : > { %v2059_v49 = vsel %vm613_vm5, %v2058_v56, %v4150_v6  ;;  %v2066_v34 = vsel %vm613_vm5, %v2065_v16, %v4151_v43  ;;  %v6537_v16 = vsel %vm331_vm3, %v3261_v47, %v3292_v1  ;;  %v6540_v56 = vsel %vm331_vm3, %v3373_v3, %v3404_v25 }
 0x219   : > { %v6523_v37 = vsel %vm615_vm6, %v2059_v49, %v4155_v57  ;;  %v6526_v12 = vsel %vm615_vm6, %v2066_v34, %v4156_v17  ;;  %v2251_v3 = vsel %vm331_vm3, %v2250_v19, %v6209_v48  ;;  %v6568_v48 = vperm.slane %v6100_v30, %v4644_v50 }
 0x21a   : > { %7512 = vst [vmem:[#allocation57_spill] sm:$0xff] %v6523_v37  ;;  %v6572_v19 = vperm.slane %v6108_v54, %v4644_v50  ;;  %v6604_v54 = vperm.slane %v6193_v33, %v4644_v50 }
 0x21b   : > { %7513 = vst [vmem:[#allocation58_spill] sm:$0xff] %v6526_v12  ;;  %v7531_v12 = vld [vmem:[#allocation44_spill] sm:$0xff] }
 0x21d   : > { %v6548_v17 = vpop.permute.xlu0 %4163 }
 0x21e   : > { %7518 = vst [vmem:[#allocation63_spill] sm:$0xff] %v6548_v17 }
 0x21f   : > { %v6546_v6 = vpop.permute.xlu1 %4168 }
 0x220   : > { %7517 = vst [vmem:[#allocation62_spill] sm:$0xff] %v6546_v6 }
 0x229   : > { %v6544_v59 = vpop.permute.xlu2 %4178 }
 0x22a   : > { %7516 = vst [vmem:[#allocation61_spill] sm:$0xff] %v6544_v59  ;;  %v4180_v57 = vunpack.i.l.bf16 %v6544_v59 }
 0x22c   : > { %v2434_v34 = vsel %vm611_vm4, %v2251_v3, %v4180_v57  ;;  %v6576_v57 = vrot.slane %v7366_v58, 4 }
 0x231   : > { %v2392_v43 = vpop.permute.xlu2 %2391 }
 0x239   : > { %v6550_v42 = vpop.permute.xlu2 %2403 }
 0x23a   : > { %7519 = vst [vmem:[#allocation64_spill] sm:$0xff] %v6550_v42 }
 0x23b   : > { %v2388_v47 = vpop.permute.xlu1 %2387 }
 0x23f   : > { %v2384_v49 = vpop.permute.xlu0 %2383 }
 0x240   : > { %v2435_v31 = vsel %vm613_vm5, %v2434_v34, %v2384_v49  ;;  %v7524_v34 = vld [vmem:[#allocation38_spill] sm:$0xff] }
 0x241   : > { %v4194_v1 = vpop.permute.xlu2 %4193  ;;  %v2436_v25 = vsel %vm615_vm6, %v2435_v31, %v2388_v47  ;;  %v6580_v47 = vperm.slane %v6138_v5, %v4644_v50  ;;  %v7522_v31 = vld [vmem:[#allocation33_spill] sm:$0xff]  ;;  %v6608_v58 = vperm.slane %v7524_v34, %v4644_v50  ;;  %v7525_v5 = vld [vmem:[#allocation42_spill] sm:$0xff] }
 0x242   : > { %v2437_v8 = vsel %vm617_vm7, %v2436_v25, %v2392_v43  ;;  %v7520_v43 = vld [vmem:[#allocation32_spill] sm:$0xff]  ;;  %v4196_v10 = vunpack.i.h.bf16 %v4194_v1  ;;  %v4195_v27 = vunpack.i.l.bf16 %v4194_v1  ;;  %v6612_v25 = vperm.slane %v7525_v5, %v4644_v50  ;;  %v7526_v1 = vld [vmem:[#allocation34_spill] sm:$0xff] }
 0x243   : > { %v6588_v30 = vperm.slane %v7520_v43, %v4644_v50  ;;  %v6616_v42 = vperm.slane %v7526_v1, %v4644_v50  ;;  %v7529_v34 = vunpack.i.h.bf16 %v7522_v31  ;;  %v7530_v5 = vunpack.i.l.bf16 %v7522_v31 }
 0x244   : > { %v6633_v1 = vperm.slane %v7531_v12, %v4644_v50  ;;  %v2990_v37 = vrot.slane %v4196_v10, 4  ;;  %v2878_v6 = vrot.slane %v4195_v27, 4  ;;  %v7544_v26 = vunpack.i.l.bf16 %v7522_v31 }
 0x245   : > { %v6625_v59 = vrot.slane %v7529_v34, 4  ;;  %v6629_v61 = vrot.slane %v7530_v5, 4  ;;  %v7532_v34 = vld [vmem:[#allocation45_spill] sm:$0xff] }
 0x246   : > { %v6592_v49 = vpop.permute.xlu1 %2399  ;;  %v6640_v63 = vperm.slane %v7532_v34, %v4644_v50 }
 0x247   : > { %7521 = vst [vmem:[#allocation32_spill] sm:$0xff] %v6592_v49  ;;  %v2396_v4 = vpop.permute.xlu0 %2395  ;;  %v4061_v49 = vunpack.i.h.bf16 %v7533_v35 }
 0x248   : > { %v6599_v43 = vsel %vm619_vm8, %v2437_v8, %v2396_v4  ;;  %v7527_v8 = vld [vmem:[#allocation43_spill] sm:$0xff] }
 0x249   : > { %7523 = vst [vmem:[#allocation33_spill] sm:$0xff] %v6599_v43  ;;  %v4209_v18 = vpop.permute.xlu2 %4208  ;;  %v6620_v4 = vperm.slane %v7527_v8, %v4644_v50  ;;  %v7528_v43 = vld [vmem:[#allocation37_spill] sm:$0xff] }
 0x24a   : > { %v4211_v3 = vunpack.i.h.bf16 %v4209_v18  ;;  %v4210_v33 = vunpack.i.l.bf16 %v4209_v18 }
 0x24c   : > { %v2992_v8 = vrot.slane %v4211_v3, 4  ;;  %v2880_v17 = vrot.slane %v4210_v33, 4  ;;  %v2879_v21 = vsel %vm331_vm3, %v2878_v6, %v4210_v33  ;;  %v2991_v23 = vsel %vm331_vm3, %v2990_v37, %v4211_v3 }
 0x24d   : > { %v6654_v6 = vperm.slane %v6537_v16, %v4685_v20  ;;  %v7535_v16 = vunpack.i.h.bf16 %v5939_v13 }
 0x24e   : > { %v2881_v12 = vsel %vm331_vm3, %v4195_v27, %v2880_v17  ;;  %v6646_v45 = vpop.permute.xlu1 %4188  ;;  %v2993_v53 = vsel %vm331_vm3, %v4196_v10, %v2992_v8  ;;  %v6658_v27 = vperm.slane %v6540_v56, %v4685_v20  ;;  %v6662_v17 = vperm.slane %v2879_v21, %v4644_v50 }
 0x24f   : > { %v6665_v35 = vperm.slane %v2881_v12, %v4644_v50  ;;  %v6668_v10 = vperm.slane %v2991_v23, %v4644_v50  ;;  %v6671_v3 = vperm.slane %v2993_v53, %v4644_v50  ;;  %v2978_v8 = vrot.slane %v4061_v49, 4 }
 0x250   : > { %v4184_v34 = vpop.permute.xlu0 %4183  ;;  %v6677_v21 = vperm.slane %v6531_v15, %v4685_v20  ;;  %v6683_v23 = vperm.slane %v6534_v9, %v4685_v20  ;;  %v7537_v18 = vunpack.i.l.bf16 %v6646_v45 }
 0x251   : > { %v4186_v62 = vunpack.i.h.bf16 %v4184_v34  ;;  %v4185_v7 = vunpack.i.l.bf16 %v4184_v34  ;;  %v2866_v34 = vrot.slane %v4060_v44, 4 }
 0x252   : > { %7534 = vst [vmem:[#allocation38_spill] sm:$0xff] %v6683_v23  ;;  %v2842_v39 = vrot.slane %v7537_v18, 4 }
 0x253   : > { %v2968_v56 = vrot.slane %v4186_v62, 4  ;;  %v2856_v37 = vrot.slane %v4185_v7, 4  ;;  %v2967_v12 = vsel %vm331_vm3, %v6576_v57, %v4186_v62  ;;  %v2855_v60 = vsel %vm331_vm3, %v6584_v0, %v4185_v7 }
 0x254   : > { %v7536_v57 = vunpack.i.h.bf16 %v6646_v45  ;;  %v6701_v33 = vperm.slane %v2967_v12, %v4644_v50  ;;  %v6710_v9 = vperm.slane %v2855_v60, %v4644_v50 }
 0x255   : > { %v2969_v15 = vsel %vm331_vm3, %v7535_v16, %v2968_v56  ;;  %v2857_v16 = vsel %vm331_vm3, %v7538_v11, %v2856_v37 }
 0x256   : > { %v2954_v53 = vrot.slane %v7536_v57, 4  ;;  %v4204_v5 = vpop.permute.xlu1 %4203  ;;  %v6707_v62 = vperm.slane %v2969_v15, %v4644_v50  ;;  %v6715_v13 = vperm.slane %v2857_v16, %v4644_v50  ;;  %v3002_v16 = vrot.slane %v6701_v33, 4 }
 0x257   : > { %v4206_v56 = vunpack.i.h.bf16 %v4204_v5  ;;  %v4205_v7 = vunpack.i.l.bf16 %v4204_v5 }
 0x258   : > { %v4199_v0 = vpop.permute.xlu0 %4198 }
 0x259   : > { %v4201_v57 = vunpack.i.h.bf16 %v4199_v0  ;;  %v4200_v22 = vunpack.i.l.bf16 %v4199_v0  ;;  %v2979_v18 = vsel %vm331_vm3, %v2978_v8, %v4206_v56  ;;  %v2980_v28 = vrot.slane %v4206_v56, 4 }
 0x25a   : > { %v2867_v12 = vsel %vm331_vm3, %v2866_v34, %v4205_v7  ;;  %v2868_v2 = vrot.slane %v4205_v7, 4  ;;  %v6724_v15 = vperm.slane %v2979_v18, %v4644_v50  ;;  %v2890_v56 = vrot.slane %v6710_v9, 4 }
 0x25b   : > { %v6718_v11 = vperm.slane %v2867_v12, %v4644_v50  ;;  %v3331_v5 = vsel %vm331_vm3, %v6625_v59, %v4201_v57  ;;  %v3332_v37 = vrot.slane %v4201_v57, 4  ;;  %v2981_v60 = vsel %vm331_vm3, %v4061_v49, %v2980_v28 }
 0x25c   : > { %v3337_v8 = vperm.slane %v3331_v5, %v4644_v50  ;;  %v3219_v34 = vsel %vm331_vm3, %v6629_v61, %v4200_v22  ;;  %v6732_v7 = vperm.slane %v2981_v60, %v4644_v50  ;;  %v2869_v59 = vsel %vm331_vm3, %v4060_v44, %v2868_v2 }
 0x25d   : > { %v7539_v28 = vunpack.i.h.bf16 %v7522_v31  ;;  %v7540_v57 = vrot.slane %v6620_v4, 4  ;;  %v2916_v5 = vrot.slane %v6718_v11, 4  ;;  %v3220_v14 = vrot.slane %v4200_v22, 4 }
 0x25e   : > { %v3380_v61 = vrot.slane %v3337_v8, 4  ;;  %v3225_v60 = vperm.slane %v3219_v34, %v4644_v50  ;;  %v3028_v2 = vrot.slane %v6724_v15, 4  ;;  %v6747_v44 = vperm.slane %v2869_v59, %v4644_v50 }
 0x25f   : > { %v3333_v49 = vsel %vm331_vm3, %v7539_v28, %v3332_v37  ;;  %v3379_v18 = vsel %vm331_vm3, %v7540_v57, %v3337_v8  ;;  %v7542_v22 = vrot.slane %v6612_v25, 4 }
 0x260   : > { %v4214_v0 = vpop.permute.xlu0 %4213  ;;  %v6750_v37 = vperm.slane %v3379_v18, %v4685_v20  ;;  %v3381_v28 = vsel %vm331_vm3, %v6620_v4, %v3380_v61  ;;  %v6756_v57 = vperm.slane %v3333_v49, %v4644_v50  ;;  %v3268_v12 = vrot.slane %v3225_v60, 4 }
 0x261   : > { %v3267_v34 = vsel %vm331_vm3, %v7542_v22, %v3225_v60  ;;  %v4216_v32 = vunpack.i.h.bf16 %v4214_v0  ;;  %v4215_v59 = vunpack.i.l.bf16 %v4214_v0  ;;  %v3221_v4 = vsel %vm331_vm3, %v7544_v26, %v3220_v14 }
 0x262   : > { %7541 = vst [vmem:[#allocation42_spill] sm:$0xff] %v6750_v37  ;;  %v6762_v51 = vperm.slane %v3267_v34, %v4685_v20  ;;  %v3428_v18 = vrot.slane %v6750_v37, 4  ;;  %v3269_v49 = vsel %vm331_vm3, %v6612_v25, %v3268_v12  ;;  %v3389_v61 = vperm.slane %v3381_v28, %v4685_v20 }
 0x263   : > { %v2917_v22 = vsel %vm331_vm3, %v6662_v17, %v2916_v5  ;;  %v2955_v60 = vsel %vm331_vm3, %v2954_v53, %v4216_v32  ;;  %v2956_v0 = vrot.slane %v4216_v32, 4  ;;  %v2843_v34 = vsel %vm331_vm3, %v2842_v39, %v4215_v59 }
 0x264   : > { %7543 = vst [vmem:[#allocation34_spill] sm:$0xff] %v6762_v51  ;;  %v2844_v8 = vrot.slane %v4215_v59, 4  ;;  %v2961_v31 = vperm.slane %v2955_v60, %v4644_v50  ;;  %v2849_v26 = vperm.slane %v2843_v34, %v4644_v50  ;;  %v3316_v14 = vrot.slane %v6762_v51, 4 }
 0x265   : > { %v7545_v25 = vunpack.i.h.bf16 %v6646_v45  ;;  %v3429_v5 = vsel %vm331_vm3, %v6683_v23, %v3428_v18  ;;  %v3277_v32 = vperm.slane %v3269_v49, %v4685_v20  ;;  %v7546_v39 = vrot.slane %v6658_v27, 4 }
 0x266   : > { %v6790_v59 = vperm.slane %v3221_v4, %v4644_v50  ;;  %v3004_v60 = vrot.slane %v2961_v31, 4  ;;  %v2925_v34 = vperm.slane %v2917_v22, %v4685_v20  ;;  %v7547_v37 = vunpack.i.l.bf16 %v6646_v45 }
 0x267   : > { %v2957_v12 = vsel %vm331_vm3, %v7545_v25, %v2956_v0  ;;  %v3431_v53 = vsel %vm331_vm3, %v7546_v39, %v3389_v61  ;;  %v2892_v25 = vrot.slane %v2849_v26, 4  ;;  %v3317_v18 = vsel %vm331_vm3, %v6677_v21, %v3316_v14 }
 0x268   : > { %v2845_v0 = vsel %vm331_vm3, %v7547_v37, %v2844_v8  ;;  %v7548_v49 = vrot.slane %v6654_v6, 4  ;;  %v6802_v28 = vperm.slane %v2957_v12, %v4644_v50  ;;  %v2891_v4 = vsel %vm331_vm3, %v2890_v56, %v2849_v26 }
 0x269   : > { %v4217_v51 = vpack.i.bf16 %v3429_v5, %v3317_v18  ;;  %v3003_v22 = vsel %vm331_vm3, %v3002_v16, %v2961_v31  ;;  %v3320_v45 = vrot.slane %v3277_v32, 4  ;;  %v3432_v41 = vrot.slane %v3389_v61, 4 }
 0x26a   : > { %v3319_v39 = vsel %vm331_vm3, %v7548_v49, %v3277_v32  ;;  %v2893_v37 = vsel %vm331_vm3, %v6710_v9, %v2892_v25  ;;  %v2942_v14 = vrot.slane %v2925_v34, 4  ;;  %v3005_v12 = vsel %vm331_vm3, %v6701_v33, %v3004_v60 }
 0x26b   : > { %v4222_v23 = vpack.i.bf16 %v3431_v53, %v3319_v39  ;;  %4218 = vrot.lane.b32.xlu1 %v4217_v51, %s4439_s8  ;;  %v2901_v8 = vperm.slane %v2893_v37, %v4685_v20  ;;  %v3029_v56 = vsel %vm331_vm3, %v6668_v10, %v3028_v2  ;;  %v3321_v16 = vsel %vm331_vm3, %v6654_v6, %v3320_v45 }
 0x26c   : > { %v3433_v61 = vsel %vm331_vm3, %v6658_v27, %v3432_v41  ;;  %v3013_v9 = vperm.slane %v3005_v12, %v4685_v20  ;;  %v3037_v51 = vperm.slane %v3029_v56, %v4685_v20  ;;  %v6823_v26 = vperm.slane %v2891_v4, %v4685_v20 }
 0x26d   : > { %4223 = vrot.lane.b32.xlu2 %v4222_v23, %s4441_s10  ;;  %v4232_v23 = vpack.i.bf16 %v3433_v61, %v3321_v16  ;;  %v2943_v31 = vsel %vm331_vm3, %v2942_v14, %v2901_v8  ;;  %v7549_v33 = vrot.slane %v6662_v17, 4  ;;  %v6830_v6 = vperm.slane %v2845_v0, %v4644_v50 }
 0x26e   : > { %v3054_v5 = vrot.slane %v3037_v51, 4  ;;  %v6833_v41 = vperm.slane %v3003_v22, %v4685_v20  ;;  %v7550_v27 = vrot.slane %v6668_v10, 4  ;;  %v2940_v60 = vrot.slane %v6823_v26, 4 }
 0x26f   : > { %v2915_v2 = vsel %vm331_vm3, %v7549_v33, %v6718_v11  ;;  %v2944_v17 = vrot.slane %v2901_v8, 4  ;;  %v3056_v25 = vrot.slane %v3013_v9, 4  ;;  %v7551_v18 = vrot.slane %v6633_v1, 4 }
 0x270   : > { %v3027_v32 = vsel %vm331_vm3, %v7550_v27, %v6724_v15  ;;  %v6840_v53 = vperm.slane %v2915_v2, %v4685_v20  ;;  %v3055_v11 = vsel %vm331_vm3, %v3054_v5, %v3013_v9  ;;  %v3052_v0 = vrot.slane %v6833_v41, 4 }
 0x271   : > { %v6845_v50 = vperm.slane %v3027_v32, %v4685_v20  ;;  %v3279_v10 = vsel %vm331_vm3, %v7551_v18, %v6790_v59  ;;  %v3280_v15 = vrot.slane %v6790_v59, 4  ;;  %v4237_v49 = vpack.i.bf16 %v3055_v11, %v2943_v31 }
 0x272   : > { %v2941_v39 = vsel %vm331_vm3, %v6840_v53, %v2940_v60  ;;  %v2945_v4 = vsel %vm331_vm3, %v2925_v34, %v2944_v17  ;;  %v3057_v45 = vsel %vm331_vm3, %v3037_v51, %v3056_v25  ;;  %v3285_v37 = vperm.slane %v3279_v10, %v4685_v20 }
 0x273   : > { %v3053_v22 = vsel %vm331_vm3, %v6845_v50, %v3052_v0  ;;  %v7552_v8 = vrot.slane %v6563_v52, 4  ;;  %v3016_v59 = vrot.slane %v6802_v28, 4  ;;  %4233 = vrot.lane.b32.xlu1 %v4232_v23, %s4444_s19  ;;  %v4252_v34 = vpack.i.bf16 %v3057_v45, %v2945_v4 }
 0x274   : > { %v4227_v12 = vpack.i.bf16 %v3053_v22, %v2941_v39  ;;  %v7553_v16 = vrot.slane %v6640_v63, 4  ;;  %v7554_v9 = vrot.slane %v6568_v48, 4  ;;  %v7555_v31 = vrot.slane %v6715_v13, 4 }
 0x275   : > { %v3303_v14 = vsel %vm331_vm3, %v7552_v8, %v6604_v54  ;;  %4238 = vrot.lane.b32.xlu2 %v4237_v49, %s4441_s10  ;;  %v7556_v33 = vrot.slane %v6665_v35, 4  ;;  %v7557_v25 = vrot.slane %v6707_v62, 4  ;;  %v7558_v0 = vrot.slane %v6671_v3, 4 }
 0x276   : > { %v3309_v56 = vperm.slane %v3303_v14, %v4685_v20  ;;  %v3391_v61 = vsel %vm331_vm3, %v7553_v16, %v6756_v57  ;;  %v3415_v51 = vsel %vm331_vm3, %v7554_v9, %v6608_v58  ;;  %v2903_v23 = vsel %vm331_vm3, %v7555_v31, %v6830_v6  ;;  %4228 = vrot.lane.b32.xlu0 %v4227_v12, %s4439_s8 }
 0x277   : > { %v2927_v2 = vsel %vm331_vm3, %v7556_v33, %v6747_v44  ;;  %v3397_v27 = vperm.slane %v3391_v61, %v4685_v20  ;;  %v3421_v32 = vperm.slane %v3415_v51, %v4685_v20  ;;  %v2909_v60 = vperm.slane %v2903_v23, %v4685_v20 }
 0x278   : > { %v3322_v5 = vrot.slane %v3309_v56, 4  ;;  %v2933_v17 = vperm.slane %v2927_v2, %v4685_v20  ;;  %v3015_v11 = vsel %vm331_vm3, %v7557_v25, %v6802_v28  ;;  %v3039_v18 = vsel %vm331_vm3, %v7558_v0, %v6732_v7 }
 0x279   : > { %v3324_v10 = vrot.slane %v3285_v37, 4  ;;  %v3434_v39 = vrot.slane %v3421_v32, 4  ;;  %v3021_v4 = vperm.slane %v3015_v11, %v4685_v20  ;;  %v3045_v22 = vperm.slane %v3039_v18, %v4685_v20 }
 0x27a   : > { %v3323_v49 = vsel %vm331_vm3, %v3322_v5, %v3285_v37  ;;  %v2946_v45 = vrot.slane %v2933_v17, 4  ;;  %v3436_v14 = vrot.slane %v3397_v27, 4  ;;  %v2948_v12 = vrot.slane %v2909_v60, 4 }
 0x27b   : > { %v3325_v8 = vsel %vm331_vm3, %v3309_v56, %v3324_v10  ;;  %v3435_v16 = vsel %vm331_vm3, %v3434_v39, %v3397_v27  ;;  %v3058_v61 = vrot.slane %v3045_v22, 4  ;;  %v3060_v9 = vrot.slane %v3021_v4, 4  ;;  %v7566_v39 = vld [vmem:[#allocation36_spill] sm:$0xff] }
 0x27c   : > { %v3281_v51 = vsel %vm331_vm3, %v6633_v1, %v3280_v15  ;;  %v4242_v31 = vpack.i.bf16 %v3435_v16, %v3323_v49  ;;  %v2947_v37 = vsel %vm331_vm3, %v2946_v45, %v2909_v60  ;;  %v3437_v23 = vsel %vm331_vm3, %v3421_v32, %v3436_v14 }
 0x27d   : > { %v6907_v33 = vsel %vm331_vm3, %v2933_v17, %v2948_v12  ;;  %v2904_v2 = vrot.slane %v6830_v6, 4  ;;  %v7559_v56 = vpack.i.bf16 %v6334_v36, %v6321_v24  ;;  %4253 = vrot.lane.b32.xlu2 %v4252_v34, %s4444_s19  ;;  %v3059_v5 = vsel %vm331_vm3, %v3058_v61, %v3021_v4 }
 0x27e   : > { %v4257_v1 = vpack.i.bf16 %v3437_v23, %v3325_v8  ;;  %v3061_v15 = vsel %vm331_vm3, %v3045_v22, %v3060_v9  ;;  %v4267_v27 = vpack.i.bf16 %v3059_v5, %v2947_v37  ;;  %v3289_v60 = vperm.slane %v3281_v51, %v4685_v20  ;;  %4243 = vrot.lane.b32.xlu0 %v4242_v31, %s4440_s9 }
 0x27f   : > { %4248 = vrot.lane.b32.xlu1 %v7559_v56, %s4439_s8  ;;  %v4282_v32 = vpack.i.bf16 %v3061_v15, %v6907_v33  ;;  %v7560_v17 = vrot.slane %v6604_v54, 4  ;;  %v7561_v36 = vrot.slane %v6756_v57, 4  ;;  %v7562_v25 = vrot.slane %v6608_v58, 4  ;;  %v7564_v54 = vld [vmem:[#allocation35_spill] sm:$0xff] }
 0x280   : > { %v7563_v0 = vrot.slane %v6202_v46, 4  ;;  %v7565_v57 = vrot.slane %v7528_v43, 4  ;;  %v2905_v46 = vsel %vm331_vm3, %v6715_v13, %v2904_v2  ;;  %v7567_v61 = vrot.slane %v6747_v44, 4 }
 0x281   : > { %v3305_v6 = vsel %vm331_vm3, %v6563_v52, %v7560_v17  ;;  %v3393_v34 = vsel %vm331_vm3, %v6640_v63, %v7561_v36  ;;  %v3417_v11 = vsel %vm331_vm3, %v6568_v48, %v7562_v25  ;;  %v3328_v48 = vrot.slane %v3289_v60, 4 }
 0x282   : > { %v3313_v24 = vperm.slane %v3305_v6, %v4685_v20  ;;  %v2317_v18 = vsel %vm331_vm3, %v7564_v54, %v7563_v0  ;;  %v3401_v52 = vperm.slane %v3393_v34, %v4685_v20  ;;  %v3425_v10 = vperm.slane %v3417_v11, %v4685_v20 }
 0x283   : > { %v2325_v49 = vperm.slane %v2317_v18, %v4685_v20  ;;  %v2341_v63 = vsel %vm331_vm3, %v7566_v39, %v7565_v57  ;;  %v2913_v14 = vperm.slane %v2905_v46, %v4685_v20  ;;  %v2929_v9 = vsel %vm331_vm3, %v6665_v35, %v7567_v61  ;;  %v7575_v46 = vld [vmem:[#allocation10_spill] sm:$0xff] }
 0x284   : > { %v3326_v58 = vrot.slane %v3313_v24, 4  ;;  %v2349_v4 = vperm.slane %v2341_v63, %v4685_v20  ;;  %v3438_v22 = vrot.slane %v3425_v10, 4  ;;  %v3440_v45 = vrot.slane %v3401_v52, 4 }
 0x285   : > { %v2368_v8 = vrot.slane %v2325_v49, 4  ;;  %v3329_v43 = vsel %vm331_vm3, %v3313_v24, %v3328_v48  ;;  %v2937_v37 = vperm.slane %v2929_v9, %v4685_v20  ;;  %v7568_v23 = vpack.i.bf16 %v6388_v38, %v6370_v55  ;;  %4268 = vrot.lane.b32.xlu2 %v4267_v27, %s4440_s9 }
 0x286   : > { %v3327_v12 = vsel %vm331_vm3, %v3326_v58, %v3289_v60  ;;  %v2366_v16 = vrot.slane %v2349_v4, 4  ;;  %v3439_v51 = vsel %vm331_vm3, %v3438_v22, %v3401_v52  ;;  %v3441_v31 = vsel %vm331_vm3, %v3425_v10, %v3440_v45  ;;  %4258 = vrot.lane.b32.xlu0 %v4257_v1, %s4443_s17  ;;  %v7577_v22 = vld [vmem:[#allocation21_spill] sm:$0xff] }
 0x287   : > { %v2369_v13 = vsel %vm331_vm3, %v2349_v4, %v2368_v8  ;;  %4263 = vrot.lane.b32.xlu1 %v7568_v23, %s4441_s10  ;;  %v4272_v33 = vpack.i.bf16 %v3439_v51, %v3327_v12  ;;  %v4287_v2 = vpack.i.bf16 %v3441_v31, %v3329_v43  ;;  %v2952_v35 = vrot.slane %v2913_v14, 4  ;;  %v7573_v4 = vld [vmem:[#allocation24_spill] sm:$0xff]  ;;  %v7581_v23 = vld [vmem:[#allocation26_spill] sm:$0xff] }
 0x288   : > { %v2367_v44 = vsel %vm331_vm3, %v2366_v16, %v2325_v49  ;;  %v2950_v56 = vrot.slane %v2937_v37, 4  ;;  %v3017_v5 = vsel %vm331_vm3, %v6707_v62, %v3016_v59  ;;  %v7569_v15 = vrot.slane %v6732_v7, 4  ;;  %v7579_v16 = vld [vmem:[#allocation23_spill] sm:$0xff]  ;;  %v7580_v51 = vld [vmem:[#allocation28_spill] sm:$0xff] }
 0x289   : > { %v7570_v55 = vrot.slane %v6580_v47, 4  ;;  %v3025_v27 = vperm.slane %v3017_v5, %v4685_v20  ;;  %v7571_v28 = vrot.slane %v6572_v19, 4  ;;  %v2953_v59 = vsel %vm331_vm3, %v2937_v37, %v2952_v35  ;;  %v7583_v35 = vld [vmem:[#allocation11_spill] sm:$0xff] }
 0x28a   : > { %v3041_v60 = vsel %vm331_vm3, %v6671_v3, %v7569_v15  ;;  %v2951_v7 = vsel %vm331_vm3, %v2950_v56, %v2913_v14  ;;  %v2352_v6 = vrot.slane %v6616_v42, 4  ;;  %v2328_v25 = vrot.slane %v6588_v30, 4  ;;  %v7578_v14 = vld [vmem:[#allocation16_spill] sm:$0xff] }
 0x28b   : > { %v2327_v38 = vsel %vm331_vm3, %v7570_v55, %v6588_v30  ;;  %v3049_v17 = vperm.slane %v3041_v60, %v4685_v20  ;;  %v2351_v62 = vsel %vm331_vm3, %v7571_v28, %v6616_v42  ;;  %v3064_v36 = vrot.slane %v3025_v27, 4 }
 0x28c   : > { %v2357_v3 = vperm.slane %v2351_v62, %v4685_v20  ;;  %v2333_v1 = vperm.slane %v2327_v38, %v4685_v20  ;;  %v7572_v10 = vpack.i.bf16 %v6376_v29, %v6373_v40  ;;  %v2329_v42 = vsel %vm331_vm3, %v6580_v47, %v2328_v25  ;;  %v7586_v38 = vld [vmem:[#allocation49_spill] sm:$0xff] }
 0x28d   : > { %v3062_v24 = vrot.slane %v3049_v17, 4  ;;  %v3065_v0 = vsel %vm331_vm3, %v3049_v17, %v3064_v36  ;;  %4283 = vrot.lane.b32.xlu2 %v4282_v32, %s4443_s17  ;;  %v2353_v30 = vsel %vm331_vm3, %v6572_v19, %v2352_v6  ;;  %v2337_v57 = vperm.slane %v2329_v42, %v4685_v20  ;;  %v7574_v19 = vld [vmem:[#allocation47_spill] sm:$0xff]  ;;  %v7588_v17 = vld [vmem:[#allocation25_spill] sm:$0xff] }
 0x28e   : > { %v2370_v34 = vrot.slane %v2357_v3, 4  ;;  %v4307_v52 = vpack.i.bf16 %v3065_v0, %v2953_v59  ;;  %v2372_v49 = vrot.slane %v2333_v1, 4  ;;  %v2361_v39 = vperm.slane %v2353_v30, %v4685_v20  ;;  %4273 = vrot.lane.b32.xlu0 %v4272_v33, %s4445_s20  ;;  %v7590_v59 = vld [vmem:[#allocation31_spill] sm:$0xff] }
 0x28f   : > { %v3063_v11 = vsel %vm331_vm3, %v3062_v24, %v3025_v27  ;;  %4278 = vrot.lane.b32.xlu1 %v7572_v10, %s4444_s19  ;;  %v2376_v40 = vrot.slane %v2337_v57, 4  ;;  %v3936_v47 = vunpack.i.h.bf16 %v7573_v4  ;;  %v3935_v48 = vunpack.i.l.bf16 %v7573_v4  ;;  %v7591_v24 = vld [vmem:[#allocation22_spill] sm:$0xff]  ;;  %v7593_v0 = vld [vmem:[#allocation51_spill] sm:$0xff] }
 0x290   : > { %v4297_v54 = vpack.i.bf16 %v3063_v11, %v2951_v7  ;;  %v2371_v18 = vsel %vm331_vm3, %v2370_v34, %v2333_v1  ;;  %v2373_v63 = vsel %vm331_vm3, %v2357_v3, %v2372_v49  ;;  %v2374_v58 = vrot.slane %v2361_v39, 4  ;;  %v7589_v7 = vld [vmem:[#allocation30_spill] sm:$0xff]  ;;  %v7592_v34 = vld [vmem:[#allocation29_spill] sm:$0xff] }
 0x291   : > { %v2377_v32 = vsel %vm331_vm3, %v2361_v39, %v2376_v40  ;;  %v7576_v20 = vpack.i.bf16 %v7574_v19, %v7575_v46  ;;  %v3941_v45 = vunpack.i.h.bf16 %v7577_v22  ;;  %v3940_v8 = vunpack.i.l.bf16 %v7577_v22  ;;  %v7598_v22 = vld [vmem:[#allocation18_spill] sm:$0xff] }
 0x292   : > { %v2375_v29 = vsel %vm331_vm3, %v2374_v58, %v2337_v57  ;;  %v618_v12 = vsel %vm617_vm7, %v7578_v14, %v3935_v48  ;;  %v628_v43 = vsel %vm617_vm7, %v7579_v16, %v3936_v47  ;;  %v3946_v31 = vunpack.i.h.bf16 %v7580_v51  ;;  %v7597_v48 = vld [vmem:[#allocation14_spill] sm:$0xff] }
 0x293   : > { %v620_v61 = vsel %vm619_vm8, %v618_v12, %v3940_v8  ;;  %v629_v9 = vsel %vm619_vm8, %v628_v43, %v3941_v45  ;;  %v3945_v37 = vunpack.i.l.bf16 %v7580_v51  ;;  %v3951_v33 = vunpack.i.h.bf16 %v7581_v23  ;;  %v7599_v8 = vld [vmem:[#allocation17_spill] sm:$0xff]  ;;  %v7600_v12 = vld [vmem:[#allocation15_spill] sm:$0xff] }
 0x294   : > { %v630_v15 = vsel %vm621_vm9, %v629_v9, %v3946_v31  ;;  %v3971_v28 = vunpack.i.h.bf16 %v7588_v17  ;;  %v3970_v62 = vunpack.i.l.bf16 %v7588_v17  ;;  %v3976_v1 = vunpack.i.h.bf16 %v7591_v24 }
 0x295   : > { %4293 = vrot.lane.b32.xlu2 %v7576_v20, %s4440_s9  ;;  %v622_v5 = vsel %vm621_vm9, %v620_v61, %v3945_v37  ;;  %v7039_v55 = vsel %vm623_vm10, %v630_v15, %v3951_v33  ;;  %v3975_v36 = vunpack.i.l.bf16 %v7591_v24  ;;  %v4006_v25 = vunpack.i.h.bf16 %v7592_v34  ;;  %v7601_v61 = vld [vmem:[#allocation13_spill] sm:$0xff]  ;;  %v7602_v15 = vld [vmem:[#allocation12_spill] sm:$0xff] }
 0x296   : > { %4288 = vrot.lane.b32.xlu0 %v4287_v2, %s4442_s11  ;;  %v7582_v2 = vld [vmem:[#allocation46_spill] sm:$0xff]  ;;  %v1685_v3 = vsel %vm617_vm7, %v7589_v7, %v3970_v62  ;;  %v1692_v6 = vsel %vm617_vm7, %v7590_v59, %v3971_v28  ;;  %v4005_v11 = vunpack.i.l.bf16 %v7592_v34  ;;  %v4096_v19 = vunpack.i.h.bf16 %v7597_v48  ;;  %v7603_v62 = vld [vmem:[#allocation55_spill] sm:$0xff] }
 0x297   : > { %2411 = vrot.lane.b32.xlu1 %v2367_v44, %s4441_s10  ;;  %v3950_v44 = vunpack.i.l.bf16 %v7581_v23  ;;  %v7584_v56 = vpack.i.bf16 %v7582_v2, %v7583_v35  ;;  %v1686_v30 = vsel %vm619_vm8, %v1685_v3, %v3975_v36  ;;  %v1693_v49 = vsel %vm619_vm8, %v1692_v6, %v3976_v1  ;;  %v7604_v6 = vld [vmem:[#allocation38_spill] sm:$0xff]  ;;  %v7605_v36 = vld [vmem:[#allocation59_spill] sm:$0xff] }
 0x298   : > { %v1687_v57 = vsel %vm621_vm9, %v1686_v30, %v4005_v11  ;;  %v1694_v39 = vsel %vm621_vm9, %v1693_v49, %v4006_v25  ;;  %v1005_v14 = vsel %vm619_vm8, %v7599_v8, %v4096_v19  ;;  %v4101_v16 = vunpack.i.h.bf16 %v7600_v12  ;;  %v7606_v11 = vld [vmem:[#allocation60_spill] sm:$0xff]  ;;  %v7612_v19 = vld [vmem:[#allocation63_spill] sm:$0xff] }
 0x299   : > { %v7036_v60 = vsel %vm623_vm10, %v622_v5, %v3950_v44  ;;  %v4106_v9 = vunpack.i.h.bf16 %v7601_v61  ;;  %v4105_v51 = vunpack.i.l.bf16 %v7601_v61  ;;  %v4136_v7 = vunpack.i.h.bf16 %v7603_v62 }
 0x29a   : > { %v1006_v37 = vsel %vm621_vm9, %v1005_v14, %v4101_v16  ;;  %v4135_v3 = vunpack.i.l.bf16 %v7603_v62  ;;  %v3314_v59 = vrot.slane %v6677_v21, 4  ;;  %v3426_v24 = vrot.slane %v7604_v6, 4  ;;  %v7610_v21 = vld [vmem:[#allocation53_spill] sm:$0xff] }
 0x29b   : > { %v7100_v2 = vsel %vm623_vm10, %v1006_v37, %v4106_v9  ;;  %v4161_v34 = vunpack.i.h.bf16 %v7605_v36  ;;  %v4160_v25 = vunpack.i.l.bf16 %v7605_v36 }
 0x29d   : > { %4303 = vrot.lane.b32.xlu2 %v7584_v56, %s4443_s17 }
 0x29e   : > { %4298 = vrot.lane.b32.xlu0 %v4297_v54, %s4445_s20  ;;  %v7594_v54 = vld [vmem:[#allocation48_spill] sm:$0xff] }
 0x29f   : > { %2415 = vrot.lane.b32.xlu1 %v2369_v13, %s4444_s19  ;;  %v7585_v13 = vld [vmem:[#allocation52_spill] sm:$0xff] }
 0x2a0   : > { %v7587_v27 = vpack.i.bf16 %v7585_v13, %v7586_v38  ;;  %v4131_v13 = vunpack.i.h.bf16 %v7602_v15  ;;  %v4130_v38 = vunpack.i.l.bf16 %v7602_v15 }
 0x2a5   : > { %4313 = vrot.lane.b32.xlu2 %v7587_v27, %s4445_s20 }
 0x2a6   : > { %4308 = vrot.lane.b32.xlu0 %v4307_v52, %s4442_s11  ;;  %v7596_v52 = vld [vmem:[#allocation27_spill] sm:$0xff] }
 0x2a7   : > { %2419 = vrot.lane.b32.xlu1 %v2371_v18, %s4440_s9  ;;  %v7595_v18 = vpack.i.bf16 %v7593_v0, %v7594_v54  ;;  %v4011_v10 = vunpack.i.h.bf16 %v7596_v52  ;;  %v4010_v42 = vunpack.i.l.bf16 %v7596_v52  ;;  %v4175_v0 = vunpack.i.l.bf16 %v7606_v11  ;;  %v7607_v54 = vld [vmem:[#allocation56_spill] sm:$0xff]  ;;  %v7608_v52 = vld [vmem:[#allocation42_spill] sm:$0xff]  ;;  %s190_s9 = scalar_lea.vmem [#allocation7], %s3704_s23 }
 0x2a8   : > { %s3620_s19 = sshll.u32 %s190_s9, 4  ;;  %s3621_s19 = int_to_ptr.vmem [resolvable:$true] %s3620_s19 }
 0x2a9   : > { %v7070_v58 = vsel %vm623_vm10, %v1687_v57, %v4010_v42  ;;  %v7073_v40 = vsel %vm623_vm10, %v1694_v39, %v4011_v10  ;;  %v3427_v10 = vsel %vm331_vm3, %v3426_v24, %v7608_v52  ;;  %v7609_v42 = vld [vmem:[#allocation34_spill] sm:$0xff]  ;;  %v1374_v57 = vsel %vm619_vm8, %v7610_v21, %v4130_v38 }
 0x2aa   : > { %v3315_v30 = vsel %vm331_vm3, %v3314_v59, %v7609_v42  ;;  %v7611_v39 = vld [vmem:[#allocation54_spill] sm:$0xff] }
 0x2ad   : > { %2427 = vrot.lane.b32.xlu2 %v2375_v29, %s4445_s20 }
 0x2ae   : > { %2423 = vrot.lane.b32.xlu0 %v2373_v63, %s4443_s17  ;;  %v4095_v63 = vunpack.i.l.bf16 %v7597_v48  ;;  %v4140_v48 = vunpack.i.l.bf16 %v7607_v54  ;;  %s3619_s17 = scalar_lea.hbm %s7320_s3, %s3715_s7 }
 0x2af   : > { %4318 = vrot.lane.b32.xlu1 %v7595_v18, %s4442_s11  ;;  %v4141_v18 = vunpack.i.h.bf16 %v7607_v54  ;;  %s3622_s20 = sshll.u32 %s3619_s17, 4  ;;  %s3623_s20 = int_to_ptr.hbm [resolvable:$true] %s3622_s20 }
 0x2b0   : > { %v998_v45 = vsel %vm619_vm8, %v7598_v22, %v4095_v63  ;;  %v4166_v63 = vunpack.i.h.bf16 %v7612_v19  ;;  %s4377_s22 = sshra.s32 %s3623_s20, 4  ;;  %s4378_s22 = int_to_ptr.hbm [resolvable:$true] %s4377_s22 }
 0x2b1   : > { %s4379_s27 = scalar_lea.hbm %s4378_s22, 32  ;;  %p4384_p0 = scmp.lt.s32.totalorder %s4378_s22, %s7320_s3 }
 0x2b2   : > { %p4380_p6 = scmp.ne.s32.totalorder %s4378_s22, %s4379_s27  ;;  %p4385_p1 = scmp.lt.s32.totalorder %s4383_s30, %s4379_s27 }
 0x2b4   : > { %p4381_p9 = pnand %p4380_p6, %p4518_p11  ;;  %p4386_p3 = por %p4385_p1, %p4384_p0 }
 0x2b6   : > { %2431 = vrot.lane.b32.xlu0 %v2377_v32, %s4442_s11  ;;  %v4100_v32 = vunpack.i.l.bf16 %v7600_v12  ;;  %v1375_v12 = vsel %vm621_vm9, %v1374_v57, %v4135_v3  ;;  %p4382_p13 = pneg %p4381_p9 }
 0x2b8   : > { %v999_v31 = vsel %vm621_vm9, %v998_v45, %v4100_v32  ;;  %v4165_v32 = vunpack.i.l.bf16 %v7612_v19  ;;  %p4387_p4 = pnand %p4386_p3, %p4382_p13 }
 0x2b9   : > { %v7097_v44 = vsel %vm623_vm10, %v999_v31, %v4105_v51  ;;  %v7613_v31 = vld [vmem:[#allocation62_spill] sm:$0xff] }
 0x2ba   : > { %v4171_v37 = vunpack.i.h.bf16 %v7613_v31  ;;  %v4170_v15 = vunpack.i.l.bf16 %v7613_v31 }
 0x2c7   : > { %v4224_v29 = vpop.permute.xlu2 %4223 }
 0x2c8   : > { %v4226_v61 = vunpack.i.h.bf16 %v4224_v29  ;;  %v4225_v9 = vunpack.i.l.bf16 %v4224_v29 }
 0x2cf   : > { %v7076_v47 = vpop.permute.xlu2 %4238 }
 0x2d7   : > { %v7088_v43 = vpop.permute.xlu2 %4253 }
 0x2dd   : > { %v4219_v4 = vpop.permute.xlu1 %4218 }
 0x2de   : > { %v4221_v27 = vunpack.i.h.bf16 %v4219_v4  ;;  %v4220_v17 = vunpack.i.l.bf16 %v4219_v4  ;;  %v1381_v4 = vsel %vm619_vm8, %v7611_v39, %v4131_v13 }
 0x2df   : > { %v7102_v35 = vpop.permute.xlu2 %4268  ;;  %v1382_v16 = vsel %vm621_vm9, %v1381_v4, %v4136_v7 }
 0x2e0   : > { %v3505_v22 = vsel %vm611_vm4, %v3427_v10, %v4221_v27  ;;  %v3498_v45 = vsel %vm611_vm4, %v3315_v30, %v4220_v17  ;;  %v2938_v27 = vrot.slane %v6840_v53, 4  ;;  %v7149_v53 = vsel %vm623_vm10, %v1375_v12, %v4140_v48  ;;  %v7614_v30 = vld [vmem:[#allocation57_spill] sm:$0xff] }
 0x2e1   : > { %v3499_v17 = vsel %vm613_vm5, %v3498_v45, %v4225_v9  ;;  %v7152_v54 = vsel %vm623_vm10, %v1382_v16, %v4141_v18  ;;  %v3050_v48 = vrot.slane %v6845_v50, 4  ;;  %v4176_v12 = vunpack.i.h.bf16 %v7606_v11  ;;  %v7616_v9 = vld [vmem:[#allocation19_spill] sm:$0xff] }
 0x2e2   : > { %v2939_v16 = vsel %vm331_vm3, %v2938_v27, %v6823_v26  ;;  %v2562_v11 = vrot.slane %v7616_v9, 4  ;;  %v4256_v27 = vunpack.i.h.bf16 %v7088_v43 }
 0x2e3   : > { %v3051_v50 = vsel %vm331_vm3, %v3050_v48, %v6833_v41  ;;  %v4240_v41 = vunpack.i.l.bf16 %v7076_v47 }
 0x2e5   : > { %v4234_v46 = vpop.permute.xlu1 %4233 }
 0x2e6   : > { %v4236_v8 = vunpack.i.h.bf16 %v4234_v46  ;;  %v4235_v14 = vunpack.i.l.bf16 %v4234_v46  ;;  %v3506_v46 = vsel %vm613_vm5, %v3505_v22, %v4226_v61 }
 0x2e7   : > { %v7108_v28 = vpop.permute.xlu2 %4283 }
 0x2e8   : > { %v7080_v20 = vpop.permute.xlu0 %4228  ;;  %v3500_v7 = vsel %vm615_vm6, %v3499_v17, %v4235_v14  ;;  %v3507_v3 = vsel %vm615_vm6, %v3506_v46, %v4236_v8  ;;  %v7615_v8 = vld [vmem:[#allocation58_spill] sm:$0xff]  ;;  %v4255_v17 = vunpack.i.l.bf16 %v7088_v43  ;;  %v4270_v43 = vunpack.i.l.bf16 %v7102_v35 }
 0x2e9   : > { %v4231_v24 = vunpack.i.h.bf16 %v7080_v20  ;;  %v2068_v14 = vsel %vm617_vm7, %v7615_v8, %v4161_v34  ;;  %v4286_v48 = vunpack.i.h.bf16 %v7108_v28 }
 0x2eb   : > { %v3129_v61 = vsel %vm611_vm4, %v3051_v50, %v4231_v24 }
 0x2ef   : > { %v7145_v36 = vpop.permute.xlu2 %4293 }
 0x2f0   : > { %v4244_v33 = vpop.permute.xlu0 %4243 }
 0x2f1   : > { %v7094_v23 = vpop.permute.xlu1 %4248  ;;  %v4245_v51 = vunpack.i.l.bf16 %v4244_v33  ;;  %v4246_v13 = vunpack.i.h.bf16 %v4244_v33 }
 0x2f3   : > { %v3501_v33 = vsel %vm617_vm7, %v3500_v7, %v4245_v51  ;;  %v3508_v52 = vsel %vm617_vm7, %v3507_v3, %v4246_v13  ;;  %v4241_v51 = vunpack.i.h.bf16 %v7076_v47  ;;  %v4251_v13 = vunpack.i.h.bf16 %v7094_v23  ;;  %v7617_v7 = vld [vmem:[#allocation20_spill] sm:$0xff] }
 0x2f4   : > { %v2563_v3 = vsel %vm331_vm3, %v2562_v11, %v7617_v7  ;;  %v7621_v7 = vld [vmem:[#allocation40_spill] sm:$0xff] }
 0x2f8   : > { %v4259_v5 = vpop.permute.xlu0 %4258 }
 0x2f9   : > { %v7104_v56 = vpop.permute.xlu1 %4263  ;;  %v4260_v38 = vunpack.i.l.bf16 %v4259_v5  ;;  %v4261_v62 = vunpack.i.h.bf16 %v4259_v5  ;;  %v4230_v5 = vunpack.i.l.bf16 %v7080_v20 }
 0x2fa   : > { %v4266_v47 = vunpack.i.h.bf16 %v7104_v56  ;;  %v4265_v46 = vunpack.i.l.bf16 %v7104_v56 }
 0x2fb   : > { %v3502_v42 = vsel %vm619_vm8, %v3501_v33, %v4260_v38  ;;  %v3509_v39 = vsel %vm619_vm8, %v3508_v52, %v4261_v62  ;;  %v4250_v38 = vunpack.i.l.bf16 %v7094_v23  ;;  %v4304_v62 = vpop.permute.xlu2 %4303  ;;  %v4271_v33 = vunpack.i.h.bf16 %v7102_v35 }
 0x2fc   : > { %v4305_v9 = vunpack.i.l.bf16 %v4304_v62 }
 0x2fd   : > { %v2746_v56 = vsel %vm611_vm4, %v2563_v3, %v4250_v38 }
 0x300   : > { %v4274_v49 = vpop.permute.xlu0 %4273 }
 0x301   : > { %v7114_v1 = vpop.permute.xlu1 %4278  ;;  %v4276_v59 = vunpack.i.h.bf16 %v4274_v49  ;;  %v4275_v29 = vunpack.i.l.bf16 %v4274_v49  ;;  %v2061_v49 = vsel %vm617_vm7, %v7614_v30, %v4160_v25  ;;  %v3535_v30 = vld [vmem:[%s7319_s2 + $0x8] sm:$0xff] }
 0x302   : > { %v2062_v4 = vsel %vm619_vm8, %v2061_v49, %v4165_v32  ;;  %v2069_v32 = vsel %vm619_vm8, %v2068_v14, %v4166_v63  ;;  %v3130_v63 = vsel %vm613_vm5, %v3129_v61, %v4241_v51 }
 0x303   : > { %v3503_v18 = vsel %vm621_vm9, %v3502_v42, %v4275_v29  ;;  %v3510_v20 = vsel %vm621_vm9, %v3509_v39, %v4276_v59  ;;  %v2063_v19 = vsel %vm621_vm9, %v2062_v4, %v4170_v15  ;;  %v2070_v34 = vsel %vm621_vm9, %v2069_v32, %v4171_v37  ;;  %v4314_v11 = vpop.permute.xlu2 %4313 }
 0x304   : > { %v7168_v25 = vsel %vm623_vm10, %v2063_v19, %v4175_v0  ;;  %v3122_v0 = vsel %vm611_vm4, %v2939_v16, %v4230_v5  ;;  %v7187_v26 = vsel %vm623_vm10, %v2070_v34, %v4176_v12  ;;  %v4281_v59 = vunpack.i.h.bf16 %v7114_v1  ;;  %v7618_v5 = vld [vmem:[#allocation50_spill] sm:$0xff] }
 0x305   : > { %v3123_v15 = vsel %vm613_vm5, %v3122_v0, %v4240_v41  ;;  %v4280_v29 = vunpack.i.l.bf16 %v7114_v1  ;;  %v3131_v23 = vsel %vm615_vm6, %v3130_v63, %v4256_v27  ;;  %v2753_v52 = vsel %vm611_vm4, %v7618_v5, %v4251_v13  ;;  %v3534_v1 = vld [vmem:[%s7319_s2] sm:$0xff]  ;;  %v7619_v41 = vld [vmem:[#allocation41_spill] sm:$0xff] }
 0x306   : > { %v3124_v24 = vsel %vm615_vm6, %v3123_v15, %v4255_v17  ;;  %v2754_v42 = vsel %vm613_vm5, %v2753_v52, %v4266_v47  ;;  %v3132_v39 = vsel %vm617_vm7, %v3131_v23, %v4271_v33  ;;  %v4446_v4 = vmov 0   ;;  %v7620_v15 = vld [vmem:[#allocation61_spill] sm:$0xff]  ;;  %v7622_v23 = vld [vmem:[#allocation32_spill] sm:$0xff] }
 0x307   : > { %4322 = vset.pattern.permute.xlu1 %v4446_v4  ;;  %4323 = vset.pattern.permute.xlu2 %v4446_v4  ;;  %v2755_v19 = vsel %vm615_vm6, %v2754_v42, %v4281_v59  ;;  %v3133_v16 = vsel %vm619_vm8, %v3132_v39, %v4286_v48  ;;  %v4306_v34 = vunpack.i.h.bf16 %v4304_v62  ;;  %v2362_v63 = vrot.slane %v7619_v41, 4  ;;  %v7623_v33 = vld [vmem:[#allocation33_spill] sm:$0xff] }
 0x308   : > { %v4289_v10 = vpop.permute.xlu0 %4288  ;;  %3538 = vperm.xlu1 %4322, %v3534_v1   ;;  %3543 = vperm.xlu2 %4323, %v3535_v30   ;;  %v4181_v13 = vunpack.i.h.bf16 %v7620_v15  ;;  %v4316_v27 = vunpack.i.h.bf16 %v4314_v11  ;;  %v4315_v17 = vunpack.i.l.bf16 %v4314_v11  ;;  %v7624_v1 = vld [vmem:[#allocation64_spill] sm:$0xff] }
 0x309   : > { %v7142_v6 = vpop.permute.xlu1 %2411  ;;  %v4291_v21 = vunpack.i.h.bf16 %v4289_v10  ;;  %v4290_v57 = vunpack.i.l.bf16 %v4289_v10  ;;  %v2747_v10 = vsel %vm613_vm5, %v2746_v56, %v4265_v46  ;;  %4324 = vset.pattern.permute.xlu0 %v4446_v4  ;;  %v2363_v3 = vsel %vm331_vm3, %v2362_v63, %v7621_v7 }
 0x30a   : > { %v2441_v5 = vsel %vm611_vm4, %v2363_v3, %v4181_v13 }
 0x30b   : > { %v3504_v22 = vsel %vm623_vm10, %v3503_v18, %v4290_v57  ;;  %v3511_v45 = vsel %vm623_vm10, %v3510_v20, %v4291_v21  ;;  %v3125_v57 = vsel %vm617_vm7, %v3124_v24, %v4270_v43  ;;  %v4285_v18 = vunpack.i.l.bf16 %v7108_v28 }
 0x30c   : > { %3560 = vmatpush.msra.mxu0 %v3504_v22  ;;  %3716 = vmatpush.msra.mxu2 %v3504_v22  ;;  %v2748_v20 = vsel %vm615_vm6, %v2747_v10, %v4280_v29  ;;  %v4296_v22 = vunpack.i.h.bf16 %v7145_v36  ;;  %v2439_v43 = vsel %vm621_vm9, %v7623_v33, %v7622_v23  ;;  %v2442_v10 = vsel %vm613_vm5, %v2441_v5, %v7142_v6  ;;  %v2428_v6 = vpop.permute.xlu2 %2427 }
 0x30d   : > { %3583 = vmatpush.msra.mxu1 %v3511_v45  ;;  %3725 = vmatpush.msra.mxu3 %v3511_v45  ;;  %v4295_v45 = vunpack.i.l.bf16 %v7145_v36  ;;  %v3126_v50 = vsel %vm619_vm8, %v3125_v57, %v4285_v18  ;;  %v2440_v30 = vsel %vm623_vm10, %v2439_v43, %v7624_v1 }
 0x30e   : > { %v2756_v0 = vsel %vm617_vm7, %v2755_v19, %v4296_v22 }
 0x30f   : > { %v2749_v61 = vsel %vm617_vm7, %v2748_v20, %v4295_v45 }
 0x310   : > { %v4299_v37 = vpop.permute.xlu0 %4298  ;;  %v2750_v38 = vsel %vm619_vm8, %v2749_v61, %v4305_v9 }
 0x311   : > { %v7184_v31 = vpop.permute.xlu1 %2415  ;;  %v4301_v49 = vunpack.i.h.bf16 %v4299_v37  ;;  %v4300_v21 = vunpack.i.l.bf16 %v4299_v37  ;;  %v2757_v37 = vsel %vm619_vm8, %v2756_v0, %v4306_v34  ;;  %v2751_v29 = vsel %vm621_vm9, %v2750_v38, %v4315_v17 }
 0x312   : > { %v2758_v24 = vsel %vm621_vm9, %v2757_v37, %v4316_v27  ;;  %v2443_v42 = vsel %vm615_vm6, %v2442_v10, %v7184_v31 }
 0x313   : > { %v3127_v28 = vsel %vm621_vm9, %v3126_v50, %v4300_v21  ;;  %v3134_v32 = vsel %vm621_vm9, %v3133_v16, %v4301_v49 }
 0x318   : > { %v4309_v8 = vpop.permute.xlu0 %4308 }
 0x319   : > { %v2420_v35 = vpop.permute.xlu1 %2419  ;;  %v4311_v14 = vunpack.i.h.bf16 %v4309_v8  ;;  %v4310_v12 = vunpack.i.l.bf16 %v4309_v8 }
 0x31a   : > { %v2444_v49 = vsel %vm617_vm7, %v2443_v42, %v2420_v35 }
 0x31b   : > { %v3128_v36 = vsel %vm623_vm10, %v3127_v28, %v4310_v12  ;;  %v3135_v51 = vsel %vm623_vm10, %v3134_v32, %v4311_v14 }
 0x31c   : > { %3561 = vmatpush.msra.mxu0 %v3128_v36  ;;  %3717 = vmatpush.msra.mxu2 %v3128_v36 }
 0x31d   : > { %3584 = vmatpush.msra.mxu1 %v3135_v51  ;;  %3726 = vmatpush.msra.mxu3 %v3135_v51 }
 0x320   : > { %v2424_v59 = vpop.permute.xlu0 %2423 }
 0x321   : > { %v4319_v47 = vpop.permute.xlu1 %4318  ;;  %v2445_v21 = vsel %vm619_vm8, %v2444_v49, %v2424_v59 }
 0x322   : > { %v4321_v46 = vunpack.i.h.bf16 %v4319_v47  ;;  %v4320_v62 = vunpack.i.l.bf16 %v4319_v47  ;;  %v2446_v31 = vsel %vm621_vm9, %v2445_v21, %v2428_v6 }
 0x324   : > { %v2752_v52 = vsel %vm623_vm10, %v2751_v29, %v4320_v62  ;;  %v2759_v56 = vsel %vm623_vm10, %v2758_v24, %v4321_v46 }
 0x325   : > { %3562 = vmatpush.msra.mxu0 %v2752_v52  ;;  %3718 = vmatpush.msra.mxu2 %v2752_v52 }
 0x326   : > { %3585 = vmatpush.msra.mxu1 %v2759_v56  ;;  %3727 = vmatpush.msra.mxu3 %v2759_v56 }
 0x327   : > { %3563 = vmatpush.msra.mxu0 %v2440_v30  ;;  %3719 = vmatpush.msra.mxu2 %v2440_v30 }
 0x328   : > { %v2432_v57 = vpop.permute.xlu0 %2431 }
 0x329   : > { %3564 = vmatpush.msra.mxu0 %v7168_v25  ;;  %3720 = vmatpush.msra.mxu2 %v7168_v25  ;;  %v2447_v39 = vsel %vm623_vm10, %v2446_v31, %v2432_v57 }
 0x32a   : > { %3586 = vmatpush.msra.mxu1 %v2447_v39  ;;  %3728 = vmatpush.msra.mxu3 %v2447_v39 }
 0x32b   : > { %3565 = vmatpush.msra.mxu0 %v7070_v58  ;;  %3721 = vmatpush.msra.mxu2 %v7070_v58  ;;  %v3515_v58 = vld [vmem:[%s7318_s1 + $0x8] sm:$0xff] }
 0x32c   : > { %3587 = vmatpush.msra.mxu1 %v7187_v26  ;;  %3729 = vmatpush.msra.mxu3 %v7187_v26 }
 0x32d   : > { %3566 = vmatpush.msra.mxu0 %v7149_v53  ;;  %3722 = vmatpush.msra.mxu2 %v7149_v53  ;;  %v3514_v53 = vld [vmem:[%s7318_s1] sm:$0xff] }
 0x32e   : > { %3588 = vmatpush.msra.mxu1 %v7073_v40  ;;  %3730 = vmatpush.msra.mxu3 %v7073_v40 }
 0x32f   : > { %3567 = vmatpush.msra.mxu0 %v7097_v44  ;;  %3723 = vmatpush.msra.mxu2 %v7097_v44 }
 0x330   : > { %3589 = vmatpush.msra.mxu1 %v7152_v54  ;;  %3731 = vmatpush.msra.mxu3 %v7152_v54 }
 0x331   : > { %3568 = vmatpush.msra.mxu0 %v7036_v60  ;;  %3724 = vmatpush.msra.mxu2 %v7036_v60 }
 0x332   : > { %3706 = vmatmul.msk.f32.vlgmr.msra.gmra.mxu2 %vm3546_vm11, %v3515_v58  ;;  %3705 = vmatmul.msk.f32.vlgmr.msra.gmra.mxu0 %vm3546_vm11, %v3514_v53 }
 0x333   : > { %3590 = vmatpush.msra.mxu1 %v7100_v2  ;;  %3732 = vmatpush.msra.mxu3 %v7100_v2 }
 0x335   : > { %3591 = vmatpush.msra.mxu1 %v7039_v55  ;;  %3733 = vmatpush.msra.mxu3 %v7039_v55 }
 0x336   : > { %3708 = vmatmul.msk.f32.vlgmr.msra.gmra.mxu3 %vm3546_vm11, %v3515_v58  ;;  %3707 = vmatmul.msk.f32.vlgmr.msra.gmra.mxu1 %vm3546_vm11, %v3514_v53 }
 0x362   : > { %v3544_v26 = vpop.permute.xlu2 %3543 }
 0x37a   : > { %v3539_v40 = vpop.permute.xlu1 %3538 }
 0x3af   : > { %v3570_v60 = vpop.f32.mrf.mxu0 }
 0x3b0   : > { %v3571_v44 = vadd.f32 %v3570_v60, %v3539_v40 }
 0x3b2   : > { %v3599_v25 = vmax.f32 %v3571_v44, 0.0 }
 0x3b3   : > { %v3593_v54 = vpop.f32.mrf.mxu1 }
 0x3b4   : > { %3603 = vst [vmem:[%s190_s9] sm:$0xff] %v3599_v25  ;;  %v3594_v35 = vadd.f32 %v3593_v54, %v3539_v40 }
 0x3b5   : > { %v3573_v4 = vpop.f32.mrf.mxu2 }
 0x3b6   : > { %v3574_v2 = vadd.f32 %v3573_v4, %v3544_v26  ;;  %v3600_v48 = vmax.f32 %v3594_v35, 0.0 }
 0x3b8   : > { %v3601_v55 = vmax.f32 %v3574_v2, 0.0  ;;  %3604 = vst [vmem:[%s190_s9 + $0x8] sm:$0xff] %v3600_v48 }
 0x3b9   : > { %v3596_v18 = vpop.f32.mrf.mxu3 }
 0x3ba   : > { %3605 = vst [vmem:[%s190_s9 + $0x10] sm:$0xff] %v3601_v55  ;;  %v3597_v20 = vadd.f32 %v3596_v18, %v3544_v26 }
 0x3bc   : > { %v3602_v19 = vmax.f32 %v3597_v20, 0.0 }
 0x3be   : > { %3606 = vst [vmem:[%s190_s9 + $0x18] sm:$0xff] %v3602_v19 }
 0x3bf   : > { %4390 = shalt.err (!%p4387_p4)
}
 0x3c0   : > { %s4447_s29 = smov 256  }
 0x3c1   : > { %3736 = dma.vmem_to_hbm [thread:$0]  (%p4518_p11), %s3621_s19, 512, %s3623_s20, %s3608_s16, %s4447_s29, %s4447_s29, %s4439_s8  }
 0x3c2 PF: > { %s3637_s5 = sand.u32 1, %s4417_s12   ;;  %p7625_p7 = scmp.ge.s32.totalorder %s4429_s15, 2 }
 0x3c3   : > { %s3638_s23 = scalar_lea.sflag [#allocation6], %s3637_s5 }
 0x3c4   : > { %p3743_p5 = pnand %p7625_p7, %p4522_p12 }
 0x3c6   : > { %p3744_p8 = pneg %p3743_p5 }
 0x3c8   : > { %4412 = dma.done.wait (%p3744_p8), %s3638_s23, 512  }
 0x3c9   : > { %4414 = vsyncadd (%p3744_p8), %s3638_s23, 4294966784  ;;  %p16_p10 = scmp.ge.s32.totalorder %s4493_s18, 4   ;;  %s7626_s12 = smov %s4421_s13 }
 0x3ca   : > { %s7627_s13 = smov %s4425_s14  ;;  %s7628_s14 = smov %s4505_s21 }
 0x3cb   : > { %s7629_s15 = smov %s4493_s18  ;;  %18 = sbr.rel (!%p16_p10) target bundleno = 5 (0x5), region = 77 }
 0x3d0   :  { %3644 = vsyncpa [#allocation5], 1 }
 0x3d1   :  { %3646 = vsyncpa [#allocation5 + $0x1], 1 }
 0x3d2   :  { %3647 = vsyncpa [#allocation6], 1 }
 0x3d3   :  { %3649 = vsyncpa [#allocation6 + $0x1], 1 }

</bundles_post_ra>
